<compile_context>
chip_gen: v7x
topology: tpu7x:2x2x1
jax: 0.10.0
libtpu: 0.0.40
codegen_flags: <defaults>
</compile_context>

<pallas_src>
import functools

import numpy as np

import jax
import jax.numpy as jnp
from jax.experimental import pallas as pl
from jax.experimental.pallas import tpu as pltpu

EPS = 1e-6
CIN_PAD = 16  # pad the 3 input channels up to one bf16 sublane tile (keeps im2col concat aligned)

# column indices inside the packed per-channel-vector slab (2C rows x 10 cols, f32)
_IB, _B1, _B2, _SCAB, _B3, _B4, _B5, _EB, _BETA, _GAMMA = range(10)


# ----------------------------------------------------------------------------
# Fused Pallas kernel: intro conv3x3 -> NAFBlock -> ending conv3x3 -> tanh
# ----------------------------------------------------------------------------
def nafnet_kernel(x_ref, masks_ref, introw_ref, w2bd_ref, endw_ref,
                  w1x1_ref, scaw_ref, vecs_ref, o_ref, *, B, H, W, C, Cout):
    HW = H * W
    N = B * HW
    f32 = jnp.float32
    bf16 = jnp.bfloat16

    masks = masks_ref[...]                      # (9, N) f32 zero-halo masks (host-precomputed)
    vecs = vecs_ref[...]                        # (2C, 10) f32 packed per-channel vectors
    w1x1 = w1x1_ref[...]                        # (6C, C) bf16 packed 1x1 weights
    w1 = w1x1[0:2 * C, :]                       # conv1 (LN1 affine folded in)
    w3 = w1x1[2 * C:3 * C, :]                   # conv3
    w4 = w1x1[3 * C:5 * C, :]                   # conv4 (LN2 affine folded in)
    w5 = w1x1[5 * C:6 * C, :]                   # conv5

    def vec(j, n):                              # (n, 1) per-channel column from the slab
        return vecs[0:n, j:j + 1]

    offs = [(oy, ox) for oy in (-1, 0, 1) for ox in (-1, 0, 1)]

    def conv3x3(v, w_bf16, bias):
        # im2col as ONE MXU dot: 9 lane-rolled taps gated by zero-halo masks, stacked in bf16.
        v16 = v.astype(bf16)
        taps = []
        for k, (oy, ox) in enumerate(offs):
            d = oy * W + ox
            if d == 0:
                taps.append(v16)
            else:
                taps.append((pltpu.roll(v, (-d) % N, axis=1)
                             * masks[k:k + 1, :]).astype(bf16))
        patches = jnp.concatenate(taps, axis=0)               # (9*rows, N) bf16
        return jnp.dot(w_bf16, patches, preferred_element_type=f32) + bias

    def conv1x1(w_bf16, v, bias):
        return jnp.dot(w_bf16, v.astype(bf16), preferred_element_type=f32) + bias

    def layer_norm(v):
        # per-pixel over channels; var = E[x^2]-mu^2 -> the two XLU reduces are independent
        mu = jnp.mean(v, axis=0, keepdims=True)
        msq = jnp.mean(v * v, axis=0, keepdims=True)
        var = jnp.maximum(msq - mu * mu, 0.0)
        return (v - mu) * jax.lax.rsqrt(var + EPS)

    # ---- stack the batch along the lane axis: (CIN_PAD, B*HW) ----
    x_in = jnp.concatenate([x_ref[b] for b in range(B)], axis=1)

    # ---- intro 3x3 conv ----
    feat = conv3x3(x_in, introw_ref[...], vec(_IB, C))                 # (C, N)

    # ---- NAFBlock branch 1 ----
    v = layer_norm(feat)                                               # LN1 affine folded into w1/b1
    v = conv1x1(w1, v, vec(_B1, 2 * C))                                # (2C, N)
    v = conv3x3(v, w2bd_ref[...], vec(_B2, 2 * C))                     # depthwise 3x3 = block-diag MXU dot
    v = v[:C] * v[C:]                                                  # SimpleGate (aligned sublane split)
    # SCA: per-image pool FIRST, then a tiny (C,C) matvec (lane-padded to a well-formed dot)
    scaw = scaw_ref[...]
    scab = vec(_SCAB, C)
    segs = []
    for b in range(B):
        seg = v[:, b * HW:(b + 1) * HW]
        pooled = jnp.mean(seg, axis=1, keepdims=True)                  # (C, 1)
        sca = jnp.dot(scaw, jnp.broadcast_to(pooled, (C, 128)),
                      preferred_element_type=f32)[:, 0:1] + scab       # (C, 1)
        segs.append(seg * sca)
    v = jnp.concatenate(segs, axis=1)
    v = conv1x1(w3, v, vec(_B3, C))
    y = feat + v * vec(_BETA, C)

    # ---- NAFBlock branch 2 (FFN) ----
    v = layer_norm(y)                                                  # LN2 affine folded into w4/b4
    v = conv1x1(w4, v, vec(_B4, 2 * C))
    v = v[:C] * v[C:]
    v = conv1x1(w5, v, vec(_B5, C))
    blk_out = y + v * vec(_GAMMA, C)

    # ---- ending 3x3 conv + tanh ----
    out = jnp.tanh(conv3x3(blk_out, endw_ref[...], vec(_EB, Cout)))    # (Cout, N) lane-dense
    for b in range(B):
        o_ref[b, :, :] = out[:, b * HW:(b + 1) * HW].astype(o_ref.dtype)


# ----------------------------------------------------------------------------
# Host-side packing: constant folds + slab packing (glue, outside the kernel)
# ----------------------------------------------------------------------------
def _pack_kernel_inputs(params, B, H, W):
    blk = params["blk"]
    C = blk["w3"].shape[0]
    bf16 = jnp.bfloat16
    HW = H * W
    N = B * HW

    # zero-halo masks for the 3x3 stencils, one row per tap (kills cross-image taps too)
    pos = np.arange(N)
    hh = (pos % HW) // W
    ww = pos % W
    rows = []
    for oy in (-1, 0, 1):
        for ox in (-1, 0, 1):
            rows.append(((hh + oy >= 0) & (hh + oy < H)
                         & (ww + ox >= 0) & (ww + ox < W)).astype(np.float32))
    masks = jnp.asarray(np.stack(rows))                                # (9, N) f32

    # fold the LayerNorm affine into the following 1x1 convs (exact in f32)
    w1f = blk["w1"] * blk["ln1_w"].reshape(1, C)
    b1f = blk["b1"] + blk["w1"] @ blk["ln1_b"]
    w4f = blk["w4"] * blk["ln2_w"].reshape(1, C)
    b4f = blk["b4"] + blk["w4"] @ blk["ln2_b"]

    # depthwise 3x3 as a block-diagonal (2C, 9*2C) weight -> one MXU dot in the kernel
    eye = jnp.eye(2 * C, dtype=jnp.float32)
    w2bd = (blk["w2"][:, :, None] * eye[:, None, :]).reshape(2 * C, 9 * 2 * C)

    # pack all 1x1 weights into one bf16 slab (row offsets 0/2C/3C/5C are 16-row aligned)
    w1x1 = jnp.concatenate([w1f, blk["w3"], w4f, blk["w5"]], axis=0).astype(bf16)

    # pack all per-channel vectors into one (2C, 10) f32 slab (columns = _IB.._GAMMA)
    def col(v):
        return jnp.pad(v, ((0, 2 * C - v.shape[0]), (0, 0)))
    vecs = jnp.concatenate(
        [col(params["intro_b"]), col(b1f), col(blk["b2"]), col(blk["sca_b"]),
         col(blk["b3"]), col(b4f), col(blk["b5"]), col(params["end_b"]),
         col(blk["beta"]), col(blk["gamma"])], axis=1)

    return (masks,
            params["intro_w"].astype(bf16),
            w2bd.astype(bf16),
            params["end_w"].astype(bf16),
            w1x1,
            blk["sca_w"],
            vecs)


# ----------------------------------------------------------------------------
# Wrapper (glue): NCHW module I/O, free reshape to (B, C, H*W)
# ----------------------------------------------------------------------------
def nafnet_forward(x_nchw, params):
    B, Cin, H, W = x_nchw.shape
    HW = H * W
    N = B * HW
    blk = params["blk"]
    C = blk["w3"].shape[0]
    Cout = params["end_b"].shape[0]

    x = x_nchw.reshape(B, Cin, HW)
    if Cin < CIN_PAD:  # pad input channels to one bf16 sublane tile (aligned im2col pieces)
        x = jnp.pad(x, ((0, 0), (0, CIN_PAD - Cin), (0, 0)))

    weights = _pack_kernel_inputs(params, B, H, W)
    kern = functools.partial(nafnet_kernel, B=B, H=H, W=W, C=C, Cout=Cout)

    def full_spec(a):
        nd = a.ndim
        return pl.BlockSpec(a.shape, lambda i, _nd=nd: (0,) * _nd)

    in_specs = [full_spec(x)] + [full_spec(w) for w in weights]

    flops_per_px = 2 * (9 * CIN_PAD * C            # intro conv
                        + C * 2 * C                # conv1
                        + 9 * 2 * C                # depthwise taps
                        + C * C + C * C            # sca + conv3
                        + C * 2 * C + C * C        # conv4 + conv5
                        + 9 * C * Cout)            # ending conv
    cost = pl.CostEstimate(
        flops=int(N * flops_per_px),
        transcendentals=int(N * (Cout + 4)),
        bytes_accessed=int(4 * N * (CIN_PAD + Cout)
                           + sum(int(w.size) * w.dtype.itemsize for w in weights)),
    )

    out = pl.pallas_call(
        kern,
        out_shape=jax.ShapeDtypeStruct((B, Cout, HW), jnp.float32),
        grid=(1,),                     # single grid step: whole batch stacked on the lane axis
        in_specs=in_specs,
        out_specs=pl.BlockSpec((B, Cout, HW), lambda i: (0, 0, 0)),
        compiler_params=pltpu.CompilerParams(
            dimension_semantics=("arbitrary",),
            vmem_limit_bytes=32 * 1024 * 1024,
        ),
        cost_estimate=cost,
    )(x, *weights)
    return out.reshape(B, Cout, H, W)


# ----------------------------------------------------------------------------
# Deterministic parameter init (shapes follow NAFNet.__init__; raw params kept in f32)
# ----------------------------------------------------------------------------
def init_params(key, in_ch=3, out_ch=10, width=16):
    C = width
    keys = jax.random.split(key, 18)

    def rnd(k, shape, scale=0.1):
        return scale * jax.random.normal(k, shape, jnp.float32)

    # intro conv weight laid out (Cout, tap, cin_pad); zero taps on padded input channels.
    iw = rnd(keys[0], (C, 9, CIN_PAD))
    iw = iw.at[:, :, in_ch:].set(0.0)

    return {
        "intro_w": iw.reshape(C, 9 * CIN_PAD),
        "intro_b": rnd(keys[1], (C, 1)),
        "end_w": rnd(keys[2], (out_ch, 9 * C)),
        "end_b": rnd(keys[3], (out_ch, 1)),
        "blk": {
            "ln1_w": jnp.ones((C, 1), jnp.float32),   # PyTorch LayerNorm2d init
            "ln1_b": jnp.zeros((C, 1), jnp.float32),
            "w1": rnd(keys[4], (2 * C, C)),           # conv1 1x1: C -> 2C
            "b1": rnd(keys[5], (2 * C, 1)),
            "w2": rnd(keys[6], (2 * C, 9)),           # depthwise 3x3 taps
            "b2": rnd(keys[7], (2 * C, 1)),
            "sca_w": rnd(keys[8], (C, C)),            # SCA 1x1 (kept f32)
            "sca_b": rnd(keys[9], (C, 1)),
            "w3": rnd(keys[10], (C, C)),              # conv3 1x1
            "b3": rnd(keys[11], (C, 1)),
            "ln2_w": jnp.ones((C, 1), jnp.float32),
            "ln2_b": jnp.zeros((C, 1), jnp.float32),
            "w4": rnd(keys[12], (2 * C, C)),          # conv4 1x1
            "b4": rnd(keys[13], (2 * C, 1)),
            "w5": rnd(keys[14], (C, C)),              # conv5 1x1
            "b5": rnd(keys[15], (C, 1)),
            # PyTorch initializes beta/gamma to zero; use small nonzero values so the
            # residual-scaling paths are actually exercised by the check.
            "beta": rnd(keys[16], (C, 1)),
            "gamma": rnd(keys[17], (C, 1)),
        },
    }


# ----------------------------------------------------------------------------
# Pure-JAX reference (NCHW, mirrors the kernel's bf16-at-dot-boundary numerics)
# ----------------------------------------------------------------------------
def _conv3x3_ref(v, w, b, H, W):
    vp = jnp.pad(v, ((0, 0), (0, 0), (1, 1), (1, 1)))
    cols = [vp[:, :, 1 + oy:1 + oy + H, 1 + ox:1 + ox + W]
            for oy in (-1, 0, 1) for ox in (-1, 0, 1)]
    patches = jnp.concatenate(cols, axis=1).astype(jnp.bfloat16)
    out = jnp.einsum("ok,bkhw->bohw", w.astype(jnp.bfloat16), patches,
                     preferred_element_type=jnp.float32)
    return out + b.reshape(1, -1, 1, 1)


def _conv1x1_ref(v, w, b):
    out = jnp.einsum("oc,bchw->bohw", w.astype(jnp.bfloat16),
                     v.astype(jnp.bfloat16),
                     preferred_element_type=jnp.float32)
    return out + b.reshape(1, -1, 1, 1)


def _dwconv3x3_ref(v, w2, b2, H, W):
    # depthwise 3x3, mirroring the kernel's bf16-input/bf16-tap, f32-accumulate numerics
    vp = jnp.pad(v, ((0, 0), (0, 0), (1, 1), (1, 1)))
    w2b = w2.astype(jnp.bfloat16).astype(jnp.float32)
    acc = jnp.zeros_like(v)
    k = 0
    for oy in (-1, 0, 1):
        for ox in (-1, 0, 1):
            tap = vp[:, :, 1 + oy:1 + oy + H, 1 + ox:1 + ox + W]
            acc = acc + (tap.astype(jnp.bfloat16).astype(jnp.float32)
                         * w2b[:, k].reshape(1, -1, 1, 1))
            k += 1
    return acc + b2.reshape(1, -1, 1, 1)


def _ln_ref(v, w, b):
    mu = jnp.mean(v, axis=1, keepdims=True)
    var = jnp.mean((v - mu) ** 2, axis=1, keepdims=True)
    return ((v - mu) * jax.lax.rsqrt(var + EPS) * w.reshape(1, -1, 1, 1)
            + b.reshape(1, -1, 1, 1))


def nafnet_ref(x_nchw, params):
    B, Cin, H, W = x_nchw.shape
    blk = params["blk"]
    C = blk["w3"].shape[0]

    xp = x_nchw
    if Cin < CIN_PAD:
        xp = jnp.pad(x_nchw, ((0, 0), (0, CIN_PAD - Cin), (0, 0), (0, 0)))

    feat = _conv3x3_ref(xp, params["intro_w"], params["intro_b"], H, W)

    v = _ln_ref(feat, blk["ln1_w"], blk["ln1_b"])
    v = _conv1x1_ref(v, blk["w1"], blk["b1"])
    v = _dwconv3x3_ref(v, blk["w2"], blk["b2"], H, W)
    v = v[:, :C] * v[:, C:]
    pooled = jnp.mean(v, axis=(2, 3), keepdims=True)
    sca = (jnp.einsum("oc,bcij->boij", blk["sca_w"], pooled)
           + blk["sca_b"].reshape(1, -1, 1, 1))
    v = v * sca
    v = _conv1x1_ref(v, blk["w3"], blk["b3"])
    y = feat + v * blk["beta"].reshape(1, -1, 1, 1)

    v = _ln_ref(y, blk["ln2_w"], blk["ln2_b"])
    v = _conv1x1_ref(v, blk["w4"], blk["b4"])
    v = v[:, :C] * v[:, C:]
    v = _conv1x1_ref(v, blk["w5"], blk["b5"])
    out = y + v * blk["gamma"].reshape(1, -1, 1, 1)

    out = _conv3x3_ref(out, params["end_w"], params["end_b"], H, W)
    return jnp.tanh(out)


if __name__ == "__main__":
    key = jax.random.PRNGKey(0)
    k_x, k_p = jax.random.split(key)
    B, Cin, H, W = 2, 3, 16, 16
    x = jax.random.normal(k_x, (B, Cin, H, W), jnp.float32)
    params = init_params(k_p, in_ch=Cin, out_ch=10, width=16)

    out = jax.block_until_ready(nafnet_forward(x, params))
    ref = jax.block_until_ready(nafnet_ref(x, params))

    assert out.shape == (B, 10, H, W), out.shape
    if not jnp.allclose(out, ref, atol=3e-3, rtol=3e-3):
        raise AssertionError(
            f"mismatch vs reference: max abs err {float(jnp.max(jnp.abs(out - ref)))}")
    print("KERNEL_OK")
</pallas_src>

<mosaic_0001>
module attributes {stable_mosaic.version = 11 : i64} {
  func.func @nafnet_kernel(%arg0: i32, %arg1: memref<2x16x256xf32, #tpu.memory_space<vmem>>, %arg2: memref<9x512xf32, #tpu.memory_space<vmem>>, %arg3: memref<16x144xbf16, #tpu.memory_space<vmem>>, %arg4: memref<32x288xbf16, #tpu.memory_space<vmem>>, %arg5: memref<10x144xbf16, #tpu.memory_space<vmem>>, %arg6: memref<96x16xbf16, #tpu.memory_space<vmem>>, %arg7: memref<16x16xf32, #tpu.memory_space<vmem>>, %arg8: memref<32x10xf32, #tpu.memory_space<vmem>>, %arg9: memref<2x10x256xf32, #tpu.memory_space<vmem>>) attributes {dimension_semantics = [#tpu.dimension_semantics<arbitrary>], iteration_bounds = array<i64: 1>, scalar_prefetch = 0 : i64, scratch_operands = 0 : i64, tpu.core_type = #tpu.core_type<tc>, window_params = [{pipeline_mode = #tpu.pipeline_mode<synchronous>, transform_indices = @transform_0, window_bounds = array<i64: 2, 16, 256>}, {pipeline_mode = #tpu.pipeline_mode<synchronous>, transform_indices = @transform_1, window_bounds = array<i64: 9, 512>}, {pipeline_mode = #tpu.pipeline_mode<synchronous>, transform_indices = @transform_2, window_bounds = array<i64: 16, 144>}, {pipeline_mode = #tpu.pipeline_mode<synchronous>, transform_indices = @transform_3, window_bounds = array<i64: 32, 288>}, {pipeline_mode = #tpu.pipeline_mode<synchronous>, transform_indices = @transform_4, window_bounds = array<i64: 10, 144>}, {pipeline_mode = #tpu.pipeline_mode<synchronous>, transform_indices = @transform_5, window_bounds = array<i64: 96, 16>}, {pipeline_mode = #tpu.pipeline_mode<synchronous>, transform_indices = @transform_6, window_bounds = array<i64: 16, 16>}, {pipeline_mode = #tpu.pipeline_mode<synchronous>, transform_indices = @transform_7, window_bounds = array<i64: 32, 10>}, {pipeline_mode = #tpu.pipeline_mode<synchronous>, transform_indices = @transform_8, window_bounds = array<i64: 2, 10, 256>}]} {
    %c0 = arith.constant 0 : index
    %c0_0 = arith.constant 0 : index
    %0 = vector.load %arg2[%c0, %c0_0] : memref<9x512xf32, #tpu.memory_space<vmem>>, vector<9x512xf32>
    %c0_1 = arith.constant 0 : index
    %c0_2 = arith.constant 0 : index
    %1 = vector.load %arg8[%c0_1, %c0_2] : memref<32x10xf32, #tpu.memory_space<vmem>>, vector<32x10xf32>
    %c0_3 = arith.constant 0 : index
    %c0_4 = arith.constant 0 : index
    %2 = vector.load %arg6[%c0_3, %c0_4] : memref<96x16xbf16, #tpu.memory_space<vmem>>, vector<96x16xbf16>
    %3 = vector.extract_strided_slice %2 {offsets = [0, 0], sizes = [32, 16], strides = [1, 1]} : vector<96x16xbf16> to vector<32x16xbf16>
    %4 = vector.extract_strided_slice %2 {offsets = [32, 0], sizes = [16, 16], strides = [1, 1]} : vector<96x16xbf16> to vector<16x16xbf16>
    %5 = vector.extract_strided_slice %2 {offsets = [48, 0], sizes = [32, 16], strides = [1, 1]} : vector<96x16xbf16> to vector<32x16xbf16>
    %6 = vector.extract_strided_slice %2 {offsets = [80, 0], sizes = [16, 16], strides = [1, 1]} : vector<96x16xbf16> to vector<16x16xbf16>
    %c0_5 = arith.constant 0 : index
    %c0_6 = arith.constant 0 : index
    %c0_7 = arith.constant 0 : index
    %7 = vector.load %arg1[%c0_5, %c0_6, %c0_7] : memref<2x16x256xf32, #tpu.memory_space<vmem>>, vector<1x16x256xf32>
    %8 = vector.shape_cast %7 : vector<1x16x256xf32> to vector<16x256xf32>
    %c1 = arith.constant 1 : index
    %c0_8 = arith.constant 0 : index
    %c0_9 = arith.constant 0 : index
    %9 = vector.load %arg1[%c1, %c0_8, %c0_9] : memref<2x16x256xf32, #tpu.memory_space<vmem>>, vector<1x16x256xf32>
    %10 = vector.shape_cast %9 : vector<1x16x256xf32> to vector<16x256xf32>
    %11 = tpu.concatenate %8, %10 in 1 : vector<16x256xf32>, vector<16x256xf32> -> vector<16x512xf32>
    %c0_10 = arith.constant 0 : index
    %c0_11 = arith.constant 0 : index
    %12 = vector.load %arg3[%c0_10, %c0_11] : memref<16x144xbf16, #tpu.memory_space<vmem>>, vector<16x144xbf16>
    %13 = vector.extract_strided_slice %1 {offsets = [0, 0], sizes = [16, 1], strides = [1, 1]} : vector<32x10xf32> to vector<16x1xf32>
    %14 = arith.truncf %11 : vector<16x512xf32> to vector<16x512xbf16>
    %c17_i32 = arith.constant 17 : i32
    %15 = tpu.dynamic_rotate %11 by %c17_i32 dim 1 : vector<16x512xf32>, i32 -> vector<16x512xf32>
    %16 = vector.extract_strided_slice %0 {offsets = [0, 0], sizes = [1, 512], strides = [1, 1]} : vector<9x512xf32> to vector<1x512xf32>
    %17 = vector.broadcast %16 : vector<1x512xf32> to vector<16x512xf32>
    %18 = arith.mulf %15, %17 : vector<16x512xf32>
    %19 = arith.truncf %18 : vector<16x512xf32> to vector<16x512xbf16>
    %c16_i32 = arith.constant 16 : i32
    %20 = tpu.dynamic_rotate %11 by %c16_i32 dim 1 : vector<16x512xf32>, i32 -> vector<16x512xf32>
    %21 = vector.extract_strided_slice %0 {offsets = [1, 0], sizes = [1, 512], strides = [1, 1]} : vector<9x512xf32> to vector<1x512xf32>
    %22 = vector.broadcast %21 : vector<1x512xf32> to vector<16x512xf32>
    %23 = arith.mulf %20, %22 : vector<16x512xf32>
    %24 = arith.truncf %23 : vector<16x512xf32> to vector<16x512xbf16>
    %c15_i32 = arith.constant 15 : i32
    %25 = tpu.dynamic_rotate %11 by %c15_i32 dim 1 : vector<16x512xf32>, i32 -> vector<16x512xf32>
    %26 = vector.extract_strided_slice %0 {offsets = [2, 0], sizes = [1, 512], strides = [1, 1]} : vector<9x512xf32> to vector<1x512xf32>
    %27 = vector.broadcast %26 : vector<1x512xf32> to vector<16x512xf32>
    %28 = arith.mulf %25, %27 : vector<16x512xf32>
    %29 = arith.truncf %28 : vector<16x512xf32> to vector<16x512xbf16>
    %c1_i32 = arith.constant 1 : i32
    %30 = tpu.dynamic_rotate %11 by %c1_i32 dim 1 : vector<16x512xf32>, i32 -> vector<16x512xf32>
    %31 = vector.extract_strided_slice %0 {offsets = [3, 0], sizes = [1, 512], strides = [1, 1]} : vector<9x512xf32> to vector<1x512xf32>
    %32 = vector.broadcast %31 : vector<1x512xf32> to vector<16x512xf32>
    %33 = arith.mulf %30, %32 : vector<16x512xf32>
    %34 = arith.truncf %33 : vector<16x512xf32> to vector<16x512xbf16>
    %c511_i32 = arith.constant 511 : i32
    %35 = tpu.dynamic_rotate %11 by %c511_i32 dim 1 : vector<16x512xf32>, i32 -> vector<16x512xf32>
    %36 = vector.extract_strided_slice %0 {offsets = [5, 0], sizes = [1, 512], strides = [1, 1]} : vector<9x512xf32> to vector<1x512xf32>
    %37 = vector.broadcast %36 : vector<1x512xf32> to vector<16x512xf32>
    %38 = arith.mulf %35, %37 : vector<16x512xf32>
    %39 = arith.truncf %38 : vector<16x512xf32> to vector<16x512xbf16>
    %c497_i32 = arith.constant 497 : i32
    %40 = tpu.dynamic_rotate %11 by %c497_i32 dim 1 : vector<16x512xf32>, i32 -> vector<16x512xf32>
    %41 = vector.extract_strided_slice %0 {offsets = [6, 0], sizes = [1, 512], strides = [1, 1]} : vector<9x512xf32> to vector<1x512xf32>
    %42 = vector.broadcast %41 : vector<1x512xf32> to vector<16x512xf32>
    %43 = arith.mulf %40, %42 : vector<16x512xf32>
    %44 = arith.truncf %43 : vector<16x512xf32> to vector<16x512xbf16>
    %c496_i32 = arith.constant 496 : i32
    %45 = tpu.dynamic_rotate %11 by %c496_i32 dim 1 : vector<16x512xf32>, i32 -> vector<16x512xf32>
    %46 = vector.extract_strided_slice %0 {offsets = [7, 0], sizes = [1, 512], strides = [1, 1]} : vector<9x512xf32> to vector<1x512xf32>
    %47 = vector.broadcast %46 : vector<1x512xf32> to vector<16x512xf32>
    %48 = arith.mulf %45, %47 : vector<16x512xf32>
    %49 = arith.truncf %48 : vector<16x512xf32> to vector<16x512xbf16>
    %c495_i32 = arith.constant 495 : i32
    %50 = tpu.dynamic_rotate %11 by %c495_i32 dim 1 : vector<16x512xf32>, i32 -> vector<16x512xf32>
    %51 = vector.extract_strided_slice %0 {offsets = [8, 0], sizes = [1, 512], strides = [1, 1]} : vector<9x512xf32> to vector<1x512xf32>
    %52 = vector.broadcast %51 : vector<1x512xf32> to vector<16x512xf32>
    %53 = arith.mulf %50, %52 : vector<16x512xf32>
    %54 = arith.truncf %53 : vector<16x512xf32> to vector<16x512xbf16>
    %55 = tpu.concatenate %19, %24, %29, %34, %14, %39, %44, %49, %54 in 0 : vector<16x512xbf16>, vector<16x512xbf16>, vector<16x512xbf16>, vector<16x512xbf16>, vector<16x512xbf16>, vector<16x512xbf16>, vector<16x512xbf16>, vector<16x512xbf16>, vector<16x512xbf16> -> vector<144x512xbf16>
    %cst = arith.constant dense<0.000000e+00> : vector<16x512xf32>
    %56 = tpu.matmul %12, %55, %cst {dimension_numbers = #tpu.dot_dimension_numbers<[1], [0], [0], [1], [0, 0, 1, 1], [], []>} : vector<16x144xbf16>, vector<144x512xbf16>, vector<16x512xf32> -> vector<16x512xf32>
    %57 = vector.broadcast %13 : vector<16x1xf32> to vector<16x512xf32>
    %58 = arith.addf %56, %57 : vector<16x512xf32>
    %cst_12 = arith.constant dense<0.000000e+00> : vector<512xf32>
    %59 = vector.multi_reduction <add>, %58, %cst_12 [0] : vector<16x512xf32> to vector<512xf32>
    %60 = vector.shape_cast %59 : vector<512xf32> to vector<1x512xf32>
    %cst_13 = arith.constant 1.600000e+01 : f32
    %61 = vector.broadcast %cst_13 : f32 to vector<1x512xf32>
    %62 = arith.divf %60, %61 : vector<1x512xf32>
    %63 = arith.mulf %58, %58 : vector<16x512xf32>
    %cst_14 = arith.constant dense<0.000000e+00> : vector<512xf32>
    %64 = vector.multi_reduction <add>, %63, %cst_14 [0] : vector<16x512xf32> to vector<512xf32>
    %65 = vector.shape_cast %64 : vector<512xf32> to vector<1x512xf32>
    %cst_15 = arith.constant 1.600000e+01 : f32
    %66 = vector.broadcast %cst_15 : f32 to vector<1x512xf32>
    %67 = arith.divf %65, %66 : vector<1x512xf32>
    %68 = arith.mulf %62, %62 : vector<1x512xf32>
    %69 = arith.subf %67, %68 : vector<1x512xf32>
    %cst_16 = arith.constant 0.000000e+00 : f32
    %70 = vector.broadcast %cst_16 : f32 to vector<1x512xf32>
    %71 = arith.maximumf %69, %70 : vector<1x512xf32>
    %72 = vector.broadcast %62 : vector<1x512xf32> to vector<16x512xf32>
    %73 = arith.subf %58, %72 : vector<16x512xf32>
    %cst_17 = arith.constant 9.99999997E-7 : f32
    %74 = vector.broadcast %cst_17 : f32 to vector<1x512xf32>
    %75 = arith.addf %71, %74 : vector<1x512xf32>
    %76 = math.rsqrt %75 : vector<1x512xf32>
    %77 = vector.broadcast %76 : vector<1x512xf32> to vector<16x512xf32>
    %78 = arith.mulf %73, %77 : vector<16x512xf32>
    %79 = vector.extract_strided_slice %1 {offsets = [0, 1], sizes = [32, 1], strides = [1, 1]} : vector<32x10xf32> to vector<32x1xf32>
    %80 = arith.truncf %78 : vector<16x512xf32> to vector<16x512xbf16>
    %cst_18 = arith.constant dense<0.000000e+00> : vector<32x512xf32>
    %81 = tpu.matmul %3, %80, %cst_18 {dimension_numbers = #tpu.dot_dimension_numbers<[1], [0], [0], [1], [0, 0, 1, 1], [], []>} : vector<32x16xbf16>, vector<16x512xbf16>, vector<32x512xf32> -> vector<32x512xf32>
    %82 = vector.broadcast %79 : vector<32x1xf32> to vector<32x512xf32>
    %83 = arith.addf %81, %82 : vector<32x512xf32>
    %c0_19 = arith.constant 0 : index
    %c0_20 = arith.constant 0 : index
    %84 = vector.load %arg4[%c0_19, %c0_20] : memref<32x288xbf16, #tpu.memory_space<vmem>>, vector<32x288xbf16>
    %85 = vector.extract_strided_slice %1 {offsets = [0, 2], sizes = [32, 1], strides = [1, 1]} : vector<32x10xf32> to vector<32x1xf32>
    %86 = arith.truncf %83 : vector<32x512xf32> to vector<32x512xbf16>
    %c17_i32_21 = arith.constant 17 : i32
    %87 = tpu.dynamic_rotate %83 by %c17_i32_21 dim 1 : vector<32x512xf32>, i32 -> vector<32x512xf32>
    %88 = vector.extract_strided_slice %0 {offsets = [0, 0], sizes = [1, 512], strides = [1, 1]} : vector<9x512xf32> to vector<1x512xf32>
    %89 = vector.broadcast %88 : vector<1x512xf32> to vector<32x512xf32>
    %90 = arith.mulf %87, %89 : vector<32x512xf32>
    %91 = arith.truncf %90 : vector<32x512xf32> to vector<32x512xbf16>
    %c16_i32_22 = arith.constant 16 : i32
    %92 = tpu.dynamic_rotate %83 by %c16_i32_22 dim 1 : vector<32x512xf32>, i32 -> vector<32x512xf32>
    %93 = vector.extract_strided_slice %0 {offsets = [1, 0], sizes = [1, 512], strides = [1, 1]} : vector<9x512xf32> to vector<1x512xf32>
    %94 = vector.broadcast %93 : vector<1x512xf32> to vector<32x512xf32>
    %95 = arith.mulf %92, %94 : vector<32x512xf32>
    %96 = arith.truncf %95 : vector<32x512xf32> to vector<32x512xbf16>
    %c15_i32_23 = arith.constant 15 : i32
    %97 = tpu.dynamic_rotate %83 by %c15_i32_23 dim 1 : vector<32x512xf32>, i32 -> vector<32x512xf32>
    %98 = vector.extract_strided_slice %0 {offsets = [2, 0], sizes = [1, 512], strides = [1, 1]} : vector<9x512xf32> to vector<1x512xf32>
    %99 = vector.broadcast %98 : vector<1x512xf32> to vector<32x512xf32>
    %100 = arith.mulf %97, %99 : vector<32x512xf32>
    %101 = arith.truncf %100 : vector<32x512xf32> to vector<32x512xbf16>
    %c1_i32_24 = arith.constant 1 : i32
    %102 = tpu.dynamic_rotate %83 by %c1_i32_24 dim 1 : vector<32x512xf32>, i32 -> vector<32x512xf32>
    %103 = vector.extract_strided_slice %0 {offsets = [3, 0], sizes = [1, 512], strides = [1, 1]} : vector<9x512xf32> to vector<1x512xf32>
    %104 = vector.broadcast %103 : vector<1x512xf32> to vector<32x512xf32>
    %105 = arith.mulf %102, %104 : vector<32x512xf32>
    %106 = arith.truncf %105 : vector<32x512xf32> to vector<32x512xbf16>
    %c511_i32_25 = arith.constant 511 : i32
    %107 = tpu.dynamic_rotate %83 by %c511_i32_25 dim 1 : vector<32x512xf32>, i32 -> vector<32x512xf32>
    %108 = vector.extract_strided_slice %0 {offsets = [5, 0], sizes = [1, 512], strides = [1, 1]} : vector<9x512xf32> to vector<1x512xf32>
    %109 = vector.broadcast %108 : vector<1x512xf32> to vector<32x512xf32>
    %110 = arith.mulf %107, %109 : vector<32x512xf32>
    %111 = arith.truncf %110 : vector<32x512xf32> to vector<32x512xbf16>
    %c497_i32_26 = arith.constant 497 : i32
    %112 = tpu.dynamic_rotate %83 by %c497_i32_26 dim 1 : vector<32x512xf32>, i32 -> vector<32x512xf32>
    %113 = vector.extract_strided_slice %0 {offsets = [6, 0], sizes = [1, 512], strides = [1, 1]} : vector<9x512xf32> to vector<1x512xf32>
    %114 = vector.broadcast %113 : vector<1x512xf32> to vector<32x512xf32>
    %115 = arith.mulf %112, %114 : vector<32x512xf32>
    %116 = arith.truncf %115 : vector<32x512xf32> to vector<32x512xbf16>
    %c496_i32_27 = arith.constant 496 : i32
    %117 = tpu.dynamic_rotate %83 by %c496_i32_27 dim 1 : vector<32x512xf32>, i32 -> vector<32x512xf32>
    %118 = vector.extract_strided_slice %0 {offsets = [7, 0], sizes = [1, 512], strides = [1, 1]} : vector<9x512xf32> to vector<1x512xf32>
    %119 = vector.broadcast %118 : vector<1x512xf32> to vector<32x512xf32>
    %120 = arith.mulf %117, %119 : vector<32x512xf32>
    %121 = arith.truncf %120 : vector<32x512xf32> to vector<32x512xbf16>
    %c495_i32_28 = arith.constant 495 : i32
    %122 = tpu.dynamic_rotate %83 by %c495_i32_28 dim 1 : vector<32x512xf32>, i32 -> vector<32x512xf32>
    %123 = vector.extract_strided_slice %0 {offsets = [8, 0], sizes = [1, 512], strides = [1, 1]} : vector<9x512xf32> to vector<1x512xf32>
    %124 = vector.broadcast %123 : vector<1x512xf32> to vector<32x512xf32>
    %125 = arith.mulf %122, %124 : vector<32x512xf32>
    %126 = arith.truncf %125 : vector<32x512xf32> to vector<32x512xbf16>
    %127 = tpu.concatenate %91, %96, %101, %106, %86, %111, %116, %121, %126 in 0 : vector<32x512xbf16>, vector<32x512xbf16>, vector<32x512xbf16>, vector<32x512xbf16>, vector<32x512xbf16>, vector<32x512xbf16>, vector<32x512xbf16>, vector<32x512xbf16>, vector<32x512xbf16> -> vector<288x512xbf16>
    %cst_29 = arith.constant dense<0.000000e+00> : vector<32x512xf32>
    %128 = tpu.matmul %84, %127, %cst_29 {dimension_numbers = #tpu.dot_dimension_numbers<[1], [0], [0], [1], [0, 0, 1, 1], [], []>} : vector<32x288xbf16>, vector<288x512xbf16>, vector<32x512xf32> -> vector<32x512xf32>
    %129 = vector.broadcast %85 : vector<32x1xf32> to vector<32x512xf32>
    %130 = arith.addf %128, %129 : vector<32x512xf32>
    %131 = vector.extract_strided_slice %130 {offsets = [0, 0], sizes = [16, 512], strides = [1, 1]} : vector<32x512xf32> to vector<16x512xf32>
    %132 = vector.extract_strided_slice %130 {offsets = [16, 0], sizes = [16, 512], strides = [1, 1]} : vector<32x512xf32> to vector<16x512xf32>
    %133 = arith.mulf %131, %132 : vector<16x512xf32>
    %c0_30 = arith.constant 0 : index
    %c0_31 = arith.constant 0 : index
    %134 = vector.load %arg7[%c0_30, %c0_31] : memref<16x16xf32, #tpu.memory_space<vmem>>, vector<16x16xf32>
    %135 = vector.extract_strided_slice %1 {offsets = [0, 3], sizes = [16, 1], strides = [1, 1]} : vector<32x10xf32> to vector<16x1xf32>
    %136 = vector.extract_strided_slice %133 {offsets = [0, 0], sizes = [16, 256], strides = [1, 1]} : vector<16x512xf32> to vector<16x256xf32>
    %cst_32 = arith.constant dense<0.000000e+00> : vector<16xf32>
    %137 = vector.multi_reduction <add>, %136, %cst_32 [1] : vector<16x256xf32> to vector<16xf32>
    %138 = vector.shape_cast %137 : vector<16xf32> to vector<16x1xf32>
    %cst_33 = arith.constant 2.560000e+02 : f32
    %139 = vector.broadcast %cst_33 : f32 to vector<16x1xf32>
    %140 = arith.divf %138, %139 : vector<16x1xf32>
    %141 = vector.shape_cast %140 : vector<16x1xf32> to vector<16x1xf32>
    %142 = vector.broadcast %141 : vector<16x1xf32> to vector<16x128xf32>
    %cst_34 = arith.constant dense<0.000000e+00> : vector<16x128xf32>
    %143 = tpu.matmul %134, %142, %cst_34 {dimension_numbers = #tpu.dot_dimension_numbers<[1], [0], [0], [1], [0, 0, 1, 1], [], []>} : vector<16x16xf32>, vector<16x128xf32>, vector<16x128xf32> -> vector<16x128xf32>
    %144 = vector.extract_strided_slice %143 {offsets = [0, 0], sizes = [16, 1], strides = [1, 1]} : vector<16x128xf32> to vector<16x1xf32>
    %145 = arith.addf %144, %135 : vector<16x1xf32>
    %146 = vector.broadcast %145 : vector<16x1xf32> to vector<16x256xf32>
    %147 = arith.mulf %136, %146 : vector<16x256xf32>
    %148 = vector.extract_strided_slice %133 {offsets = [0, 256], sizes = [16, 256], strides = [1, 1]} : vector<16x512xf32> to vector<16x256xf32>
    %cst_35 = arith.constant dense<0.000000e+00> : vector<16xf32>
    %149 = vector.multi_reduction <add>, %148, %cst_35 [1] : vector<16x256xf32> to vector<16xf32>
    %150 = vector.shape_cast %149 : vector<16xf32> to vector<16x1xf32>
    %cst_36 = arith.constant 2.560000e+02 : f32
    %151 = vector.broadcast %cst_36 : f32 to vector<16x1xf32>
    %152 = arith.divf %150, %151 : vector<16x1xf32>
    %153 = vector.shape_cast %152 : vector<16x1xf32> to vector<16x1xf32>
    %154 = vector.broadcast %153 : vector<16x1xf32> to vector<16x128xf32>
    %cst_37 = arith.constant dense<0.000000e+00> : vector<16x128xf32>
    %155 = tpu.matmul %134, %154, %cst_37 {dimension_numbers = #tpu.dot_dimension_numbers<[1], [0], [0], [1], [0, 0, 1, 1], [], []>} : vector<16x16xf32>, vector<16x128xf32>, vector<16x128xf32> -> vector<16x128xf32>
    %156 = vector.extract_strided_slice %155 {offsets = [0, 0], sizes = [16, 1], strides = [1, 1]} : vector<16x128xf32> to vector<16x1xf32>
    %157 = arith.addf %156, %135 : vector<16x1xf32>
    %158 = vector.broadcast %157 : vector<16x1xf32> to vector<16x256xf32>
    %159 = arith.mulf %148, %158 : vector<16x256xf32>
    %160 = tpu.concatenate %147, %159 in 1 : vector<16x256xf32>, vector<16x256xf32> -> vector<16x512xf32>
    %161 = vector.extract_strided_slice %1 {offsets = [0, 4], sizes = [16, 1], strides = [1, 1]} : vector<32x10xf32> to vector<16x1xf32>
    %162 = arith.truncf %160 : vector<16x512xf32> to vector<16x512xbf16>
    %cst_38 = arith.constant dense<0.000000e+00> : vector<16x512xf32>
    %163 = tpu.matmul %4, %162, %cst_38 {dimension_numbers = #tpu.dot_dimension_numbers<[1], [0], [0], [1], [0, 0, 1, 1], [], []>} : vector<16x16xbf16>, vector<16x512xbf16>, vector<16x512xf32> -> vector<16x512xf32>
    %164 = vector.broadcast %161 : vector<16x1xf32> to vector<16x512xf32>
    %165 = arith.addf %163, %164 : vector<16x512xf32>
    %166 = vector.extract_strided_slice %1 {offsets = [0, 8], sizes = [16, 1], strides = [1, 1]} : vector<32x10xf32> to vector<16x1xf32>
    %167 = vector.broadcast %166 : vector<16x1xf32> to vector<16x512xf32>
    %168 = arith.mulf %165, %167 : vector<16x512xf32>
    %169 = arith.addf %58, %168 : vector<16x512xf32>
    %cst_39 = arith.constant dense<0.000000e+00> : vector<512xf32>
    %170 = vector.multi_reduction <add>, %169, %cst_39 [0] : vector<16x512xf32> to vector<512xf32>
    %171 = vector.shape_cast %170 : vector<512xf32> to vector<1x512xf32>
    %cst_40 = arith.constant 1.600000e+01 : f32
    %172 = vector.broadcast %cst_40 : f32 to vector<1x512xf32>
    %173 = arith.divf %171, %172 : vector<1x512xf32>
    %174 = arith.mulf %169, %169 : vector<16x512xf32>
    %cst_41 = arith.constant dense<0.000000e+00> : vector<512xf32>
    %175 = vector.multi_reduction <add>, %174, %cst_41 [0] : vector<16x512xf32> to vector<512xf32>
    %176 = vector.shape_cast %175 : vector<512xf32> to vector<1x512xf32>
    %cst_42 = arith.constant 1.600000e+01 : f32
    %177 = vector.broadcast %cst_42 : f32 to vector<1x512xf32>
    %178 = arith.divf %176, %177 : vector<1x512xf32>
    %179 = arith.mulf %173, %173 : vector<1x512xf32>
    %180 = arith.subf %178, %179 : vector<1x512xf32>
    %cst_43 = arith.constant 0.000000e+00 : f32
    %181 = vector.broadcast %cst_43 : f32 to vector<1x512xf32>
    %182 = arith.maximumf %180, %181 : vector<1x512xf32>
    %183 = vector.broadcast %173 : vector<1x512xf32> to vector<16x512xf32>
    %184 = arith.subf %169, %183 : vector<16x512xf32>
    %cst_44 = arith.constant 9.99999997E-7 : f32
    %185 = vector.broadcast %cst_44 : f32 to vector<1x512xf32>
    %186 = arith.addf %182, %185 : vector<1x512xf32>
    %187 = math.rsqrt %186 : vector<1x512xf32>
    %188 = vector.broadcast %187 : vector<1x512xf32> to vector<16x512xf32>
    %189 = arith.mulf %184, %188 : vector<16x512xf32>
    %190 = vector.extract_strided_slice %1 {offsets = [0, 5], sizes = [32, 1], strides = [1, 1]} : vector<32x10xf32> to vector<32x1xf32>
    %191 = arith.truncf %189 : vector<16x512xf32> to vector<16x512xbf16>
    %cst_45 = arith.constant dense<0.000000e+00> : vector<32x512xf32>
    %192 = tpu.matmul %5, %191, %cst_45 {dimension_numbers = #tpu.dot_dimension_numbers<[1], [0], [0], [1], [0, 0, 1, 1], [], []>} : vector<32x16xbf16>, vector<16x512xbf16>, vector<32x512xf32> -> vector<32x512xf32>
    %193 = vector.broadcast %190 : vector<32x1xf32> to vector<32x512xf32>
    %194 = arith.addf %192, %193 : vector<32x512xf32>
    %195 = vector.extract_strided_slice %194 {offsets = [0, 0], sizes = [16, 512], strides = [1, 1]} : vector<32x512xf32> to vector<16x512xf32>
    %196 = vector.extract_strided_slice %194 {offsets = [16, 0], sizes = [16, 512], strides = [1, 1]} : vector<32x512xf32> to vector<16x512xf32>
    %197 = arith.mulf %195, %196 : vector<16x512xf32>
    %198 = vector.extract_strided_slice %1 {offsets = [0, 6], sizes = [16, 1], strides = [1, 1]} : vector<32x10xf32> to vector<16x1xf32>
    %199 = arith.truncf %197 : vector<16x512xf32> to vector<16x512xbf16>
    %cst_46 = arith.constant dense<0.000000e+00> : vector<16x512xf32>
    %200 = tpu.matmul %6, %199, %cst_46 {dimension_numbers = #tpu.dot_dimension_numbers<[1], [0], [0], [1], [0, 0, 1, 1], [], []>} : vector<16x16xbf16>, vector<16x512xbf16>, vector<16x512xf32> -> vector<16x512xf32>
    %201 = vector.broadcast %198 : vector<16x1xf32> to vector<16x512xf32>
    %202 = arith.addf %200, %201 : vector<16x512xf32>
    %203 = vector.extract_strided_slice %1 {offsets = [0, 9], sizes = [16, 1], strides = [1, 1]} : vector<32x10xf32> to vector<16x1xf32>
    %204 = vector.broadcast %203 : vector<16x1xf32> to vector<16x512xf32>
    %205 = arith.mulf %202, %204 : vector<16x512xf32>
    %206 = arith.addf %169, %205 : vector<16x512xf32>
    %c0_47 = arith.constant 0 : index
    %c0_48 = arith.constant 0 : index
    %207 = vector.load %arg5[%c0_47, %c0_48] : memref<10x144xbf16, #tpu.memory_space<vmem>>, vector<10x144xbf16>
    %208 = vector.extract_strided_slice %1 {offsets = [0, 7], sizes = [10, 1], strides = [1, 1]} : vector<32x10xf32> to vector<10x1xf32>
    %209 = arith.truncf %206 : vector<16x512xf32> to vector<16x512xbf16>
    %c17_i32_49 = arith.constant 17 : i32
    %210 = tpu.dynamic_rotate %206 by %c17_i32_49 dim 1 : vector<16x512xf32>, i32 -> vector<16x512xf32>
    %211 = vector.extract_strided_slice %0 {offsets = [0, 0], sizes = [1, 512], strides = [1, 1]} : vector<9x512xf32> to vector<1x512xf32>
    %212 = vector.broadcast %211 : vector<1x512xf32> to vector<16x512xf32>
    %213 = arith.mulf %210, %212 : vector<16x512xf32>
    %214 = arith.truncf %213 : vector<16x512xf32> to vector<16x512xbf16>
    %c16_i32_50 = arith.constant 16 : i32
    %215 = tpu.dynamic_rotate %206 by %c16_i32_50 dim 1 : vector<16x512xf32>, i32 -> vector<16x512xf32>
    %216 = vector.extract_strided_slice %0 {offsets = [1, 0], sizes = [1, 512], strides = [1, 1]} : vector<9x512xf32> to vector<1x512xf32>
    %217 = vector.broadcast %216 : vector<1x512xf32> to vector<16x512xf32>
    %218 = arith.mulf %215, %217 : vector<16x512xf32>
    %219 = arith.truncf %218 : vector<16x512xf32> to vector<16x512xbf16>
    %c15_i32_51 = arith.constant 15 : i32
    %220 = tpu.dynamic_rotate %206 by %c15_i32_51 dim 1 : vector<16x512xf32>, i32 -> vector<16x512xf32>
    %221 = vector.extract_strided_slice %0 {offsets = [2, 0], sizes = [1, 512], strides = [1, 1]} : vector<9x512xf32> to vector<1x512xf32>
    %222 = vector.broadcast %221 : vector<1x512xf32> to vector<16x512xf32>
    %223 = arith.mulf %220, %222 : vector<16x512xf32>
    %224 = arith.truncf %223 : vector<16x512xf32> to vector<16x512xbf16>
    %c1_i32_52 = arith.constant 1 : i32
    %225 = tpu.dynamic_rotate %206 by %c1_i32_52 dim 1 : vector<16x512xf32>, i32 -> vector<16x512xf32>
    %226 = vector.extract_strided_slice %0 {offsets = [3, 0], sizes = [1, 512], strides = [1, 1]} : vector<9x512xf32> to vector<1x512xf32>
    %227 = vector.broadcast %226 : vector<1x512xf32> to vector<16x512xf32>
    %228 = arith.mulf %225, %227 : vector<16x512xf32>
    %229 = arith.truncf %228 : vector<16x512xf32> to vector<16x512xbf16>
    %c511_i32_53 = arith.constant 511 : i32
    %230 = tpu.dynamic_rotate %206 by %c511_i32_53 dim 1 : vector<16x512xf32>, i32 -> vector<16x512xf32>
    %231 = vector.extract_strided_slice %0 {offsets = [5, 0], sizes = [1, 512], strides = [1, 1]} : vector<9x512xf32> to vector<1x512xf32>
    %232 = vector.broadcast %231 : vector<1x512xf32> to vector<16x512xf32>
    %233 = arith.mulf %230, %232 : vector<16x512xf32>
    %234 = arith.truncf %233 : vector<16x512xf32> to vector<16x512xbf16>
    %c497_i32_54 = arith.constant 497 : i32
    %235 = tpu.dynamic_rotate %206 by %c497_i32_54 dim 1 : vector<16x512xf32>, i32 -> vector<16x512xf32>
    %236 = vector.extract_strided_slice %0 {offsets = [6, 0], sizes = [1, 512], strides = [1, 1]} : vector<9x512xf32> to vector<1x512xf32>
    %237 = vector.broadcast %236 : vector<1x512xf32> to vector<16x512xf32>
    %238 = arith.mulf %235, %237 : vector<16x512xf32>
    %239 = arith.truncf %238 : vector<16x512xf32> to vector<16x512xbf16>
    %c496_i32_55 = arith.constant 496 : i32
    %240 = tpu.dynamic_rotate %206 by %c496_i32_55 dim 1 : vector<16x512xf32>, i32 -> vector<16x512xf32>
    %241 = vector.extract_strided_slice %0 {offsets = [7, 0], sizes = [1, 512], strides = [1, 1]} : vector<9x512xf32> to vector<1x512xf32>
    %242 = vector.broadcast %241 : vector<1x512xf32> to vector<16x512xf32>
    %243 = arith.mulf %240, %242 : vector<16x512xf32>
    %244 = arith.truncf %243 : vector<16x512xf32> to vector<16x512xbf16>
    %c495_i32_56 = arith.constant 495 : i32
    %245 = tpu.dynamic_rotate %206 by %c495_i32_56 dim 1 : vector<16x512xf32>, i32 -> vector<16x512xf32>
    %246 = vector.extract_strided_slice %0 {offsets = [8, 0], sizes = [1, 512], strides = [1, 1]} : vector<9x512xf32> to vector<1x512xf32>
    %247 = vector.broadcast %246 : vector<1x512xf32> to vector<16x512xf32>
    %248 = arith.mulf %245, %247 : vector<16x512xf32>
    %249 = arith.truncf %248 : vector<16x512xf32> to vector<16x512xbf16>
    %250 = tpu.concatenate %214, %219, %224, %229, %209, %234, %239, %244, %249 in 0 : vector<16x512xbf16>, vector<16x512xbf16>, vector<16x512xbf16>, vector<16x512xbf16>, vector<16x512xbf16>, vector<16x512xbf16>, vector<16x512xbf16>, vector<16x512xbf16>, vector<16x512xbf16> -> vector<144x512xbf16>
    %cst_57 = arith.constant dense<0.000000e+00> : vector<10x512xf32>
    %251 = tpu.matmul %207, %250, %cst_57 {dimension_numbers = #tpu.dot_dimension_numbers<[1], [0], [0], [1], [0, 0, 1, 1], [], []>} : vector<10x144xbf16>, vector<144x512xbf16>, vector<10x512xf32> -> vector<10x512xf32>
    %252 = vector.broadcast %208 : vector<10x1xf32> to vector<10x512xf32>
    %253 = arith.addf %251, %252 : vector<10x512xf32>
    %254 = math.tanh %253 : vector<10x512xf32>
    %255 = vector.extract_strided_slice %254 {offsets = [0, 0], sizes = [10, 256], strides = [1, 1]} : vector<10x512xf32> to vector<10x256xf32>
    %c0_58 = arith.constant 0 : index
    %c0_59 = arith.constant 0 : index
    %c0_60 = arith.constant 0 : index
    %256 = vector.load %arg9[%c0_58, %c0_59, %c0_60] : memref<2x10x256xf32, #tpu.memory_space<vmem>>, vector<1x10x256xf32>
    %257 = vector.shape_cast %256 : vector<1x10x256xf32> to vector<10x256xf32>
    %258 = vector.shape_cast %255 : vector<10x256xf32> to vector<1x10x256xf32>
    tpu.vector_store %arg9[%c0_58, %c0_59, %c0_60], %258 {strides = array<i32>} : memref<2x10x256xf32, #tpu.memory_space<vmem>>, vector<1x10x256xf32>,
    %259 = vector.extract_strided_slice %254 {offsets = [0, 256], sizes = [10, 256], strides = [1, 1]} : vector<10x512xf32> to vector<10x256xf32>
    %c1_61 = arith.constant 1 : index
    %c0_62 = arith.constant 0 : index
    %c0_63 = arith.constant 0 : index
    %260 = vector.load %arg9[%c1_61, %c0_62, %c0_63] : memref<2x10x256xf32, #tpu.memory_space<vmem>>, vector<1x10x256xf32>
    %261 = vector.shape_cast %260 : vector<1x10x256xf32> to vector<10x256xf32>
    %262 = vector.shape_cast %259 : vector<10x256xf32> to vector<1x10x256xf32>
    tpu.vector_store %arg9[%c1_61, %c0_62, %c0_63], %262 {strides = array<i32>} : memref<2x10x256xf32, #tpu.memory_space<vmem>>, vector<1x10x256xf32>,
    return
  }
  func.func @transform_0(%arg0: i32) -> (i32, i32, i32) {
    %c0_i32 = arith.constant 0 : i32
    %c0_i32_0 = arith.constant 0 : i32
    %c0_i32_1 = arith.constant 0 : i32
    %c0_i32_2 = arith.constant 0 : i32
    return %c0_i32, %c0_i32_0, %c0_i32_1 : i32, i32, i32
  }
  func.func @transform_1(%arg0: i32) -> (i32, i32) {
    %c0_i32 = arith.constant 0 : i32
    %c0_i32_0 = arith.constant 0 : i32
    %c0_i32_1 = arith.constant 0 : i32
    return %c0_i32, %c0_i32_0 : i32, i32
  }
  func.func @transform_2(%arg0: i32) -> (i32, i32) {
    %c0_i32 = arith.constant 0 : i32
    %c0_i32_0 = arith.constant 0 : i32
    %c0_i32_1 = arith.constant 0 : i32
    return %c0_i32, %c0_i32_0 : i32, i32
  }
  func.func @transform_3(%arg0: i32) -> (i32, i32) {
    %c0_i32 = arith.constant 0 : i32
    %c0_i32_0 = arith.constant 0 : i32
    %c0_i32_1 = arith.constant 0 : i32
    return %c0_i32, %c0_i32_0 : i32, i32
  }
  func.func @transform_4(%arg0: i32) -> (i32, i32) {
    %c0_i32 = arith.constant 0 : i32
    %c0_i32_0 = arith.constant 0 : i32
    %c0_i32_1 = arith.constant 0 : i32
    return %c0_i32, %c0_i32_0 : i32, i32
  }
  func.func @transform_5(%arg0: i32) -> (i32, i32) {
    %c0_i32 = arith.constant 0 : i32
    %c0_i32_0 = arith.constant 0 : i32
    %c0_i32_1 = arith.constant 0 : i32
    return %c0_i32, %c0_i32_0 : i32, i32
  }
  func.func @transform_6(%arg0: i32) -> (i32, i32) {
    %c0_i32 = arith.constant 0 : i32
    %c0_i32_0 = arith.constant 0 : i32
    %c0_i32_1 = arith.constant 0 : i32
    return %c0_i32, %c0_i32_0 : i32, i32
  }
  func.func @transform_7(%arg0: i32) -> (i32, i32) {
    %c0_i32 = arith.constant 0 : i32
    %c0_i32_0 = arith.constant 0 : i32
    %c0_i32_1 = arith.constant 0 : i32
    return %c0_i32, %c0_i32_0 : i32, i32
  }
  func.func @transform_8(%arg0: i32) -> (i32, i32, i32) {
    %c0_i32 = arith.constant 0 : i32
    %c0_i32_0 = arith.constant 0 : i32
    %c0_i32_1 = arith.constant 0 : i32
    %c0_i32_2 = arith.constant 0 : i32
    return %c0_i32, %c0_i32_0, %c0_i32_1 : i32, i32, i32
  }
}

</mosaic_0001>

<bundles_post_ra>
// kernel: tpu_custom_call.1
= control target key start
LH: loop header
LB: loop body
LE: loop exit
PB: predicated region body
PF: predicated region fallthrough
CT: control target
= control target key end

     0   :  { %13 = vsyncpa [#allocation3], 0  ;;  %s5895_s0 = inlined_call_operand.vmem [shape: f32[2,16,256], index: 0, kind: input, shape index: {}]   ;;  %s5896_s1 = inlined_call_operand.hbm [shape: f32[9,512], index: 1, kind: input, shape index: {}]   ;;  %s5897_s2 = inlined_call_operand.hbm [shape: bf16[16,144], index: 2, kind: input, shape index: {}]   ;;  %s5898_s3 = inlined_call_operand.vmem [shape: bf16[32,288], index: 3, kind: input, shape index: {}]   ;;  %s5899_s4 = inlined_call_operand.hbm [shape: bf16[10,144], index: 4, kind: input, shape index: {}]   ;;  %s5900_s5 = inlined_call_operand.vmem [shape: bf16[96,16], index: 5, kind: input, shape index: {}]   ;;  %s5901_s6 = inlined_call_operand.hbm [shape: f32[16,16], index: 6, kind: input, shape index: {}]   ;;  %s5902_s7 = inlined_call_operand.vmem [shape: f32[32,10], index: 7, kind: input, shape index: {}]   ;;  %s5903_s8 = inlined_call_operand.vmem [shape: f32[2,10,256], index: 8, kind: output, shape index: {}]  }
   0x1   :  { %14 = vsyncpa [#allocation5], 0 }
   0x2   :  { %15 = vsyncpa [#allocation8], 0  ;;  %s3251_s27 = smov [#allocation4]   ;;  %s3157_s9 = scalar_lea.hbm %s5897_s2, 256 }
   0x3   :  { %s35_s28 = sshll.u32 %s3251_s27, 4  ;;  %p3158_p0 = scmp.ne.s32.totalorder %s5897_s2, %s3157_s9  ;;  %s36_s28 = int_to_ptr.vmem [resolvable:$true] %s35_s28 }
   0x4   :  { %p3161_p1 = scmp.lt.u32.totalorder %s3157_s9, %s5897_s2 }
   0x6   :  { %p3163_p2 = pnand %p3161_p1, %p3158_p0 }
   0x8   :  { %3166 = shalt.err (!%p3163_p2)
}
   0x9   :  { %s3167_s14 = scalar_lea.vmem %s36_s28, 256  ;;  %p3172_p4 = scmp.lt.s32.totalorder %s36_s28, %s36_s28 }
   0xa   :  { %p3168_p3 = scmp.ne.s32.totalorder %s36_s28, %s3167_s14  ;;  %p3173_p5 = scmp.lt.s32.totalorder %s3167_s14, %s3167_s14 }
   0xc   :  { %p3174_p6 = por %p3173_p5, %p3172_p4 }
   0xe   :  { %p3175_p7 = pnand %p3174_p6, %p3168_p3 }
  0x10   :  { %3178 = shalt.err (!%p3175_p7)
}
  0x11   :  { %s3252_s15 = smov 128   ;;  %s3253_s16 = smov 8  }
  0x12   :  { %41 = dma.hbm_to_vmem [thread:$0]  %s5897_s2, 256, %s36_s28, [#allocation5], %s3252_s15, %s3252_s15, %s3253_s16  }
  0x13   :  { %s3254_s19 = smov [#allocation2]   ;;  %s3179_s23 = scalar_lea.hbm %s5896_s1, 1024 }
  0x14   :  { %s23_s20 = sshll.u32 %s3254_s19, 4  ;;  %p3180_p8 = scmp.ne.s32.totalorder %s5896_s1, %s3179_s23  ;;  %s24_s20 = int_to_ptr.vmem [resolvable:$true] %s23_s20 }
  0x15   :  { %p3183_p9 = scmp.lt.u32.totalorder %s3179_s23, %s5896_s1 }
  0x17   :  { %p3185_p10 = pnand %p3183_p9, %p3180_p8 }
  0x19   :  { %3188 = shalt.err (!%p3185_p10)
}
  0x1a   :  { %s3189_s29 = scalar_lea.vmem %s24_s20, 1024  ;;  %p3194_p12 = scmp.lt.s32.totalorder %s24_s20, %s24_s20 }
  0x1b   :  { %p3190_p11 = scmp.ne.s32.totalorder %s24_s20, %s3189_s29  ;;  %p3195_p13 = scmp.lt.s32.totalorder %s3189_s29, %s3189_s29 }
  0x1d   :  { %p3196_p0 = por %p3195_p13, %p3194_p12 }
  0x1f   :  { %p3197_p1 = pnand %p3196_p0, %p3190_p11 }
  0x21   :  { %3200 = shalt.err (!%p3197_p1)
}
  0x22   :  { %s3255_s2 = smov 512   ;;  %s3256_s28 = smov 32  }
  0x23   :  { %29 = dma.hbm_to_vmem [thread:$0]  %s5896_s1, 1024, %s24_s20, [#allocation3], %s3255_s2, %s3255_s2, %s3256_s28  }
  0x24   :  { %s3257_s10 = smov [#allocation6]   ;;  %s3258_s12 = smov [#allocation7]  }
  0x25   :  { %s49_s11 = sshll.u32 %s3257_s10, 4  ;;  %s63_s13 = sshll.u32 %s3258_s12, 4  ;;  %s50_s11 = int_to_ptr.vmem [resolvable:$true] %s49_s11  ;;  %s3349_s13 = int_to_ptr.vmem [resolvable:$true] %s63_s13 }
  0x26   :  { %s3201_s18 = scalar_lea.hbm %s5899_s4, 256 }
  0x27   :  { %p3202_p2 = scmp.ne.s32.totalorder %s5899_s4, %s3201_s18  ;;  %p3205_p3 = scmp.lt.u32.totalorder %s3201_s18, %s5899_s4 }
  0x29   :  { %p3207_p4 = pnand %p3205_p3, %p3202_p2 }
  0x2b   :  { %3210 = shalt.err (!%p3207_p4)
}
  0x2c   :  { %s3211_s1 = scalar_lea.vmem %s50_s11, 256  ;;  %p3216_p6 = scmp.lt.s32.totalorder %s50_s11, %s50_s11 }
  0x2d   :  { %p3212_p5 = scmp.ne.s32.totalorder %s50_s11, %s3211_s1  ;;  %p3217_p7 = scmp.lt.s32.totalorder %s3211_s1, %s3211_s1 }
  0x2f   :  { %p3218_p8 = por %p3217_p7, %p3216_p6 }
  0x31   :  { %p3219_p9 = pnand %p3218_p8, %p3212_p5 }
  0x33   :  { %3222 = shalt.err (!%p3219_p9)
}
  0x34   :  { %55 = dma.hbm_to_vmem [thread:$0]  %s5899_s4, 256, %s50_s11, [#allocation5], %s3252_s15, %s3252_s15, %s3253_s16  }
  0x35   :  { %s3223_s27 = scalar_lea.hbm %s5901_s6, 256 }
  0x36   :  { %p3224_p10 = scmp.ne.s32.totalorder %s5901_s6, %s3223_s27  ;;  %p3227_p11 = scmp.lt.u32.totalorder %s3223_s27, %s5901_s6 }
  0x38   :  { %p3229_p12 = pnand %p3227_p11, %p3224_p10 }
  0x3a   :  { %3232 = shalt.err (!%p3229_p12)
}
  0x3b   :  { %s3233_s9 = scalar_lea.vmem %s3349_s13, 256  ;;  %p3238_p0 = scmp.lt.s32.totalorder %s3349_s13, %s3349_s13 }
  0x3c   :  { %p3234_p13 = scmp.ne.s32.totalorder %s3349_s13, %s3233_s9  ;;  %p3239_p1 = scmp.lt.s32.totalorder %s3233_s9, %s3233_s9 }
  0x3e   :  { %p3240_p2 = por %p3239_p1, %p3238_p0 }
  0x40   :  { %p3241_p3 = pnand %p3240_p2, %p3234_p13 }
  0x42   :  { %3244 = shalt.err (!%p3241_p3)
}
  0x43   :  { %69 = dma.hbm_to_vmem [thread:$0]  %s5901_s6, 256, %s3349_s13, [#allocation8], %s3252_s15, %s3252_s15, %s3253_s16  }
  0x44   :  { %3245 = dma.done.wait [#allocation3], 1024  }
  0x45   :  { %3246 = vsyncadd [#allocation3], 4294966272 }
  0x46   :  { %3247 = dma.done.wait [#allocation5], 512  }
  0x47   :  { %3248 = vsyncadd [#allocation5], 4294966784 }
  0x48   :  { %3249 = dma.done.wait [#allocation8], 256  }
  0x49   :  { %3250 = vsyncadd [#allocation8], 4294967040  ;;  %v3389_v0 = vld [vmem:[%s5895_s0 + $0x8] sm:$0xff]  ;;  %v3394_v1 = vld [vmem:[%s5895_s0] sm:$0xff]  ;;  %s3259_s18 = smov 17   ;;  %s3260_s26 = smov 16   ;;  %v140_v8 = vlaneseq }
  0x4a   :  { %128 = vrot.lane.b32.xlu1 %v3389_v0, %s3259_s18  ;;  %124 = vrot.lane.b32.xlu0 %v3394_v1, %s3259_s18  ;;  %v3403_v2 = vld [vmem:[%s5895_s0 + $0x18] sm:$0xff]  ;;  %v3408_v3 = vld [vmem:[%s5895_s0 + $0x10] sm:$0xff]  ;;  %s3262_s27 = smov 1   ;;  %s3263_s29 = smov 127   ;;  %v3547_v12 = vld [vmem:[#allocation2 + $0x8] sm:$0xff]  ;;  %vm569_vm0 = vcmask 130048  }
  0x4b   :  { %v3413_v4 = vld [vmem:[%s5895_s0 + $0x30] sm:$0xff]  ;;  %v3418_v5 = vld [vmem:[%s5895_s0 + $0x20] sm:$0xff]  ;;  %v3427_v6 = vld [vmem:[%s5895_s0 + $0x38] sm:$0xff]  ;;  %s3264_s2 = smov 113   ;;  %s3265_s28 = smov 112   ;;  %v3538_v9 = vshrl.u32 %v140_v8, 7 }
  0x4c   :  { %v3432_v7 = vld [vmem:[%s5895_s0 + $0x28] sm:$0xff]  ;;  %s3261_s0 = smov 15   ;;  %v3540_v10 = vand.u32 127, %v140_v8  ;;  %s3266_s30 = smov 111   ;;  %v3563_v21 = vld [vmem:[#allocation2 + $0x10] sm:$0xff]  ;;  %v3571_v24 = vld [vmem:[#allocation2] sm:$0xff] }
  0x4d   :  { %v153_v11 = vsub.s32 0, %v3538_v9  ;;  %v3093_v13 = vld [vmem:[#allocation4 + $0x4] ss:$8 sps:$4 sm:$0xff]   ;;  %v3573_v25 = vld [vmem:[#allocation2 + $0x18] sm:$0xff]  ;;  %v5904_v26 = vmov 0   ;;  %v206_v40 = vsub.s32 1, %v3538_v9 }
  0x4e   :  { %130 = vrot.lane.b32.xlu1 %v3403_v2, %s3259_s18  ;;  %126 = vrot.lane.b32.xlu0 %v3408_v3, %s3259_s18  ;;  %vm142_vm1 = vcmp.lt.s32.totalorder %v3540_v10, 17  ;;  %v3597_v35 = vld [vmem:[%s5902_s7] sm:$0xff]  ;;  %v3605_v41 = vld [vmem:[%s5902_s7 + $0x8] sm:$0xff]  ;;  %vm195_vm2 = vcmp.lt.s32.totalorder %v3540_v10, 16  ;;  %vm248_vm3 = vcmp.lt.s32.totalorder %v3540_v10, 15  ;;  %vm301_vm4 = vcmp.lt.s32.totalorder %v3540_v10, 1 }
  0x4f   :  { %2942 = vmatprep.mubr.msk.bf16.mxu0 %vm569_vm0, %v3093_v13  ;;  %2943 = vmatprep.mubr.msk.bf16.mxu1 %vm569_vm0, %v3093_v13  ;;  %v3557_v16 = vrot.slane %v3547_v12, %v153_v11  ;;  %v3578_v30 = vrot.slane %v3563_v21, %v153_v11  ;;  %v3589_v33 = vrot.slane %v3571_v24, %v153_v11  ;;  %vm354_vm5 = vcmp.lt.s32.totalorder %v3540_v10, 127 }
  0x50   :  { %3072 = vset.pattern.permute.xlu0 %v5904_v26  ;;  %3073 = vset.pattern.permute.xlu1 %v5904_v26  ;;  %v3592_v34 = vrot.slane %v3573_v25, %v153_v11  ;;  %v3623_v55 = vrot.slane %v3547_v12, %v206_v40  ;;  %v3632_v63 = vrot.slane %v3563_v21, %v206_v40  ;;  %vm407_vm6 = vcmp.lt.s32.totalorder %v3540_v10, 113 }
  0x51   :  { %6032 = vst [vmem:[#allocation12_spill] sm:$0xff] %v3557_v16  ;;  %6033 = vst [vmem:[#allocation13_spill] sm:$0xff] %v3578_v30  ;;  %vm460_vm7 = vcmp.lt.s32.totalorder %v3540_v10, 112  ;;  %vm513_vm8 = vcmp.lt.s32.totalorder %v3540_v10, 111  ;;  %vm1550_vm9 = vcmask 261120  }
  0x52   :  { %134 = vrot.lane.b32.xlu1 %v3413_v4, %s3259_s18  ;;  %132 = vrot.lane.b32.xlu0 %v3418_v5, %s3259_s18  ;;  %6034 = vst [vmem:[#allocation14_spill] sm:$0xff] %v3589_v33  ;;  %6035 = vst [vmem:[#allocation15_spill] sm:$0xff] %v3592_v34 }
  0x56   :  { %138 = vrot.lane.b32.xlu1 %v3427_v6, %s3259_s18  ;;  %136 = vrot.lane.b32.xlu0 %v3432_v7, %s3259_s18 }
  0x5a   :  { %181 = vrot.lane.b32.xlu1 %v3408_v3, %s3260_s26  ;;  %179 = vrot.lane.b32.xlu0 %v3394_v1, %s3260_s26 }
  0x5e   :  { %185 = vrot.lane.b32.xlu1 %v3403_v2, %s3260_s26  ;;  %183 = vrot.lane.b32.xlu0 %v3389_v0, %s3260_s26 }
  0x62   :  { %189 = vrot.lane.b32.xlu1 %v3413_v4, %s3260_s26  ;;  %187 = vrot.lane.b32.xlu0 %v3418_v5, %s3260_s26 }
  0x66   :  { %193 = vrot.lane.b32.xlu1 %v3427_v6, %s3260_s26  ;;  %191 = vrot.lane.b32.xlu0 %v3432_v7, %s3260_s26 }
  0x6a   :  { %234 = vrot.lane.b32.xlu1 %v3408_v3, %s3261_s0  ;;  %232 = vrot.lane.b32.xlu0 %v3394_v1, %s3261_s0 }
  0x6e   :  { %238 = vrot.lane.b32.xlu1 %v3403_v2, %s3261_s0  ;;  %236 = vrot.lane.b32.xlu0 %v3389_v0, %s3261_s0 }
  0x72   :  { %242 = vrot.lane.b32.xlu1 %v3413_v4, %s3261_s0  ;;  %240 = vrot.lane.b32.xlu0 %v3418_v5, %s3261_s0 }
  0x76   :  { %246 = vrot.lane.b32.xlu1 %v3427_v6, %s3261_s0  ;;  %244 = vrot.lane.b32.xlu0 %v3432_v7, %s3261_s0 }
  0x7a   :  { %287 = vrot.lane.b32.xlu1 %v3408_v3, %s3262_s27  ;;  %285 = vrot.lane.b32.xlu0 %v3394_v1, %s3262_s27 }
  0x7e   :  { %291 = vrot.lane.b32.xlu1 %v3403_v2, %s3262_s27  ;;  %289 = vrot.lane.b32.xlu0 %v3389_v0, %s3262_s27 }
  0x82   :  { %295 = vrot.lane.b32.xlu1 %v3413_v4, %s3262_s27  ;;  %293 = vrot.lane.b32.xlu0 %v3418_v5, %s3262_s27 }
  0x86   :  { %299 = vrot.lane.b32.xlu1 %v3427_v6, %s3262_s27  ;;  %297 = vrot.lane.b32.xlu0 %v3432_v7, %s3262_s27 }
  0x8a   :  { %340 = vrot.lane.b32.xlu1 %v3408_v3, %s3263_s29  ;;  %338 = vrot.lane.b32.xlu0 %v3394_v1, %s3263_s29 }
  0x8e   :  { %344 = vrot.lane.b32.xlu1 %v3403_v2, %s3263_s29  ;;  %342 = vrot.lane.b32.xlu0 %v3389_v0, %s3263_s29 }
  0x92   :  { %348 = vrot.lane.b32.xlu1 %v3413_v4, %s3263_s29  ;;  %346 = vrot.lane.b32.xlu0 %v3418_v5, %s3263_s29 }
  0x96   :  { %352 = vrot.lane.b32.xlu1 %v3427_v6, %s3263_s29  ;;  %350 = vrot.lane.b32.xlu0 %v3432_v7, %s3263_s29 }
  0x9a   :  { %393 = vrot.lane.b32.xlu1 %v3408_v3, %s3264_s2  ;;  %391 = vrot.lane.b32.xlu0 %v3394_v1, %s3264_s2 }
  0x9e   :  { %397 = vrot.lane.b32.xlu1 %v3403_v2, %s3264_s2  ;;  %395 = vrot.lane.b32.xlu0 %v3389_v0, %s3264_s2 }
  0xa2   :  { %401 = vrot.lane.b32.xlu1 %v3413_v4, %s3264_s2  ;;  %399 = vrot.lane.b32.xlu0 %v3418_v5, %s3264_s2 }
  0xa6   :  { %405 = vrot.lane.b32.xlu1 %v3427_v6, %s3264_s2  ;;  %403 = vrot.lane.b32.xlu0 %v3432_v7, %s3264_s2 }
  0xaa   :  { %446 = vrot.lane.b32.xlu1 %v3408_v3, %s3265_s28  ;;  %444 = vrot.lane.b32.xlu0 %v3394_v1, %s3265_s28 }
  0xae   :  { %450 = vrot.lane.b32.xlu1 %v3403_v2, %s3265_s28  ;;  %448 = vrot.lane.b32.xlu0 %v3389_v0, %s3265_s28 }
  0xb2   :  { %454 = vrot.lane.b32.xlu1 %v3413_v4, %s3265_s28  ;;  %452 = vrot.lane.b32.xlu0 %v3418_v5, %s3265_s28 }
  0xb6   :  { %458 = vrot.lane.b32.xlu1 %v3427_v6, %s3265_s28  ;;  %456 = vrot.lane.b32.xlu0 %v3432_v7, %s3265_s28 }
  0xba   :  { %499 = vrot.lane.b32.xlu1 %v3408_v3, %s3266_s30  ;;  %497 = vrot.lane.b32.xlu0 %v3394_v1, %s3266_s30 }
  0xbc   :  { %v129_v14 = vpop.permute.xlu1 %128  ;;  %v125_v15 = vpop.permute.xlu0 %124 }
  0xbd   :  { %v147_v17 = vsel %vm142_vm1, %v125_v15, %v129_v14 }
  0xbe   :  { %503 = vrot.lane.b32.xlu1 %v3403_v2, %s3266_s30  ;;  %501 = vrot.lane.b32.xlu0 %v3389_v0, %s3266_s30  ;;  %v168_v22 = vmul.f32 %v3557_v16, %v147_v17  ;;  %v3642_v17 = vrot.slane %v3573_v25, %v206_v40 }
  0xc0   :  { %v131_v18 = vpop.permute.xlu1 %130  ;;  %v127_v19 = vpop.permute.xlu0 %126 }
  0xc1   :  { %v148_v20 = vsel %vm142_vm1, %v127_v19, %v131_v18 }
  0xc2   :  { %507 = vrot.lane.b32.xlu1 %v3413_v4, %s3266_s30  ;;  %505 = vrot.lane.b32.xlu0 %v3418_v5, %s3266_s30  ;;  %v172_v23 = vmul.f32 %v3557_v16, %v148_v20 }
  0xc4   :  { %v135_v27 = vpop.permute.xlu1 %134  ;;  %v133_v28 = vpop.permute.xlu0 %132  ;;  %v176_v29 = vpack.c.bf16 %v172_v23, %v168_v22  ;;  %v259_v23 = vsub.s32 2, %v3538_v9 }
  0xc5   :  { %v146_v31 = vsel %vm142_vm1, %v131_v18, %v135_v27  ;;  %v145_v32 = vsel %vm142_vm1, %v129_v14, %v133_v28 }
  0xc6   :  { %511 = vrot.lane.b32.xlu1 %v3427_v6, %s3266_s30  ;;  %509 = vrot.lane.b32.xlu0 %v3432_v7, %s3266_s30  ;;  %v169_v38 = vmul.f32 %v3578_v30, %v145_v32  ;;  %v173_v39 = vmul.f32 %v3578_v30, %v146_v31 }
  0xc7   :  { %573 = vmatprep.subr.bf16.mxu0 %v176_v29 }
  0xc8   :  { %v139_v36 = vpop.permute.xlu1 %138  ;;  %v137_v37 = vpop.permute.xlu0 %136  ;;  %v177_v54 = vpack.c.bf16 %v173_v39, %v169_v38 }
  0xc9   :  { %v150_v42 = vsel %vm142_vm1, %v139_v36, %v127_v19  ;;  %v149_v43 = vsel %vm142_vm1, %v137_v37, %v125_v15  ;;  %v143_v44 = vsel %vm142_vm1, %v133_v28, %v137_v37  ;;  %v144_v45 = vsel %vm142_vm1, %v135_v27, %v139_v36 }
  0xca   :  { %v167_v46 = vmul.f32 %v3589_v33, %v149_v43  ;;  %v171_v47 = vmul.f32 %v3589_v33, %v150_v42  ;;  %v170_v48 = vmul.f32 %v3592_v34, %v143_v44  ;;  %v174_v49 = vmul.f32 %v3592_v34, %v144_v45  ;;  %552 = vperm.xlu0 %3072, %v3597_v35  }
  0xcb   :  { %557 = vperm.xlu1 %3073, %v3605_v41   ;;  %v3639_v15 = vrot.slane %v3571_v24, %v206_v40  ;;  %v3661_v45 = vrot.slane %v3547_v12, %v259_v23 }
  0xcc   :  { %v182_v50 = vpop.permute.xlu1 %181  ;;  %v180_v51 = vpop.permute.xlu0 %179  ;;  %v175_v52 = vpack.c.bf16 %v171_v47, %v167_v46  ;;  %v178_v53 = vpack.c.bf16 %v174_v49, %v170_v48 }
  0xce   :  { %574 = vmatpush1.bf16.msra.mxu0 %v175_v52  ;;  %616 = vmatprep.subr.bf16.mxu1 %v178_v53  ;;  %v3670_v53 = vrot.slane %v3563_v21, %v259_v23 }
  0xcf   :  { %617 = vmatpush1.bf16.msra.mxu1 %v177_v54 }
  0xd0   :  { %v186_v56 = vpop.permute.xlu1 %185  ;;  %v184_v57 = vpop.permute.xlu0 %183 }
  0xd1   :  { %v201_v58 = vsel %vm195_vm2, %v182_v50, %v186_v56  ;;  %v200_v59 = vsel %vm195_vm2, %v180_v51, %v184_v57 }
  0xd2   :  { %v225_v60 = vmul.f32 %v3623_v55, %v201_v58  ;;  %v221_v61 = vmul.f32 %v3623_v55, %v200_v59  ;;  %v3677_v59 = vrot.slane %v3571_v24, %v259_v23 }
  0xd4   :  { %v190_v62 = vpop.permute.xlu1 %189  ;;  %v188_v8 = vpop.permute.xlu0 %187  ;;  %v229_v11 = vpack.c.bf16 %v225_v60, %v221_v61  ;;  %v3680_v60 = vrot.slane %v3573_v25, %v259_v23 }
  0xd5   :  { %v199_v13 = vsel %vm195_vm2, %v186_v56, %v190_v62  ;;  %v198_v14 = vsel %vm195_vm2, %v184_v57, %v188_v8 }
  0xd6   :  { %575 = vmatprep.subr.bf16.mxu0 %v229_v11  ;;  %v226_v18 = vmul.f32 %v3632_v63, %v199_v13  ;;  %v222_v19 = vmul.f32 %v3632_v63, %v198_v14  ;;  %v312_v13 = vsub.s32 3, %v3538_v9 }
  0xd8   :  { %v194_v20 = vpop.permute.xlu1 %193  ;;  %v192_v22 = vpop.permute.xlu0 %191  ;;  %v230_v44 = vpack.c.bf16 %v226_v18, %v222_v19 }
  0xd9   :  { %v197_v27 = vsel %vm195_vm2, %v190_v62, %v194_v20  ;;  %v203_v28 = vsel %vm195_vm2, %v194_v20, %v182_v50  ;;  %v196_v29 = vsel %vm195_vm2, %v188_v8, %v192_v22  ;;  %v202_v31 = vsel %vm195_vm2, %v192_v22, %v180_v51 }
  0xda   :  { %v224_v32 = vmul.f32 %v3639_v15, %v203_v28  ;;  %v227_v36 = vmul.f32 %v3642_v17, %v197_v27  ;;  %v220_v37 = vmul.f32 %v3639_v15, %v202_v31  ;;  %v223_v38 = vmul.f32 %v3642_v17, %v196_v29 }
  0xdc   :  { %v235_v39 = vpop.permute.xlu1 %234  ;;  %v233_v40 = vpop.permute.xlu0 %232  ;;  %v228_v42 = vpack.c.bf16 %v224_v32, %v220_v37  ;;  %v231_v43 = vpack.c.bf16 %v227_v36, %v223_v38  ;;  %v3699_v38 = vrot.slane %v3547_v12, %v312_v13 }
  0xde   :  { %576 = vmatpush1.bf16.msra.mxu0 %v228_v42  ;;  %618 = vmatprep.subr.bf16.mxu1 %v231_v43 }
  0xdf   :  { %619 = vmatpush1.bf16.msra.mxu1 %v230_v44 }
  0xe0   :  { %v239_v46 = vpop.permute.xlu1 %238  ;;  %v237_v47 = vpop.permute.xlu0 %236 }
  0xe1   :  { %v254_v48 = vsel %vm248_vm3, %v235_v39, %v239_v46  ;;  %v253_v49 = vsel %vm248_vm3, %v233_v40, %v237_v47 }
  0xe2   :  { %v278_v50 = vmul.f32 %v3661_v45, %v254_v48  ;;  %v274_v51 = vmul.f32 %v3661_v45, %v253_v49  ;;  %v3708_v48 = vrot.slane %v3563_v21, %v312_v13 }
  0xe4   :  { %v243_v52 = vpop.permute.xlu1 %242  ;;  %v241_v54 = vpop.permute.xlu0 %240  ;;  %v282_v56 = vpack.c.bf16 %v278_v50, %v274_v51 }
  0xe5   :  { %v252_v57 = vsel %vm248_vm3, %v239_v46, %v243_v52  ;;  %v251_v58 = vsel %vm248_vm3, %v237_v47, %v241_v54 }
  0xe6   :  { %577 = vmatprep.subr.bf16.mxu0 %v282_v56  ;;  %v279_v61 = vmul.f32 %v3670_v53, %v252_v57  ;;  %v275_v62 = vmul.f32 %v3670_v53, %v251_v58  ;;  %v3718_v56 = vrot.slane %v3573_v25, %v312_v13 }
  0xe8   :  { %v247_v8 = vpop.permute.xlu1 %246  ;;  %v245_v11 = vpop.permute.xlu0 %244  ;;  %v283_v37 = vpack.c.bf16 %v279_v61, %v275_v62  ;;  %6037 = vst [vmem:[#allocation17_spill] sm:$0xff] %v3718_v56 }
  0xe9   :  { %v250_v14 = vsel %vm248_vm3, %v243_v52, %v247_v8  ;;  %v256_v18 = vsel %vm248_vm3, %v247_v8, %v235_v39  ;;  %v249_v19 = vsel %vm248_vm3, %v241_v54, %v245_v11  ;;  %v255_v20 = vsel %vm248_vm3, %v245_v11, %v233_v40 }
  0xea   :  { %v277_v22 = vmul.f32 %v3677_v59, %v256_v18  ;;  %v280_v23 = vmul.f32 %v3680_v60, %v250_v14  ;;  %v273_v27 = vmul.f32 %v3677_v59, %v255_v20  ;;  %v276_v28 = vmul.f32 %v3680_v60, %v249_v19 }
  0xeb   :  { %v3715_v54 = vrot.slane %v3571_v24, %v312_v13 }
  0xec   :  { %v288_v29 = vpop.permute.xlu1 %287  ;;  %v286_v31 = vpop.permute.xlu0 %285  ;;  %v281_v32 = vpack.c.bf16 %v277_v22, %v273_v27  ;;  %v284_v36 = vpack.c.bf16 %v280_v23, %v276_v28  ;;  %v121_v23 = vpack.c.bf16 %v3403_v2, %v3389_v0  ;;  %v122_v0 = vpack.c.bf16 %v3413_v4, %v3418_v5 }
  0xed   :  { %6036 = vst [vmem:[#allocation16_spill] sm:$0xff] %v3715_v54 }
  0xee   :  { %578 = vmatpush1.bf16.msra.mxu0 %v281_v32  ;;  %620 = vmatprep.subr.bf16.mxu1 %v284_v36  ;;  %v365_v36 = vsub.s32 5, %v3538_v9 }
  0xef   :  { %621 = vmatpush1.bf16.msra.mxu1 %v283_v37 }
  0xf0   :  { %v292_v39 = vpop.permute.xlu1 %291  ;;  %v290_v40 = vpop.permute.xlu0 %289 }
  0xf1   :  { %v307_v42 = vsel %vm301_vm4, %v288_v29, %v292_v39  ;;  %v306_v43 = vsel %vm301_vm4, %v286_v31, %v290_v40 }
  0xf2   :  { %v331_v44 = vmul.f32 %v3699_v38, %v307_v42  ;;  %v327_v46 = vmul.f32 %v3699_v38, %v306_v43  ;;  %v3752_v43 = vrot.slane %v3547_v12, %v365_v36 }
  0xf4   :  { %v296_v47 = vpop.permute.xlu1 %295  ;;  %v294_v49 = vpop.permute.xlu0 %293  ;;  %v335_v50 = vpack.c.bf16 %v331_v44, %v327_v46  ;;  %6039 = vst [vmem:[#allocation19_spill] sm:$0xff] %v3752_v43 }
  0xf5   :  { %v305_v51 = vsel %vm301_vm4, %v292_v39, %v296_v47  ;;  %v304_v52 = vsel %vm301_vm4, %v290_v40, %v294_v49  ;;  %v120_v39 = vpack.c.bf16 %v3408_v3, %v3394_v1  ;;  %v3745_v40 = vrot.slane %v3571_v24, %v365_v36 }
  0xf6   :  { %579 = vmatprep.subr.bf16.mxu0 %v335_v50  ;;  %v332_v57 = vmul.f32 %v3708_v48, %v305_v51  ;;  %v328_v58 = vmul.f32 %v3708_v48, %v304_v52  ;;  %v3763_v50 = vrot.slane %v3563_v21, %v365_v36  ;;  %v3766_v51 = vrot.slane %v3573_v25, %v365_v36 }
  0xf7   :  { %6038 = vst [vmem:[#allocation18_spill] sm:$0xff] %v3745_v40 }
  0xf8   :  { %v300_v61 = vpop.permute.xlu1 %299  ;;  %v298_v62 = vpop.permute.xlu0 %297  ;;  %v336_v37 = vpack.c.bf16 %v332_v57, %v328_v58  ;;  %6040 = vst [vmem:[#allocation20_spill] sm:$0xff] %v3763_v50  ;;  %6041 = vst [vmem:[#allocation21_spill] sm:$0xff] %v3766_v51 }
  0xf9   :  { %v303_v8 = vsel %vm301_vm4, %v296_v47, %v300_v61  ;;  %v309_v11 = vsel %vm301_vm4, %v300_v61, %v288_v29  ;;  %v302_v14 = vsel %vm301_vm4, %v294_v49, %v298_v62  ;;  %v308_v18 = vsel %vm301_vm4, %v298_v62, %v286_v31 }
  0xfa   :  { %v330_v13 = vmul.f32 %v3715_v54, %v309_v11  ;;  %v333_v19 = vmul.f32 %v3718_v56, %v303_v8  ;;  %v326_v20 = vmul.f32 %v3715_v54, %v308_v18  ;;  %v329_v22 = vmul.f32 %v3718_v56, %v302_v14 }
  0xfb   :  { %v123_v31 = vpack.c.bf16 %v3427_v6, %v3432_v7 }
  0xfc   :  { %v341_v27 = vpop.permute.xlu1 %340  ;;  %v339_v28 = vpop.permute.xlu0 %338  ;;  %v334_v29 = vpack.c.bf16 %v330_v13, %v326_v20  ;;  %v337_v32 = vpack.c.bf16 %v333_v19, %v329_v22 }
  0xfe   :  { %580 = vmatpush1.bf16.msra.mxu0 %v334_v29  ;;  %622 = vmatprep.subr.bf16.mxu1 %v337_v32  ;;  %v418_v32 = vsub.s32 6, %v3538_v9 }
  0xff   :  { %623 = vmatpush1.bf16.msra.mxu1 %v336_v37  ;;  %581 = vmatprep.subr.bf16.mxu0 %v121_v23 }
 0x100   :  { %v345_v2 = vpop.permute.xlu1 %344  ;;  %v343_v42 = vpop.permute.xlu0 %342  ;;  %624 = vmatprep.subr.bf16.mxu1 %v123_v31  ;;  %v3783_v36 = vrot.slane %v3571_v24, %v418_v32 }
 0x101   :  { %v360_v6 = vsel %vm354_vm5, %v341_v27, %v345_v2  ;;  %v359_v7 = vsel %vm354_vm5, %v339_v28, %v343_v42 }
 0x102   :  { %582 = vmatpush1.bf16.msra.mxu0 %v120_v39  ;;  %v383_v1 = vmul.f32 %v3745_v40, %v360_v6  ;;  %v379_v3 = vmul.f32 %v3745_v40, %v359_v7  ;;  %6042 = vst [vmem:[#allocation22_spill] sm:$0xff] %v3783_v36 }
 0x103   :  { %625 = vmatpush1.bf16.msra.mxu1 %v122_v0  ;;  %v3790_v0 = vrot.slane %v3547_v12, %v418_v32 }
 0x104   :  { %v349_v4 = vpop.permute.xlu1 %348  ;;  %v347_v5 = vpop.permute.xlu0 %346  ;;  %v387_v61 = vpack.c.bf16 %v383_v1, %v379_v3 }
 0x105   :  { %v358_v44 = vsel %vm354_vm5, %v345_v2, %v349_v4  ;;  %v357_v46 = vsel %vm354_vm5, %v343_v42, %v347_v5  ;;  %6043 = vst [vmem:[#allocation23_spill] sm:$0xff] %v3790_v0 }
 0x106   :  { %v384_v47 = vmul.f32 %v3752_v43, %v358_v44  ;;  %v380_v49 = vmul.f32 %v3752_v43, %v357_v46  ;;  %v3801_v44 = vrot.slane %v3563_v21, %v418_v32  ;;  %v3804_v46 = vrot.slane %v3573_v25, %v418_v32 }
 0x108   :  { %v353_v52 = vpop.permute.xlu1 %352  ;;  %v351_v57 = vpop.permute.xlu0 %350  ;;  %v388_v58 = vpack.c.bf16 %v384_v47, %v380_v49  ;;  %6044 = vst [vmem:[#allocation24_spill] sm:$0xff] %v3801_v44  ;;  %6045 = vst [vmem:[#allocation25_spill] sm:$0xff] %v3804_v46 }
 0x109   :  { %v356_v62 = vsel %vm354_vm5, %v349_v4, %v353_v52  ;;  %v362_v8 = vsel %vm354_vm5, %v353_v52, %v341_v27  ;;  %v355_v11 = vsel %vm354_vm5, %v347_v5, %v351_v57  ;;  %v361_v14 = vsel %vm354_vm5, %v351_v57, %v339_v28 }
 0x10a   :  { %v385_v18 = vmul.f32 %v3763_v50, %v356_v62  ;;  %v386_v13 = vmul.f32 %v3766_v51, %v362_v8  ;;  %v381_v19 = vmul.f32 %v3763_v50, %v355_v11  ;;  %v382_v20 = vmul.f32 %v3766_v51, %v361_v14  ;;  %583 = vmatprep.subr.bf16.mxu0 %v388_v58 }
 0x10b   :  { %584 = vmatpush1.bf16.msra.mxu0 %v387_v61 }
 0x10c   :  { %v394_v22 = vpop.permute.xlu1 %393  ;;  %v392_v23 = vpop.permute.xlu0 %391  ;;  %v390_v29 = vpack.c.bf16 %v386_v13, %v382_v20  ;;  %v389_v27 = vpack.c.bf16 %v385_v18, %v381_v19 }
 0x10e   :  { %626 = vmatprep.subr.bf16.mxu1 %v390_v29 }
 0x10f   :  { %627 = vmatpush1.bf16.msra.mxu1 %v389_v27  ;;  %v471_v27 = vsub.s32 7, %v3538_v9 }
 0x110   :  { %v398_v28 = vpop.permute.xlu1 %397  ;;  %v396_v31 = vpop.permute.xlu0 %395 }
 0x111   :  { %v413_v37 = vsel %vm407_vm6, %v394_v22, %v398_v28  ;;  %v412_v39 = vsel %vm407_vm6, %v392_v23, %v396_v31  ;;  %v3821_v32 = vrot.slane %v3571_v24, %v471_v27 }
 0x112   :  { %v436_v2 = vmul.f32 %v3783_v36, %v413_v37  ;;  %v432_v42 = vmul.f32 %v3783_v36, %v412_v39  ;;  %v3828_v39 = vrot.slane %v3547_v12, %v471_v27  ;;  %v3842_v12 = vrot.slane %v3573_v25, %v471_v27 }
 0x113   :  { %6046 = vst [vmem:[#allocation26_spill] sm:$0xff] %v3821_v32 }
 0x114   :  { %v402_v6 = vpop.permute.xlu1 %401  ;;  %v400_v7 = vpop.permute.xlu0 %399  ;;  %v440_v57 = vpack.c.bf16 %v436_v2, %v432_v42  ;;  %6047 = vst [vmem:[#allocation27_spill] sm:$0xff] %v3828_v39  ;;  %6049 = vst [vmem:[#allocation29_spill] sm:$0xff] %v3842_v12 }
 0x115   :  { %v411_v1 = vsel %vm407_vm6, %v398_v28, %v402_v6  ;;  %v410_v3 = vsel %vm407_vm6, %v396_v31, %v400_v7 }
 0x116   :  { %v437_v4 = vmul.f32 %v3790_v0, %v411_v1  ;;  %v433_v5 = vmul.f32 %v3790_v0, %v410_v3 }
 0x118   :  { %v406_v47 = vpop.permute.xlu1 %405  ;;  %v404_v49 = vpop.permute.xlu0 %403  ;;  %v441_v52 = vpack.c.bf16 %v437_v4, %v433_v5  ;;  %v3839_v4 = vrot.slane %v3563_v21, %v471_v27 }
 0x119   :  { %v409_v58 = vsel %vm407_vm6, %v402_v6, %v406_v47  ;;  %v415_v61 = vsel %vm407_vm6, %v406_v47, %v394_v22  ;;  %v408_v62 = vsel %vm407_vm6, %v400_v7, %v404_v49  ;;  %v414_v8 = vsel %vm407_vm6, %v404_v49, %v392_v23 }
 0x11a   :  { %v438_v11 = vmul.f32 %v3801_v44, %v409_v58  ;;  %v439_v14 = vmul.f32 %v3804_v46, %v415_v61  ;;  %v434_v18 = vmul.f32 %v3801_v44, %v408_v62  ;;  %v435_v13 = vmul.f32 %v3804_v46, %v414_v8  ;;  %585 = vmatprep.subr.bf16.mxu0 %v441_v52 }
 0x11b   :  { %586 = vmatpush1.bf16.msra.mxu0 %v440_v57  ;;  %6048 = vst [vmem:[#allocation28_spill] sm:$0xff] %v3839_v4 }
 0x11c   :  { %v447_v19 = vpop.permute.xlu1 %446  ;;  %v445_v20 = vpop.permute.xlu0 %444  ;;  %v443_v29 = vpack.c.bf16 %v439_v14, %v435_v13  ;;  %v442_v22 = vpack.c.bf16 %v438_v11, %v434_v18 }
 0x11e   :  { %628 = vmatprep.subr.bf16.mxu1 %v443_v29 }
 0x11f   :  { %629 = vmatpush1.bf16.msra.mxu1 %v442_v22  ;;  %v2936_v22 = vld [vmem:[#allocation2 + $0x20] ss:$0 sm:$0xff] }
 0x120   :  { %v451_v23 = vpop.permute.xlu1 %450  ;;  %v449_v28 = vpop.permute.xlu0 %448 }
 0x121   :  { %v466_v31 = vsel %vm460_vm7, %v447_v19, %v451_v23  ;;  %v465_v37 = vsel %vm460_vm7, %v445_v20, %v449_v28 }
 0x122   :  { %v489_v9 = vmul.f32 %v3821_v32, %v466_v31  ;;  %v485_v2 = vmul.f32 %v3821_v32, %v465_v37 }
 0x124   :  { %v455_v42 = vpop.permute.xlu1 %454  ;;  %v453_v6 = vpop.permute.xlu0 %452  ;;  %v493_v52 = vpack.c.bf16 %v489_v9, %v485_v2 }
 0x125   :  { %v464_v24 = vsel %vm460_vm7, %v451_v23, %v455_v42  ;;  %v463_v7 = vsel %vm460_vm7, %v449_v28, %v453_v6  ;;  %v2937_v28 = vld [vmem:[#allocation2 + $0x28] ss:$0 sm:$0xff] }
 0x126   :  { %v490_v1 = vmul.f32 %v3828_v39, %v464_v24  ;;  %v486_v3 = vmul.f32 %v3828_v39, %v463_v7 }
 0x128   :  { %v459_v5 = vpop.permute.xlu1 %458  ;;  %v457_v47 = vpop.permute.xlu0 %456  ;;  %v494_v49 = vpack.c.bf16 %v490_v1, %v486_v3  ;;  %v2938_v1 = vld [vmem:[#allocation2 + $0x30] ss:$0 sm:$0xff]  ;;  %v2939_v3 = vld [vmem:[#allocation2 + $0x38] ss:$0 sm:$0xff] }
 0x129   :  { %v462_v57 = vsel %vm460_vm7, %v455_v42, %v459_v5  ;;  %v468_v58 = vsel %vm460_vm7, %v459_v5, %v447_v19  ;;  %v461_v61 = vsel %vm460_vm7, %v453_v6, %v457_v47  ;;  %v467_v21 = vsel %vm460_vm7, %v457_v47, %v445_v20 }
 0x12a   :  { %v491_v62 = vmul.f32 %v3839_v4, %v462_v57  ;;  %v492_v25 = vmul.f32 %v3842_v12, %v468_v58  ;;  %v487_v8 = vmul.f32 %v3839_v4, %v461_v61  ;;  %v488_v11 = vmul.f32 %v3842_v12, %v467_v21  ;;  %587 = vmatprep.subr.bf16.mxu0 %v494_v49 }
 0x12b   :  { %588 = vmatpush1.bf16.msra.mxu0 %v493_v52 }
 0x12c   :  { %v500_v14 = vpop.permute.xlu1 %499  ;;  %v498_v18 = vpop.permute.xlu0 %497  ;;  %v496_v13 = vpack.c.bf16 %v492_v25, %v488_v11  ;;  %v495_v19 = vpack.c.bf16 %v491_v62, %v487_v8 }
 0x12e   :  { %630 = vmatprep.subr.bf16.mxu1 %v496_v13  ;;  %v3091_v13 = vld [vmem:[#allocation4] ss:$8 sps:$4 sm:$0xff]  }
 0x12f   :  { %631 = vmatpush1.bf16.msra.mxu1 %v495_v19 }
 0x130   :  { %v504_v29 = vpop.permute.xlu1 %503  ;;  %v502_v20 = vpop.permute.xlu0 %501 }
 0x131   :  { %v519_v27 = vsel %vm513_vm8, %v500_v14, %v504_v29  ;;  %v518_v23 = vsel %vm513_vm8, %v498_v18, %v502_v20 }
 0x132   :  { %v542_v31 = vmul.f32 %v2936_v22, %v519_v27  ;;  %v538_v37 = vmul.f32 %v2936_v22, %v518_v23 }
 0x134   :  { %v508_v9 = vpop.permute.xlu1 %507  ;;  %v506_v2 = vpop.permute.xlu0 %505  ;;  %v546_v52 = vpack.c.bf16 %v542_v31, %v538_v37 }
 0x135   :  { %v517_v42 = vsel %vm513_vm8, %v504_v29, %v508_v9  ;;  %v516_v6 = vsel %vm513_vm8, %v502_v20, %v506_v2  ;;  %v3886_v20 = vld [vmem:[%s5902_s7 + $0x18] sm:$0xff] }
 0x136   :  { %v543_v24 = vmul.f32 %v2937_v28, %v517_v42  ;;  %v539_v7 = vmul.f32 %v2937_v28, %v516_v6 }
 0x138   :  { %v512_v5 = vpop.permute.xlu1 %511  ;;  %v510_v47 = vpop.permute.xlu0 %509  ;;  %v547_v49 = vpack.c.bf16 %v543_v24, %v539_v7 }
 0x139   :  { %v515_v57 = vsel %vm513_vm8, %v508_v9, %v512_v5  ;;  %v521_v58 = vsel %vm513_vm8, %v512_v5, %v500_v14  ;;  %v514_v61 = vsel %vm513_vm8, %v506_v2, %v510_v47  ;;  %v520_v21 = vsel %vm513_vm8, %v510_v47, %v498_v18  ;;  %v3880_v18 = vld [vmem:[%s5902_s7 + $0x10] sm:$0xff] }
 0x13a   :  { %v544_v62 = vmul.f32 %v2938_v1, %v515_v57  ;;  %v545_v25 = vmul.f32 %v2939_v3, %v521_v58  ;;  %v540_v8 = vmul.f32 %v2938_v1, %v514_v61  ;;  %v541_v11 = vmul.f32 %v2939_v3, %v520_v21  ;;  %589 = vmatprep.subr.bf16.mxu0 %v547_v49 }
 0x13b   :  { %590 = vmatpush1.bf16.msra.mxu0 %v546_v52  ;;  %v3268_v14 = vmov 1  }
 0x13c   :  { %v549_v19 = vpack.c.bf16 %v545_v25, %v541_v11  ;;  %v548_v29 = vpack.c.bf16 %v544_v62, %v540_v8  ;;  %3074 = vset.pattern.permute.xlu1 %v3268_v14  ;;  %3075 = vset.pattern.permute.xlu0 %v3268_v14 }
 0x13d   :  { %773 = vperm.xlu1 %3074, %v3597_v35   ;;  %777 = vperm.xlu0 %3075, %v3605_v41  }
 0x13e   :  { %606 = vmatmul.mubr.bf16.vlgmr.msra.gmra.mrb[0].mxu0 %v3091_v13  ;;  %632 = vmatprep.subr.bf16.mxu1 %v549_v19 }
 0x13f   :  { %633 = vmatpush1.bf16.msra.mxu1 %v548_v29  ;;  %838 = vmatprep.mubr.bf16.mxu0 %v5904_v26 }
 0x141   :  { %782 = vperm.xlu1 %3074, %v3880_v18  }
 0x142   :  { %649 = vmatmul.mubr.bf16.vlgmr.msra.gmra.mrb[0].mxu1 %v3091_v13 }
 0x143   :  { %891 = vmatprep.mubr.bf16.mxu1 %v5904_v26 }
 0x145   :  { %787 = vperm.xlu1 %3074, %v3886_v20  }
 0x149   :  { %v553_v22 = vpop.permute.xlu0 %552 }
 0x14a   :  { %v558_v23 = vpop.permute.xlu1 %557 }
 0x211   :  { %v607_v27 = vpop.f32.mrb[0].mxu0 }
 0x212   :  { %v3889_v35 = vadd.f32 %v607_v27, %v553_v22  ;;  %v609_v41 = vpop.f32.mrb[1].mxu0 }
 0x213   :  { %v3891_v28 = vadd.f32 %v609_v41, %v553_v22  ;;  %v611_v31 = vpop.f32.mrb[2].mxu0 }
 0x214   :  { %6050 = vst [vmem:[#allocation30_spill] sm:$0xff] %v3889_v35  ;;  %v3893_v37 = vadd.f32 %v611_v31, %v558_v23  ;;  %v613_v9 = vpop.f32.mrb[3].mxu0  ;;  %v692_v6 = vmul.f32 %v3889_v35, %v3889_v35 }
 0x215   :  { %6051 = vst [vmem:[#allocation31_spill] sm:$0xff] %v3891_v28  ;;  %v3895_v2 = vadd.f32 %v613_v9, %v558_v23  ;;  %v650_v42 = vpop.f32.mrb[0].mxu1  ;;  %v693_v5 = vmul.f32 %v3891_v28, %v3891_v28 }
 0x216   :  { %6052 = vst [vmem:[#allocation32_spill] sm:$0xff] %v3893_v37  ;;  %v659_v24 = vadd.f32 %v3893_v37, %v3889_v35  ;;  %v696_v7 = vmul.f32 %v3893_v37, %v3893_v37  ;;  %v3903_v1 = vadd.f32 %v650_v42, %v553_v22  ;;  %v652_v3 = vpop.f32.mrb[1].mxu1 }
 0x217   :  { %6053 = vst [vmem:[#allocation33_spill] sm:$0xff] %v3895_v2  ;;  %v666_v47 = vadd.f32 %v3895_v2, %v3891_v28  ;;  %v697_v49 = vmul.f32 %v3895_v2, %v3895_v2  ;;  %v3911_v52 = vadd.f32 %v652_v3, %v553_v22  ;;  %v654_v57 = vpop.f32.mrb[2].mxu1 }
 0x218   :  { %6054 = vst [vmem:[#allocation34_spill] sm:$0xff] %v3903_v1  ;;  %v660_v58 = vrot.slane %v659_v24, 4  ;;  %v700_v61 = vadd.f32 %v696_v7, %v692_v6  ;;  %v694_v21 = vmul.f32 %v3903_v1, %v3903_v1  ;;  %v3915_v62 = vadd.f32 %v654_v57, %v558_v23  ;;  %v656_v25 = vpop.f32.mrb[3].mxu1 }
 0x219   :  { %6055 = vst [vmem:[#allocation35_spill] sm:$0xff] %v3911_v52  ;;  %v667_v8 = vrot.slane %v666_v47, 4  ;;  %v707_v11 = vadd.f32 %v697_v49, %v693_v5  ;;  %v695_v13 = vmul.f32 %v3911_v52, %v3911_v52  ;;  %v3919_v19 = vadd.f32 %v656_v25, %v558_v23 }
 0x21a   :  { %6056 = vst [vmem:[#allocation36_spill] sm:$0xff] %v3915_v62  ;;  %v661_v29 = vadd.f32 %v660_v58, %v659_v24  ;;  %v701_v14 = vrot.slane %v700_v61, 4  ;;  %v673_v22 = vadd.f32 %v3915_v62, %v3903_v1  ;;  %v698_v27 = vmul.f32 %v3915_v62, %v3915_v62 }
 0x21b   :  { %6057 = vst [vmem:[#allocation37_spill] sm:$0xff] %v3919_v19  ;;  %v668_v41 = vadd.f32 %v667_v8, %v666_v47  ;;  %v708_v31 = vrot.slane %v707_v11, 4  ;;  %v680_v9 = vadd.f32 %v3919_v19, %v3911_v52  ;;  %v699_v42 = vmul.f32 %v3919_v19, %v3919_v19 }
 0x21c   :  { %v662_v6 = vrot.slane %v661_v29, 2  ;;  %v702_v7 = vadd.f32 %v701_v14, %v700_v61  ;;  %v674_v23 = vrot.slane %v673_v22, 4  ;;  %v714_v3 = vadd.f32 %v698_v27, %v694_v21 }
 0x21d   :  { %v669_v24 = vrot.slane %v668_v41, 2  ;;  %v709_v5 = vadd.f32 %v708_v31, %v707_v11  ;;  %v681_v49 = vrot.slane %v680_v9, 4  ;;  %v721_v57 = vadd.f32 %v699_v42, %v695_v13 }
 0x21e   :  { %v663_v58 = vadd.f32 %v662_v6, %v661_v29  ;;  %v703_v25 = vrot.slane %v702_v7, 2  ;;  %v675_v26 = vadd.f32 %v674_v23, %v673_v22  ;;  %v715_v12 = vrot.slane %v714_v3, 4 }
 0x21f   :  { %v670_v47 = vadd.f32 %v669_v24, %v668_v41  ;;  %v710_v8 = vrot.slane %v709_v5, 2  ;;  %v682_v4 = vadd.f32 %v681_v49, %v680_v9  ;;  %v722_v39 = vrot.slane %v721_v57, 4 }
 0x220   :  { %v664_v32 = vrot.slane %v663_v58, 1  ;;  %v704_v46 = vadd.f32 %v703_v25, %v702_v7  ;;  %v676_v44 = vrot.slane %v675_v26, 2  ;;  %v716_v0 = vadd.f32 %v715_v12, %v714_v3 }
 0x221   :  { %v671_v36 = vrot.slane %v670_v47, 1  ;;  %v711_v61 = vadd.f32 %v710_v8, %v709_v5  ;;  %v683_v14 = vrot.slane %v682_v4, 2  ;;  %v723_v21 = vadd.f32 %v722_v39, %v721_v57 }
 0x222   :  { %v665_v27 = vadd.f32 %v664_v32, %v663_v58  ;;  %v705_v11 = vrot.slane %v704_v46, 1  ;;  %v677_v31 = vadd.f32 %v676_v44, %v675_v26  ;;  %v717_v13 = vrot.slane %v716_v0, 2 }
 0x223   :  { %v712_v29 = vrot.slane %v711_v61, 1  ;;  %v684_v42 = vadd.f32 %v683_v14, %v682_v4  ;;  %v724_v22 = vrot.slane %v723_v21, 2  ;;  %v672_v6 = vadd.f32 %v671_v36, %v670_v47 }
 0x224   :  { %v688_v41 = vmul.f32 0.0625, %v665_v27  ;;  %v706_v23 = vadd.f32 %v705_v11, %v704_v46  ;;  %v678_v9 = vrot.slane %v677_v31, 1  ;;  %v718_v24 = vadd.f32 %v717_v13, %v716_v0 }
 0x225   :  { %v713_v49 = vadd.f32 %v712_v29, %v711_v61  ;;  %v725_v7 = vadd.f32 %v724_v22, %v723_v21  ;;  %v689_v25 = vmul.f32 0.0625, %v672_v6  ;;  %v685_v8 = vrot.slane %v684_v42, 1 }
 0x226   :  { %v728_v12 = vmul.f32 0.0625, %v706_v23  ;;  %v732_v3 = vmul.f32 %v688_v41, %v688_v41  ;;  %v679_v5 = vadd.f32 %v678_v9, %v677_v31  ;;  %v719_v32 = vrot.slane %v718_v24, 1 }
 0x227   :  { %v729_v39 = vmul.f32 0.0625, %v713_v49  ;;  %v726_v57 = vrot.slane %v725_v7, 1  ;;  %v733_v26 = vmul.f32 %v689_v25, %v689_v25  ;;  %v686_v27 = vadd.f32 %v685_v8, %v684_v42 }
 0x228   :  { %v736_v44 = vsub.f32 %v728_v12, %v732_v3  ;;  %v690_v58 = vmul.f32 0.0625, %v679_v5  ;;  %v720_v4 = vadd.f32 %v719_v32, %v718_v24  ;;  %v744_v42 = vsub.f32 %v3889_v35, %v688_v41 }
 0x229   :  { %v727_v14 = vadd.f32 %v726_v57, %v725_v7  ;;  %v737_v36 = vsub.f32 %v729_v39, %v733_v26  ;;  %v691_v13 = vmul.f32 0.0625, %v686_v27  ;;  %v748_v7 = vsub.f32 %v3893_v37, %v688_v41  ;;  %v3094_v41 = vld [vmem:[%s5900_s5] sm:$0xff]  }
 0x22a   :  { %v740_v47 = vmax.f32 %v736_v44, 0.0  ;;  %v734_v46 = vmul.f32 %v690_v58, %v690_v58  ;;  %v730_v0 = vmul.f32 0.0625, %v720_v4  ;;  %v745_v3 = vsub.f32 %v3891_v28, %v689_v25 }
 0x22b   :  { %v741_v61 = vmax.f32 %v737_v36, 0.0  ;;  %v731_v11 = vmul.f32 0.0625, %v727_v14  ;;  %v735_v22 = vmul.f32 %v691_v13, %v691_v13  ;;  %v749_v5 = vsub.f32 %v3895_v2, %v689_v25 }
 0x22c   :  { %v752_v21 = vadd.f32 1e-06, %v740_v47  ;;  %v738_v29 = vsub.f32 %v730_v0, %v734_v46  ;;  %v750_v36 = vsub.f32 %v3915_v62, %v690_v58  ;;  %v746_v47 = vsub.f32 %v3903_v1, %v690_v58  ;;  %v3095_v58 = vld [vmem:[%s5900_s5 + $0x8] sm:$0xff]  }
 0x22d   :  { %v753_v31 = vadd.f32 1e-06, %v741_v61  ;;  %v739_v23 = vsub.f32 %v731_v11, %v735_v22  ;;  %v747_v25 = vsub.f32 %v3911_v52, %v691_v13  ;;  %v751_v46 = vsub.f32 %v3919_v19, %v691_v13  ;;  %v774_v13 = vpop.permute.xlu1 %773 }
 0x22e   :  { %3111 = vrsqrt.f32 %v752_v21  ;;  %v742_v6 = vmax.f32 %v738_v29, 0.0 }
 0x22f   :  { %3113 = vrsqrt.f32 %v753_v31  ;;  %v743_v49 = vmax.f32 %v739_v23, 0.0  ;;  %v6058_v31 = vmov 0   ;;  %v778_v23 = vpop.permute.xlu0 %777 }
 0x230   :  { %v754_v9 = vadd.f32 1e-06, %v742_v6 }
 0x231   :  { %v755_v24 = vadd.f32 1e-06, %v743_v49 }
 0x232   :  { %3115 = vrsqrt.f32 %v754_v9 }
 0x233   :  { %3117 = vrsqrt.f32 %v755_v24 }
 0x238   :  { %v3112_v12 = vpop.eup %3111 }
 0x239   :  { %v3114_v8 = vpop.eup %3113  ;;  %v760_v39 = vmul.f32 %v3112_v12, %v744_v42  ;;  %v764_v32 = vmul.f32 %v3112_v12, %v748_v7 }
 0x23a   :  { %v761_v57 = vmul.f32 %v3114_v8, %v745_v3  ;;  %v765_v26 = vmul.f32 %v3114_v8, %v749_v5 }
 0x23b   :  { %v768_v14 = vpack.c.bf16 %v764_v32, %v760_v39 }
 0x23c   :  { %v769_v44 = vpack.c.bf16 %v765_v26, %v761_v57  ;;  %v3116_v4 = vpop.eup %3115 }
 0x23d   :  { %v3118_v27 = vpop.eup %3117  ;;  %v762_v0 = vmul.f32 %v3116_v4, %v746_v47  ;;  %v766_v61 = vmul.f32 %v3116_v4, %v750_v36 }
 0x23e   :  { %806 = vmatprep.subr.bf16.mxu0 %v769_v44  ;;  %v763_v21 = vmul.f32 %v3118_v27, %v747_v25  ;;  %v767_v11 = vmul.f32 %v3118_v27, %v751_v46 }
 0x23f   :  { %807 = vmatpush1.bf16.msra.mxu0 %v768_v14  ;;  %v770_v22 = vpack.c.bf16 %v766_v61, %v762_v0 }
 0x240   :  { %v771_v29 = vpack.c.bf16 %v767_v11, %v763_v21  ;;  %v4087_v21 = vpop.permute.xlu1 %782 }
 0x242   :  { %2946 = vmatmul.mubr.msk.bf16.vlgmr.msra.gmra.mrb[4].mxu0 %vm569_vm0, %v3094_v41  ;;  %859 = vmatprep.subr.bf16.mxu1 %v771_v29 }
 0x243   :  { %848 = vmatprep.mubr.bf16.mxu0 %v6058_v31  ;;  %860 = vmatpush1.bf16.msra.mxu1 %v770_v22 }
 0x244   :  { %v4095_v11 = vpop.permute.xlu1 %787 }
 0x246   :  { %2948 = vmatmul.mubr.msk.bf16.vlgmr.msra.gmra.mrb[4].mxu1 %vm569_vm0, %v3094_v41 }
 0x247   :  { %901 = vmatprep.mubr.bf16.mxu1 %v6058_v31 }
 0x24a   :  { %2947 = vmatmul.mubr.msk.bf16.gmra.mrb[8].mxu0 %vm569_vm0, %v3095_v58 }
 0x24e   :  { %2949 = vmatmul.mubr.msk.bf16.gmra.mrb[8].mxu1 %vm569_vm0, %v3095_v58 }
 0x315   :  { %v840_v6 = vpop.f32.mrb[4].mxu0 }
 0x316   :  { %v3949_v9 = vadd.f32 %v840_v6, %v774_v13  ;;  %v842_v49 = vpop.f32.mrb[5].mxu0 }
 0x317   :  { %v844_v24 = vpop.f32.mrb[6].mxu0  ;;  %v4033_v46 = vadd.f32 %v842_v49, %v774_v13 }
 0x318   :  { %6059 = vst [vmem:[#allocation38_spill] sm:$0xff] %v3949_v9  ;;  %v3951_v7 = vadd.f32 %v844_v24, %v778_v23  ;;  %v846_v42 = vpop.f32.mrb[7].mxu0  ;;  %928 = vrot.lane.b32.xlu0 %v3949_v9, %s3259_s18 }
 0x319   :  { %v893_v3 = vpop.f32.mrb[4].mxu1  ;;  %v4037_v27 = vadd.f32 %v846_v42, %v778_v23 }
 0x31a   :  { %6060 = vst [vmem:[#allocation39_spill] sm:$0xff] %v3951_v7  ;;  %930 = vrot.lane.b32.xlu1 %v3951_v7, %s3259_s18  ;;  %v3959_v5 = vadd.f32 %v893_v3, %v774_v13  ;;  %v895_v8 = vpop.f32.mrb[5].mxu1 }
 0x31b   :  { %v897_v32 = vpop.f32.mrb[6].mxu1  ;;  %v4041_v0 = vadd.f32 %v895_v8, %v774_v13 }
 0x31c   :  { %v3965_v26 = vadd.f32 %v897_v32, %v778_v23  ;;  %v899_v44 = vpop.f32.mrb[7].mxu1  ;;  %944 = vrot.lane.b32.xlu0 %v3959_v5, %s3259_s18 }
 0x31d   :  { %v3961_v39 = vpop.f32.mrb[8].mxu0  ;;  %v4045_v61 = vadd.f32 %v899_v44, %v778_v23 }
 0x31e   :  { %v3963_v57 = vpop.f32.mrb[9].mxu0  ;;  %946 = vrot.lane.b32.xlu1 %v3965_v26, %s3259_s18  ;;  %v4111_v58 = vadd.f32 %v3961_v39, %v4087_v21 }
 0x31f   :  { %v3969_v4 = vpop.f32.mrb[10].mxu0 }
 0x320   :  { %v3971_v14 = vpop.f32.mrb[11].mxu0  ;;  %1000 = vrot.lane.b32.xlu0 %v3949_v9, %s3260_s26  ;;  %6061 = vst [vmem:[#allocation40_spill] sm:$0xff] %v4111_v58  ;;  %v4119_v6 = vadd.f32 %v3969_v4, %v4095_v11 }
 0x321   :  { %v3977_v36 = vpop.f32.mrb[8].mxu1 }
 0x322   :  { %v3979_v41 = vpop.f32.mrb[9].mxu1  ;;  %1002 = vrot.lane.b32.xlu1 %v3951_v7, %s3260_s26  ;;  %6062 = vst [vmem:[#allocation41_spill] sm:$0xff] %v4119_v6  ;;  %v4127_v49 = vadd.f32 %v3977_v36, %v4087_v21 }
 0x323   :  { %v3983_v47 = vpop.f32.mrb[10].mxu1  ;;  %v4257_v50 = vadd.f32 %v3979_v41, %v4087_v21 }
 0x324   :  { %v3985_v25 = vpop.f32.mrb[11].mxu1  ;;  %1016 = vrot.lane.b32.xlu0 %v3959_v5, %s3260_s26  ;;  %6063 = vst [vmem:[#allocation42_spill] sm:$0xff] %v4127_v49  ;;  %v4135_v42 = vadd.f32 %v3983_v47, %v4095_v11 }
 0x325   :  { %6079 = vst [vmem:[#allocation58_spill] sm:$0xff] %v4257_v50 }
 0x326   :  { %1018 = vrot.lane.b32.xlu1 %v3965_v26, %s3260_s26  ;;  %6064 = vst [vmem:[#allocation43_spill] sm:$0xff] %v4135_v42 }
 0x328   :  { %1072 = vrot.lane.b32.xlu0 %v3949_v9, %s3261_s0 }
 0x32a   :  { %1074 = vrot.lane.b32.xlu1 %v3951_v7, %s3261_s0 }
 0x32c   :  { %1088 = vrot.lane.b32.xlu0 %v3959_v5, %s3261_s0 }
 0x32e   :  { %1090 = vrot.lane.b32.xlu1 %v3965_v26, %s3261_s0 }
 0x330   :  { %1144 = vrot.lane.b32.xlu0 %v3949_v9, %s3262_s27 }
 0x332   :  { %1146 = vrot.lane.b32.xlu1 %v3951_v7, %s3262_s27 }
 0x334   :  { %1160 = vrot.lane.b32.xlu0 %v3959_v5, %s3262_s27 }
 0x336   :  { %1162 = vrot.lane.b32.xlu1 %v3965_v26, %s3262_s27 }
 0x338   :  { %1216 = vrot.lane.b32.xlu0 %v3949_v9, %s3263_s29 }
 0x33a   :  { %1218 = vrot.lane.b32.xlu1 %v3951_v7, %s3263_s29 }
 0x33c   :  { %1232 = vrot.lane.b32.xlu0 %v3959_v5, %s3263_s29 }
 0x33e   :  { %1234 = vrot.lane.b32.xlu1 %v3965_v26, %s3263_s29 }
 0x340   :  { %1288 = vrot.lane.b32.xlu0 %v3949_v9, %s3264_s2 }
 0x342   :  { %1290 = vrot.lane.b32.xlu1 %v3951_v7, %s3264_s2 }
 0x344   :  { %1304 = vrot.lane.b32.xlu0 %v3959_v5, %s3264_s2 }
 0x346   :  { %1306 = vrot.lane.b32.xlu1 %v3965_v26, %s3264_s2 }
 0x348   :  { %1360 = vrot.lane.b32.xlu0 %v3949_v9, %s3265_s28 }
 0x34a   :  { %1362 = vrot.lane.b32.xlu1 %v3951_v7, %s3265_s28 }
 0x34c   :  { %1376 = vrot.lane.b32.xlu0 %v3959_v5, %s3265_s28 }
 0x34e   :  { %1378 = vrot.lane.b32.xlu1 %v3965_v26, %s3265_s28 }
 0x350   :  { %1432 = vrot.lane.b32.xlu0 %v3949_v9, %s3266_s30 }
 0x352   :  { %1434 = vrot.lane.b32.xlu1 %v3951_v7, %s3266_s30 }
 0x354   :  { %936 = vrot.lane.b32.xlu0 %v4033_v46, %s3259_s18 }
 0x356   :  { %938 = vrot.lane.b32.xlu1 %v4037_v27, %s3259_s18 }
 0x358   :  { %952 = vrot.lane.b32.xlu0 %v4041_v0, %s3259_s18 }
 0x35a   :  { %954 = vrot.lane.b32.xlu1 %v4045_v61, %s3259_s18 }
 0x35c   :  { %1008 = vrot.lane.b32.xlu0 %v4033_v46, %s3260_s26 }
 0x35e   :  { %1010 = vrot.lane.b32.xlu1 %v4037_v27, %s3260_s26 }
 0x360   :  { %1024 = vrot.lane.b32.xlu0 %v4041_v0, %s3260_s26 }
 0x362   :  { %1026 = vrot.lane.b32.xlu1 %v4045_v61, %s3260_s26 }
 0x364   :  { %1080 = vrot.lane.b32.xlu0 %v4033_v46, %s3261_s0 }
 0x366   :  { %1082 = vrot.lane.b32.xlu1 %v4037_v27, %s3261_s0 }
 0x368   :  { %1096 = vrot.lane.b32.xlu0 %v4041_v0, %s3261_s0 }
 0x36a   :  { %1098 = vrot.lane.b32.xlu1 %v4045_v61, %s3261_s0 }
 0x36c   :  { %1152 = vrot.lane.b32.xlu0 %v4033_v46, %s3262_s27 }
 0x36e   :  { %1154 = vrot.lane.b32.xlu1 %v4037_v27, %s3262_s27 }
 0x370   :  { %1168 = vrot.lane.b32.xlu0 %v4041_v0, %s3262_s27 }
 0x372   :  { %1170 = vrot.lane.b32.xlu1 %v4045_v61, %s3262_s27 }
 0x374   :  { %1224 = vrot.lane.b32.xlu0 %v4033_v46, %s3263_s29 }
 0x376   :  { %1226 = vrot.lane.b32.xlu1 %v4037_v27, %s3263_s29 }
 0x378   :  { %1240 = vrot.lane.b32.xlu0 %v4041_v0, %s3263_s29 }
 0x37a   :  { %1242 = vrot.lane.b32.xlu1 %v4045_v61, %s3263_s29 }
 0x37c   :  { %1296 = vrot.lane.b32.xlu0 %v4033_v46, %s3264_s2 }
 0x37e   :  { %1298 = vrot.lane.b32.xlu1 %v4037_v27, %s3264_s2 }
 0x380   :  { %1312 = vrot.lane.b32.xlu0 %v4041_v0, %s3264_s2 }
 0x382   :  { %1314 = vrot.lane.b32.xlu1 %v4045_v61, %s3264_s2 }
 0x384   :  { %1368 = vrot.lane.b32.xlu0 %v4033_v46, %s3265_s28 }
 0x386   :  { %1370 = vrot.lane.b32.xlu1 %v4037_v27, %s3265_s28 }
 0x388   :  { %1384 = vrot.lane.b32.xlu0 %v4041_v0, %s3265_s28 }
 0x38a   :  { %v4101_v29 = vpop.permute.xlu0 %928  ;;  %1386 = vrot.lane.b32.xlu1 %v4045_v61, %s3265_s28 }
 0x38c   :  { %v4105_v22 = vpop.permute.xlu1 %930  ;;  %1440 = vrot.lane.b32.xlu0 %v4033_v46, %s3266_s30 }
 0x38e   :  { %1442 = vrot.lane.b32.xlu1 %v4037_v27, %s3266_s30  ;;  %v4115_v13 = vpop.permute.xlu0 %944 }
 0x390   :  { %v4121_v23 = vpop.permute.xlu1 %946  ;;  %932 = vrot.lane.b32.xlu0 %v4111_v58, %s3259_s18 }
 0x392   :  { %934 = vrot.lane.b32.xlu1 %v4119_v6, %s3259_s18  ;;  %v4131_v24 = vpop.permute.xlu0 %1000 }
 0x394   :  { %v4137_v3 = vpop.permute.xlu1 %1002  ;;  %948 = vrot.lane.b32.xlu0 %v4127_v49, %s3259_s18 }
 0x396   :  { %950 = vrot.lane.b32.xlu1 %v4135_v42, %s3259_s18  ;;  %v4143_v8 = vpop.permute.xlu0 %1016 }
 0x398   :  { %v4145_v39 = vpop.permute.xlu1 %1018  ;;  %1004 = vrot.lane.b32.xlu0 %v4111_v58, %s3260_s26 }
 0x39a   :  { %1006 = vrot.lane.b32.xlu1 %v4119_v6, %s3260_s26  ;;  %v4151_v32 = vpop.permute.xlu0 %1072 }
 0x39c   :  { %v4153_v44 = vpop.permute.xlu1 %1074  ;;  %1020 = vrot.lane.b32.xlu0 %v4127_v49, %s3260_s26 }
 0x39e   :  { %1022 = vrot.lane.b32.xlu1 %v4135_v42, %s3260_s26  ;;  %v4159_v4 = vpop.permute.xlu0 %1088 }
 0x3a0   :  { %v4161_v36 = vpop.permute.xlu1 %1090  ;;  %1076 = vrot.lane.b32.xlu0 %v4111_v58, %s3261_s0 }
 0x3a2   :  { %1078 = vrot.lane.b32.xlu1 %v4119_v6, %s3261_s0  ;;  %v4167_v47 = vpop.permute.xlu0 %1144 }
 0x3a4   :  { %v4169_v12 = vpop.permute.xlu1 %1146  ;;  %1092 = vrot.lane.b32.xlu0 %v4127_v49, %s3261_s0 }
 0x3a6   :  { %1094 = vrot.lane.b32.xlu1 %v4135_v42, %s3261_s0  ;;  %v4175_v19 = vpop.permute.xlu0 %1160 }
 0x3a8   :  { %v4177_v62 = vpop.permute.xlu1 %1162  ;;  %1148 = vrot.lane.b32.xlu0 %v4111_v58, %s3262_s27 }
 0x3aa   :  { %1150 = vrot.lane.b32.xlu1 %v4119_v6, %s3262_s27  ;;  %v4183_v52 = vpop.permute.xlu0 %1216 }
 0x3ab   :  { %6065 = vst [vmem:[#allocation44_spill] sm:$0xff] %v4183_v52 }
 0x3ac   :  { %v4185_v1 = vpop.permute.xlu1 %1218  ;;  %1164 = vrot.lane.b32.xlu0 %v4127_v49, %s3262_s27 }
 0x3ad   :  { %6066 = vst [vmem:[#allocation45_spill] sm:$0xff] %v4185_v1 }
 0x3ae   :  { %1166 = vrot.lane.b32.xlu1 %v4135_v42, %s3262_s27  ;;  %v4191_v2 = vpop.permute.xlu0 %1232 }
 0x3af   :  { %6067 = vst [vmem:[#allocation46_spill] sm:$0xff] %v4191_v2 }
 0x3b0   :  { %v4193_v37 = vpop.permute.xlu1 %1234  ;;  %1220 = vrot.lane.b32.xlu0 %v4111_v58, %s3263_s29 }
 0x3b1   :  { %6068 = vst [vmem:[#allocation47_spill] sm:$0xff] %v4193_v37 }
 0x3b2   :  { %1222 = vrot.lane.b32.xlu1 %v4119_v6, %s3263_s29  ;;  %v4199_v28 = vpop.permute.xlu0 %1288 }
 0x3b3   :  { %6069 = vst [vmem:[#allocation48_spill] sm:$0xff] %v4199_v28 }
 0x3b4   :  { %v4201_v35 = vpop.permute.xlu1 %1290  ;;  %1236 = vrot.lane.b32.xlu0 %v4127_v49, %s3263_s29 }
 0x3b5   :  { %6070 = vst [vmem:[#allocation49_spill] sm:$0xff] %v4201_v35 }
 0x3b6   :  { %1238 = vrot.lane.b32.xlu1 %v4135_v42, %s3263_s29  ;;  %v4207_v9 = vpop.permute.xlu0 %1304 }
 0x3b7   :  { %6071 = vst [vmem:[#allocation50_spill] sm:$0xff] %v4207_v9 }
 0x3b8   :  { %v4209_v7 = vpop.permute.xlu1 %1306  ;;  %1292 = vrot.lane.b32.xlu0 %v4111_v58, %s3264_s2 }
 0x3b9   :  { %6072 = vst [vmem:[#allocation51_spill] sm:$0xff] %v4209_v7 }
 0x3ba   :  { %1294 = vrot.lane.b32.xlu1 %v4119_v6, %s3264_s2  ;;  %v4215_v51 = vpop.permute.xlu0 %1360 }
 0x3bb   :  { %6073 = vst [vmem:[#allocation52_spill] sm:$0xff] %v4215_v51 }
 0x3bc   :  { %v4217_v28 = vpop.permute.xlu1 %1362  ;;  %1308 = vrot.lane.b32.xlu0 %v4127_v49, %s3264_s2 }
 0x3bd   :  { %6074 = vst [vmem:[#allocation53_spill] sm:$0xff] %v4217_v28  ;;  %v4239_v28 = vadd.f32 %v3963_v57, %v4087_v21 }
 0x3be   :  { %1310 = vrot.lane.b32.xlu1 %v4135_v42, %s3264_s2  ;;  %v4223_v35 = vpop.permute.xlu0 %1376 }
 0x3bf   :  { %6075 = vst [vmem:[#allocation54_spill] sm:$0xff] %v4223_v35 }
 0x3c0   :  { %v4225_v9 = vpop.permute.xlu1 %1378  ;;  %1364 = vrot.lane.b32.xlu0 %v4111_v58, %s3265_s28 }
 0x3c1   :  { %6076 = vst [vmem:[#allocation55_spill] sm:$0xff] %v4225_v9 }
 0x3c2   :  { %1366 = vrot.lane.b32.xlu1 %v4119_v6, %s3265_s28  ;;  %v4231_v7 = vpop.permute.xlu0 %1432 }
 0x3c3   :  { %6077 = vst [vmem:[#allocation56_spill] sm:$0xff] %v4231_v7  ;;  %v4248_v7 = vadd.f32 %v3971_v14, %v4095_v11 }
 0x3c4   :  { %v4233_v51 = vpop.permute.xlu1 %1434  ;;  %1380 = vrot.lane.b32.xlu0 %v4127_v49, %s3265_s28 }
 0x3c5   :  { %6078 = vst [vmem:[#allocation57_spill] sm:$0xff] %v4233_v51 }
 0x3c6   :  { %1382 = vrot.lane.b32.xlu1 %v4135_v42, %s3265_s28  ;;  %v937_v9 = vpop.permute.xlu0 %936 }
 0x3c7   :  { %v968_v35 = vsel %vm142_vm1, %v4101_v29, %v937_v9 }
 0x3c8   :  { %v939_v51 = vpop.permute.xlu1 %938  ;;  %940 = vrot.lane.b32.xlu0 %v4239_v28, %s3259_s18  ;;  %v977_v43 = vmul.f32 %v968_v35, %v3557_v16  ;;  %v4274_v35 = vadd.f32 %v3985_v25, %v4095_v11 }
 0x3c9   :  { %v969_v57 = vsel %vm142_vm1, %v4105_v22, %v939_v51  ;;  %v965_v1 = vsel %vm142_vm1, %v939_v51, %v4121_v23  ;;  %v964_v51 = vsel %vm142_vm1, %v937_v9, %v4115_v13 }
 0x3ca   :  { %v981_v14 = vmul.f32 %v969_v57, %v3557_v16  ;;  %942 = vrot.lane.b32.xlu1 %v4248_v7, %s3259_s18  ;;  %v953_v37 = vpop.permute.xlu0 %952  ;;  %v982_v52 = vmul.f32 %v965_v1, %v3578_v30  ;;  %v978_v1 = vmul.f32 %v964_v51, %v3578_v30 }
 0x3cb   :  { %v960_v40 = vsel %vm142_vm1, %v4115_v13, %v953_v37  ;;  %v972_v41 = vsel %vm142_vm1, %v953_v37, %v4101_v29 }
 0x3cc   :  { %v955_v21 = vpop.permute.xlu1 %954  ;;  %956 = vrot.lane.b32.xlu0 %v4257_v50, %s3259_s18  ;;  %v993_v57 = vpack.c.bf16 %v981_v14, %v977_v43  ;;  %v976_v2 = vmul.f32 %v972_v41, %v3589_v33  ;;  %v979_v11 = vmul.f32 %v960_v40, %v3592_v34  ;;  %v994_v40 = vpack.c.bf16 %v982_v52, %v978_v1 }
 0x3cd   :  { %v961_v37 = vsel %vm142_vm1, %v4121_v23, %v955_v21  ;;  %v973_v25 = vsel %vm142_vm1, %v955_v21, %v4105_v22 }
 0x3ce   :  { %v980_v9 = vmul.f32 %v973_v25, %v3589_v33  ;;  %v983_v29 = vmul.f32 %v961_v37, %v3592_v34  ;;  %958 = vrot.lane.b32.xlu1 %v4274_v35, %s3259_s18  ;;  %1557 = vmatprep.subr.bf16.mxu0 %v993_v57  ;;  %v4294_v43 = vpop.permute.xlu0 %1008 }
 0x3d0   :  { %v992_v13 = vpack.c.bf16 %v980_v9, %v976_v2  ;;  %v4297_v23 = vpop.permute.xlu1 %1010  ;;  %1012 = vrot.lane.b32.xlu0 %v4239_v28, %s3260_s26  ;;  %v995_v22 = vpack.c.bf16 %v983_v29, %v979_v11 }
 0x3d2   :  { %1014 = vrot.lane.b32.xlu1 %v4248_v7, %s3260_s26  ;;  %1558 = vmatpush1.bf16.msra.mxu0 %v992_v13  ;;  %v4303_v14 = vpop.permute.xlu0 %1024 }
 0x3d3   :  { %1663 = vmatprep.subr.bf16.mxu1 %v995_v22 }
 0x3d4   :  { %1664 = vmatpush1.bf16.msra.mxu1 %v994_v40  ;;  %v4305_v41 = vpop.permute.xlu1 %1026  ;;  %1028 = vrot.lane.b32.xlu0 %v4257_v50, %s3260_s26 }
 0x3d6   :  { %1030 = vrot.lane.b32.xlu1 %v4274_v35, %s3260_s26  ;;  %v4311_v2 = vpop.permute.xlu0 %1080 }
 0x3d8   :  { %v4313_v51 = vpop.permute.xlu1 %1082  ;;  %1084 = vrot.lane.b32.xlu0 %v4239_v28, %s3261_s0 }
 0x3da   :  { %1086 = vrot.lane.b32.xlu1 %v4248_v7, %s3261_s0  ;;  %v4319_v52 = vpop.permute.xlu0 %1096 }
 0x3dc   :  { %v4321_v21 = vpop.permute.xlu1 %1098  ;;  %1100 = vrot.lane.b32.xlu0 %v4257_v50, %s3261_s0 }
 0x3de   :  { %1102 = vrot.lane.b32.xlu1 %v4274_v35, %s3261_s0  ;;  %v4327_v57 = vpop.permute.xlu0 %1152 }
 0x3e0   :  { %v4329_v37 = vpop.permute.xlu1 %1154  ;;  %1156 = vrot.lane.b32.xlu0 %v4239_v28, %s3262_s27 }
 0x3e2   :  { %1158 = vrot.lane.b32.xlu1 %v4248_v7, %s3262_s27  ;;  %v4335_v25 = vpop.permute.xlu0 %1168 }
 0x3e3   :  { %6080 = vst [vmem:[#allocation59_spill] sm:$0xff] %v4335_v25 }
 0x3e4   :  { %v4337_v11 = vpop.permute.xlu1 %1170  ;;  %1172 = vrot.lane.b32.xlu0 %v4257_v50, %s3262_s27 }
 0x3e5   :  { %6081 = vst [vmem:[#allocation60_spill] sm:$0xff] %v4337_v11 }
 0x3e6   :  { %1174 = vrot.lane.b32.xlu1 %v4274_v35, %s3262_s27  ;;  %v4343_v9 = vpop.permute.xlu0 %1224 }
 0x3e7   :  { %6082 = vst [vmem:[#allocation61_spill] sm:$0xff] %v4343_v9 }
 0x3e8   :  { %v4345_v29 = vpop.permute.xlu1 %1226  ;;  %1448 = vrot.lane.b32.xlu0 %v3959_v5, %s3266_s30 }
 0x3e9   :  { %6083 = vst [vmem:[#allocation62_spill] sm:$0xff] %v4345_v29 }
 0x3ea   :  { %1450 = vrot.lane.b32.xlu1 %v3965_v26, %s3266_s30  ;;  %v4351_v1 = vpop.permute.xlu0 %1240 }
 0x3eb   :  { %6084 = vst [vmem:[#allocation63_spill] sm:$0xff] %v4351_v1 }
 0x3ec   :  { %v4353_v13 = vpop.permute.xlu1 %1242  ;;  %1228 = vrot.lane.b32.xlu0 %v4239_v28, %s3263_s29 }
 0x3ed   :  { %6085 = vst [vmem:[#allocation64_spill] sm:$0xff] %v4353_v13 }
 0x3ee   :  { %1458 = vrot.lane.b32.xlu1 %v4045_v61, %s3266_s30  ;;  %v4359_v22 = vpop.permute.xlu0 %1296 }
 0x3ef   :  { %6086 = vst [vmem:[#allocation65_spill] sm:$0xff] %v4359_v22 }
 0x3f0   :  { %v4361_v40 = vpop.permute.xlu1 %1298  ;;  %1244 = vrot.lane.b32.xlu0 %v4257_v50, %s3263_s29 }
 0x3f1   :  { %6087 = vst [vmem:[#allocation66_spill] sm:$0xff] %v4361_v40 }
 0x3f2   :  { %1230 = vrot.lane.b32.xlu1 %v4248_v7, %s3263_s29  ;;  %v4367_v29 = vpop.permute.xlu0 %1312 }
 0x3f3   :  { %6088 = vst [vmem:[#allocation67_spill] sm:$0xff] %v4367_v29 }
 0x3f4   :  { %v4369_v1 = vpop.permute.xlu1 %1314  ;;  %1300 = vrot.lane.b32.xlu0 %v4239_v28, %s3264_s2 }
 0x3f5   :  { %6089 = vst [vmem:[#allocation68_spill] sm:$0xff] %v4369_v1 }
 0x3f6   :  { %1246 = vrot.lane.b32.xlu1 %v4274_v35, %s3263_s29  ;;  %v4375_v13 = vpop.permute.xlu0 %1368 }
 0x3f7   :  { %6090 = vst [vmem:[#allocation69_spill] sm:$0xff] %v4375_v13 }
 0x3f8   :  { %v4377_v22 = vpop.permute.xlu1 %1370  ;;  %1316 = vrot.lane.b32.xlu0 %v4257_v50, %s3264_s2 }
 0x3f9   :  { %6091 = vst [vmem:[#allocation70_spill] sm:$0xff] %v4377_v22  ;;  %v3098_v22 = vld [vmem:[%s5898_s3 + $0x4] ss:$12 sps:$4 sm:$0xff]  }
 0x3fa   :  { %1302 = vrot.lane.b32.xlu1 %v4248_v7, %s3264_s2  ;;  %v4383_v40 = vpop.permute.xlu0 %1384  ;;  %1589 = vmatprep.mubr.bf16.mxu0 %v3098_v22 }
 0x3fb   :  { %6092 = vst [vmem:[#allocation71_spill] sm:$0xff] %v4383_v40  ;;  %1695 = vmatprep.mubr.bf16.mxu1 %v3098_v22 }
 0x3fc   :  { %v4385_v29 = vpop.permute.xlu1 %1386  ;;  %1372 = vrot.lane.b32.xlu0 %v4239_v28, %s3265_s28 }
 0x3fd   :  { %6093 = vst [vmem:[#allocation72_spill] sm:$0xff] %v4385_v29 }
 0x3fe   :  { %1318 = vrot.lane.b32.xlu1 %v4274_v35, %s3264_s2  ;;  %v4391_v1 = vpop.permute.xlu0 %1440 }
 0x3ff   :  { %6094 = vst [vmem:[#allocation73_spill] sm:$0xff] %v4391_v1 }
 0x400   :  { %v4396_v13 = vpop.permute.xlu1 %1442  ;;  %1388 = vrot.lane.b32.xlu0 %v4257_v50, %s3265_s28 }
 0x401   :  { %6095 = vst [vmem:[#allocation74_spill] sm:$0xff] %v4396_v13 }
 0x402   :  { %1374 = vrot.lane.b32.xlu1 %v4248_v7, %s3265_s28  ;;  %v4402_v29 = vpop.permute.xlu0 %932 }
 0x404   :  { %v4404_v40 = vpop.permute.xlu1 %934  ;;  %1456 = vrot.lane.b32.xlu0 %v4041_v0, %s3266_s30 }
 0x406   :  { %1390 = vrot.lane.b32.xlu1 %v4274_v35, %s3265_s28  ;;  %v4410_v1 = vpop.permute.xlu0 %948 }
 0x408   :  { %v4412_v13 = vpop.permute.xlu1 %950  ;;  %1436 = vrot.lane.b32.xlu0 %v4111_v58, %s3266_s30 }
 0x40a   :  { %1438 = vrot.lane.b32.xlu1 %v4119_v6, %s3266_s30  ;;  %v4418_v22 = vpop.permute.xlu0 %1004 }
 0x40b   :  { %6096 = vst [vmem:[#allocation75_spill] sm:$0xff] %v4418_v22  ;;  %v3269_v22 = vmov 2  }
 0x40c   :  { %v4420_v9 = vpop.permute.xlu1 %1006  ;;  %1444 = vrot.lane.b32.xlu0 %v4239_v28, %s3266_s30  ;;  %3077 = vset.pattern.permute.xlu1 %v3269_v22 }
 0x40d   :  { %6097 = vst [vmem:[#allocation76_spill] sm:$0xff] %v4420_v9  ;;  %3076 = vset.pattern.permute.xlu0 %v3269_v22 }
 0x40e   :  { %1454 = vrot.lane.b32.xlu1 %v4135_v42, %s3266_s30  ;;  %v4426_v11 = vpop.permute.xlu0 %1020 }
 0x40f   :  { %6098 = vst [vmem:[#allocation77_spill] sm:$0xff] %v4426_v11 }
 0x410   :  { %v4428_v56 = vpop.permute.xlu1 %1022  ;;  %1452 = vrot.lane.b32.xlu0 %v4127_v49, %s3266_s30 }
 0x411   :  { %6099 = vst [vmem:[#allocation78_spill] sm:$0xff] %v4428_v56 }
 0x412   :  { %1446 = vrot.lane.b32.xlu1 %v4248_v7, %s3266_s30  ;;  %v4434_v54 = vpop.permute.xlu0 %1076 }
 0x413   :  { %6100 = vst [vmem:[#allocation79_spill] sm:$0xff] %v4434_v54  ;;  %v4456_v54 = vld [vmem:[%s5902_s7 + $0x8] sm:$0xff] }
 0x414   :  { %v4436_v25 = vpop.permute.xlu1 %1078  ;;  %1460 = vrot.lane.b32.xlu0 %v4257_v50, %s3266_s30  ;;  %6106 = vst [vmem:[#allocation85_spill] sm:$0xff] %v4456_v54 }
 0x415   :  { %6101 = vst [vmem:[#allocation80_spill] sm:$0xff] %v4436_v25  ;;  %v3143_v25 = vld [vmem:[%s5902_s7] sm:$0xff] }
 0x416   :  { %1462 = vrot.lane.b32.xlu1 %v4274_v35, %s3266_s30  ;;  %v4442_v9 = vpop.permute.xlu0 %1092 }
 0x417   :  { %6102 = vst [vmem:[#allocation81_spill] sm:$0xff] %v4442_v9 }
 0x418   :  { %v4444_v11 = vpop.permute.xlu1 %1094  ;;  %1505 = vperm.xlu0 %3076, %v3143_v25  }
 0x419   :  { %6103 = vst [vmem:[#allocation82_spill] sm:$0xff] %v4444_v11 }
 0x41a   :  { %v4446_v56 = vpop.permute.xlu0 %1148  ;;  %1509 = vperm.xlu1 %3077, %v4456_v54  }
 0x41b   :  { %6104 = vst [vmem:[#allocation83_spill] sm:$0xff] %v4446_v56 }
 0x41c   :  { %v4448_v34 = vpop.permute.xlu1 %1150  ;;  %1517 = vperm.xlu0 %3076, %v3886_v20  }
 0x41d   :  { %6105 = vst [vmem:[#allocation84_spill] sm:$0xff] %v4448_v34 }
 0x41e   :  { %v4459_v9 = vpop.permute.xlu0 %1164  ;;  %1513 = vperm.xlu1 %3077, %v3880_v18   ;;  %v1037_v18 = vsel %vm195_vm2, %v4297_v23, %v4145_v39 }
 0x41f   :  { %6107 = vst [vmem:[#allocation86_spill] sm:$0xff] %v4459_v9 }
 0x420   :  { %v4461_v56 = vpop.permute.xlu1 %1166  ;;  %3078 = vset.pattern.permute.xlu0 %v6058_v31 }
 0x421   :  { %6108 = vst [vmem:[#allocation87_spill] sm:$0xff] %v4461_v56 }
 0x422   :  { %v4465_v22 = vpop.permute.xlu0 %1220  ;;  %3079 = vset.pattern.permute.xlu1 %v6058_v31  ;;  %v1036_v31 = vsel %vm195_vm2, %v4294_v43, %v4143_v8 }
 0x423   :  { %6109 = vst [vmem:[#allocation88_spill] sm:$0xff] %v4465_v22 }
 0x424   :  { %v4467_v34 = vpop.permute.xlu1 %1222 }
 0x425   :  { %6110 = vst [vmem:[#allocation89_spill] sm:$0xff] %v4467_v34  ;;  %v4506_v34 = vmul.f32 %v1037_v18, %v3632_v63  ;;  %v4523_v18 = vmul.f32 %v1036_v31, %v3632_v63  ;;  %v1044_v31 = vsel %vm195_vm2, %v4303_v14, %v4131_v24 }
 0x426   :  { %v4471_v25 = vpop.permute.xlu0 %1236 }
 0x428   :  { %v4473_v11 = vpop.permute.xlu1 %1238 }
 0x429   :  { %6111 = vst [vmem:[#allocation90_spill] sm:$0xff] %v4473_v11 }
 0x42a   :  { %v4475_v54 = vpop.permute.xlu0 %1292 }
 0x42b   :  { %6112 = vst [vmem:[#allocation91_spill] sm:$0xff] %v4475_v54 }
 0x42c   :  { %v4477_v9 = vpop.permute.xlu1 %1294 }
 0x42d   :  { %6113 = vst [vmem:[#allocation92_spill] sm:$0xff] %v4477_v9  ;;  %v1045_v9 = vsel %vm195_vm2, %v4305_v41, %v4137_v3 }
 0x42e   :  { %v4479_v56 = vpop.permute.xlu0 %1308 }
 0x42f   :  { %6114 = vst [vmem:[#allocation93_spill] sm:$0xff] %v4479_v56  ;;  %v1040_v56 = vsel %vm195_vm2, %v4131_v24, %v4294_v43  ;;  %v1108_v24 = vsel %vm248_vm3, %v4311_v2, %v4159_v4  ;;  %v1112_v43 = vsel %vm248_vm3, %v4151_v32, %v4311_v2  ;;  %v1104_v2 = vsel %vm248_vm3, %v4159_v4, %v4319_v52 }
 0x430   :  { %v4485_v20 = vpop.permute.xlu1 %1310  ;;  %v4536_v11 = vmul.f32 %v1040_v56, %v3623_v55  ;;  %v1032_v56 = vsel %vm195_vm2, %v4143_v8, %v4303_v14  ;;  %v1117_v8 = vsel %vm248_vm3, %v4321_v21, %v4153_v44 }
 0x431   :  { %6115 = vst [vmem:[#allocation94_spill] sm:$0xff] %v4485_v20  ;;  %v1041_v20 = vsel %vm195_vm2, %v4137_v3, %v4297_v23  ;;  %v1109_v3 = vsel %vm248_vm3, %v4313_v51, %v4161_v36 }
 0x432   :  { %v4491_v22 = vpop.permute.xlu0 %1364  ;;  %v4539_v23 = vmul.f32 %v1041_v20, %v3623_v55  ;;  %v4558_v20 = vmul.f32 %v1045_v9, %v3639_v15  ;;  %v4581_v9 = vmul.f32 %v1044_v31, %v3639_v15  ;;  %v1105_v31 = vsel %vm248_vm3, %v4161_v36, %v4321_v21 }
 0x433   :  { %6116 = vst [vmem:[#allocation95_spill] sm:$0xff] %v4491_v22  ;;  %v1033_v22 = vsel %vm195_vm2, %v4145_v39, %v4305_v41  ;;  %v1113_v39 = vsel %vm248_vm3, %v4153_v44, %v4313_v51  ;;  %v4595_v44 = vmul.f32 %v1032_v56, %v3642_v17 }
 0x434   :  { %v4514_v54 = vpop.permute.xlu1 %1366  ;;  %v4565_v51 = vmul.f32 %v1033_v22, %v3642_v17  ;;  %v4584_v22 = vmul.f32 %v1113_v39, %v3661_v45  ;;  %v1065_v4 = vpack.c.bf16 %v4539_v23, %v4536_v11  ;;  %v4623_v11 = vmul.f32 %v1104_v2, %v3680_v60 }
 0x435   :  { %6117 = vst [vmem:[#allocation96_spill] sm:$0xff] %v4514_v54  ;;  %v4572_v54 = vmul.f32 %v1109_v3, %v3670_v53  ;;  %v1116_v3 = vsel %vm248_vm3, %v4319_v52, %v4151_v32  ;;  %v4609_v32 = vmul.f32 %v1112_v43, %v3661_v45  ;;  %v4612_v52 = vmul.f32 %v1117_v8, %v3677_v59 }
 0x436   :  { %v4549_v41 = vpop.permute.xlu0 %1380  ;;  %v4620_v21 = vmul.f32 %v1116_v3, %v3677_v59  ;;  %v1067_v43 = vpack.c.bf16 %v4565_v51, %v4595_v44  ;;  %v1184_v8 = vsel %vm301_vm4, %v4167_v47, %v4327_v57  ;;  %v1181_v51 = vsel %vm301_vm4, %v4329_v37, %v4177_v62 }
 0x437   :  { %6118 = vst [vmem:[#allocation97_spill] sm:$0xff] %v4549_v41  ;;  %v1180_v2 = vsel %vm301_vm4, %v4327_v57, %v4175_v19  ;;  %v4671_v58 = vmul.f32 %v1181_v51, %v3708_v48 }
 0x438   :  { %v4578_v14 = vpop.permute.xlu1 %1382  ;;  %v4685_v51 = vmul.f32 %v1180_v2, %v3708_v48 }
 0x439   :  { %6119 = vst [vmem:[#allocation98_spill] sm:$0xff] %v4578_v14  ;;  %v4598_v14 = vmul.f32 %v1108_v24, %v3670_v53  ;;  %v4628_v24 = vmul.f32 %v1105_v31, %v3680_v60 }
 0x43a   :  { %v941_v39 = vpop.permute.xlu0 %940 }
 0x43b   :  { %v970_v56 = vsel %vm142_vm1, %v4402_v29, %v941_v39  ;;  %v966_v57 = vsel %vm142_vm1, %v941_v39, %v4410_v1 }
 0x43c   :  { %v943_v23 = vpop.permute.xlu1 %942  ;;  %v985_v44 = vmul.f32 %v970_v56, %v3557_v16 }
 0x43d   :  { %v971_v3 = vsel %vm142_vm1, %v4404_v40, %v943_v23  ;;  %v967_v31 = vsel %vm142_vm1, %v943_v23, %v4412_v13  ;;  %v4661_v23 = vmul.f32 %v1184_v8, %v3699_v38  ;;  %v6120_v8 = vld [vmem:[#allocation15_spill] sm:$0xff] }
 0x43e   :  { %v989_v36 = vmul.f32 %v971_v3, %v3557_v16  ;;  %v957_v41 = vpop.permute.xlu0 %956  ;;  %v1185_v3 = vsel %vm301_vm4, %v4169_v12, %v4329_v37  ;;  %v990_v6 = vmul.f32 %v967_v31, %v3578_v30 }
 0x43f   :  { %v962_v42 = vsel %vm142_vm1, %v4410_v1, %v957_v41  ;;  %v974_v56 = vsel %vm142_vm1, %v957_v41, %v4402_v29 }
 0x440   :  { %v959_v49 = vpop.permute.xlu1 %958  ;;  %v997_v16 = vpack.c.bf16 %v989_v36, %v985_v44  ;;  %v984_v37 = vmul.f32 %v974_v56, %v3589_v33  ;;  %v987_v50 = vmul.f32 %v962_v42, %v6120_v8  ;;  %v986_v44 = vmul.f32 %v966_v57, %v3578_v30  ;;  %v6124_v30 = vld [vmem:[#allocation78_spill] sm:$0xff] }
 0x441   :  { %v963_v29 = vsel %vm142_vm1, %v4412_v13, %v959_v49  ;;  %v975_v41 = vsel %vm142_vm1, %v959_v49, %v4404_v40  ;;  %v6121_v13 = vld [vmem:[#allocation75_spill] sm:$0xff]  ;;  %v4694_v42 = vmul.f32 %v1185_v3, %v3699_v38  ;;  %v1210_v57 = vpack.c.bf16 %v4671_v58, %v4685_v51  ;;  %v6158_v51 = vld [vmem:[#allocation68_spill] sm:$0xff] }
 0x442   :  { %v988_v1 = vmul.f32 %v975_v41, %v3589_v33  ;;  %v991_v39 = vmul.f32 %v963_v29, %v6120_v8  ;;  %1559 = vmatprep.subr.bf16.mxu0 %v997_v16  ;;  %v1013_v36 = vpop.permute.xlu0 %1012  ;;  %v6122_v40 = vld [vmem:[#allocation59_spill] sm:$0xff]  ;;  %v998_v49 = vpack.c.bf16 %v990_v6, %v986_v44  ;;  %v6123_v8 = vld [vmem:[#allocation76_spill] sm:$0xff] }
 0x443   :  { %v1042_v31 = vsel %vm195_vm2, %v6121_v13, %v1013_v36  ;;  %v1188_v16 = vsel %vm301_vm4, %v6122_v40, %v4167_v47  ;;  %v1176_v41 = vsel %vm301_vm4, %v4175_v19, %v6122_v40  ;;  %v6126_v19 = vld [vmem:[#allocation77_spill] sm:$0xff] }
 0x444   :  { %v996_v56 = vpack.c.bf16 %v988_v1, %v984_v37  ;;  %v1015_v2 = vpop.permute.xlu1 %1014  ;;  %v999_v29 = vpack.c.bf16 %v991_v39, %v987_v50  ;;  %v1057_v33 = vmul.f32 %v1042_v31, %v3623_v55  ;;  %v6125_v1 = vld [vmem:[#allocation16_spill] sm:$0xff]  ;;  %v6127_v31 = vld [vmem:[#allocation17_spill] sm:$0xff] }
 0x445   :  { %v1043_v3 = vsel %vm195_vm2, %v6123_v8, %v1015_v2  ;;  %v1039_v47 = vsel %vm195_vm2, %v1015_v2, %v6124_v30  ;;  %v4715_v39 = vmul.f32 %v1188_v16, %v6125_v1  ;;  %v4724_v40 = vmul.f32 %v1176_v41, %v6127_v31 }
 0x446   :  { %v1061_v50 = vmul.f32 %v1043_v3, %v3623_v55  ;;  %1560 = vmatpush1.bf16.msra.mxu0 %v996_v56  ;;  %1665 = vmatprep.subr.bf16.mxu1 %v999_v29  ;;  %v1029_v37 = vpop.permute.xlu0 %1028  ;;  %v6128_v56 = vld [vmem:[#allocation60_spill] sm:$0xff]  ;;  %v1038_v16 = vsel %vm195_vm2, %v1013_v36, %v6126_v19 }
 0x447   :  { %v1034_v6 = vsel %vm195_vm2, %v6126_v19, %v1029_v37  ;;  %v1046_v44 = vsel %vm195_vm2, %v1029_v37, %v6121_v13  ;;  %1561 = vmatprep.subr.bf16.mxu0 %v1065_v4  ;;  %1666 = vmatpush1.bf16.msra.mxu1 %v998_v49  ;;  %v1189_v2 = vsel %vm301_vm4, %v6128_v56, %v4169_v12  ;;  %v6130_v37 = vld [vmem:[#allocation79_spill] sm:$0xff] }
 0x448   :  { %v1031_v29 = vpop.permute.xlu1 %1030  ;;  %1667 = vmatprep.subr.bf16.mxu1 %v1067_v43  ;;  %v1069_v3 = vpack.c.bf16 %v1061_v50, %v1057_v33  ;;  %v1177_v4 = vsel %vm301_vm4, %v4177_v62, %v6128_v56  ;;  %v1062_v13 = vmul.f32 %v1039_v47, %v3632_v63  ;;  %v1056_v36 = vmul.f32 %v1046_v44, %v3639_v15 }
 0x449   :  { %v1035_v49 = vsel %vm195_vm2, %v6124_v30, %v1031_v29  ;;  %v1047_v12 = vsel %vm195_vm2, %v1031_v29, %v6123_v8  ;;  %v1059_v43 = vmul.f32 %v1034_v6, %v3642_v17  ;;  %v6129_v62 = vpack.c.bf16 %v4558_v20, %v4581_v9 }
 0x44a   :  { %v1060_v33 = vmul.f32 %v1047_v12, %v3639_v15  ;;  %v1063_v41 = vmul.f32 %v1035_v49, %v3642_v17  ;;  %v1085_v47 = vpop.permute.xlu0 %1084  ;;  %v4752_v50 = vmul.f32 %v1189_v2, %v6125_v1  ;;  %v1058_v30 = vmul.f32 %v1038_v16, %v3632_v63  ;;  %v6132_v2 = vld [vmem:[#allocation46_spill] sm:$0xff]  ;;  %v6133_v16 = vld [vmem:[#allocation61_spill] sm:$0xff]  ;;  %v6135_v49 = vld [vmem:[#allocation80_spill] sm:$0xff] }
 0x44b   :  { %1562 = vmatpush1.bf16.msra.mxu0 %v6129_v62  ;;  %v1114_v8 = vsel %vm248_vm3, %v6130_v37, %v1085_v47  ;;  %v6131_v19 = vpack.c.bf16 %v4506_v34, %v4523_v18  ;;  %v4762_v6 = vmul.f32 %v1177_v4, %v6127_v31  ;;  %v1209_v56 = vpack.c.bf16 %v4694_v42, %v4661_v23 }
 0x44c   :  { %1563 = vmatprep.subr.bf16.mxu0 %v1069_v3  ;;  %v1068_v20 = vpack.c.bf16 %v1060_v33, %v1056_v36  ;;  %v1087_v9 = vpop.permute.xlu1 %1086  ;;  %v1071_v44 = vpack.c.bf16 %v1063_v41, %v1059_v43  ;;  %v1252_v29 = vsel %vm354_vm5, %v6133_v16, %v6132_v2  ;;  %v6134_v3 = vld [vmem:[#allocation44_spill] sm:$0xff]  ;;  %v1070_v18 = vpack.c.bf16 %v1062_v13, %v1058_v30  ;;  %v6136_v36 = vld [vmem:[#allocation82_spill] sm:$0xff]  ;;  %v6137_v41 = vld [vmem:[#allocation81_spill] sm:$0xff] }
 0x44d   :  { %1668 = vmatpush1.bf16.msra.mxu1 %v6131_v19  ;;  %v1256_v34 = vsel %vm354_vm5, %v6134_v3, %v6133_v16  ;;  %v1115_v4 = vsel %vm248_vm3, %v6135_v49, %v1087_v9  ;;  %v1129_v12 = vmul.f32 %v1114_v8, %v3661_v45  ;;  %v1111_v23 = vsel %vm248_vm3, %v1087_v9, %v6136_v36  ;;  %v6139_v8 = vld [vmem:[#allocation18_spill] sm:$0xff] }
 0x44e   :  { %v1133_v42 = vmul.f32 %v1115_v4, %v3661_v45  ;;  %1669 = vmatprep.subr.bf16.mxu1 %v1071_v44  ;;  %v1101_v43 = vpop.permute.xlu0 %1100  ;;  %v1208_v33 = vpack.c.bf16 %v4752_v50, %v4715_v39  ;;  %v6138_v30 = vpack.c.bf16 %v4584_v22, %v4609_v32  ;;  %v4794_v19 = vmul.f32 %v1256_v34, %v6139_v8  ;;  %v6141_v9 = vld [vmem:[#allocation62_spill] sm:$0xff]  ;;  %v6143_v32 = vld [vmem:[#allocation45_spill] sm:$0xff] }
 0x44f   :  { %1564 = vmatpush1.bf16.msra.mxu0 %v1068_v20  ;;  %v1106_v13 = vsel %vm248_vm3, %v6137_v41, %v1101_v43  ;;  %v1118_v62 = vsel %vm248_vm3, %v1101_v43, %v6130_v37  ;;  %v6140_v20 = vld [vmem:[#allocation47_spill] sm:$0xff]  ;;  %v1110_v50 = vsel %vm248_vm3, %v1085_v47, %v6137_v41  ;;  %v6142_v37 = vpack.c.bf16 %v4628_v24, %v4623_v11 }
 0x450   :  { %1565 = vmatprep.subr.bf16.mxu0 %v6138_v30  ;;  %v1253_v39 = vsel %vm354_vm5, %v6141_v9, %v6140_v20  ;;  %v1103_v44 = vpop.permute.xlu1 %1102  ;;  %v1141_v22 = vpack.c.bf16 %v1133_v42, %v1129_v12  ;;  %v1257_v16 = vsel %vm354_vm5, %v6143_v32, %v6141_v9  ;;  %v1134_v34 = vmul.f32 %v1111_v23, %v3670_v53  ;;  %v6145_v43 = vld [vmem:[#allocation19_spill] sm:$0xff] }
 0x451   :  { %1670 = vmatpush1.bf16.msra.mxu1 %v1070_v18  ;;  %v1107_v18 = vsel %vm248_vm3, %v6136_v36, %v1103_v44  ;;  %v1119_v47 = vsel %vm248_vm3, %v1103_v44, %v6135_v49  ;;  %v1128_v4 = vmul.f32 %v1118_v62, %v3677_v59  ;;  %v1131_v11 = vmul.f32 %v1106_v13, %v3680_v60  ;;  %v6146_v30 = vld [vmem:[#allocation83_spill] sm:$0xff] }
 0x452   :  { %1671 = vmatprep.subr.bf16.mxu1 %v6142_v37  ;;  %v1132_v24 = vmul.f32 %v1119_v47, %v3677_v59  ;;  %v1135_v12 = vmul.f32 %v1107_v18, %v3680_v60  ;;  %v6144_v42 = vpack.c.bf16 %v4612_v52, %v4620_v21  ;;  %v1157_v23 = vpop.permute.xlu0 %1156  ;;  %v4825_v41 = vmul.f32 %v1252_v29, %v6145_v43  ;;  %v6148_v44 = vld [vmem:[#allocation63_spill] sm:$0xff] }
 0x453   :  { %v1130_v36 = vmul.f32 %v1110_v50, %v3670_v53  ;;  %v1186_v49 = vsel %vm301_vm4, %v6146_v30, %v1157_v23  ;;  %v6147_v13 = vpack.c.bf16 %v4572_v54, %v4598_v14  ;;  %v4835_v62 = vmul.f32 %v1257_v16, %v6139_v8  ;;  %v6149_v54 = vld [vmem:[#allocation84_spill] sm:$0xff]  ;;  %v6150_v18 = vld [vmem:[#allocation87_spill] sm:$0xff] }
 0x454   :  { %1566 = vmatpush1.bf16.msra.mxu0 %v6144_v42  ;;  %v1140_v52 = vpack.c.bf16 %v1132_v24, %v1128_v4  ;;  %v1159_v21 = vpop.permute.xlu1 %1158  ;;  %v1143_v9 = vpack.c.bf16 %v1135_v12, %v1131_v11  ;;  %v1211_v29 = vpack.c.bf16 %v4762_v6, %v4724_v40  ;;  %v4840_v50 = vmul.f32 %v1253_v39, %v6145_v43  ;;  %v6151_v39 = vld [vmem:[#allocation86_spill] sm:$0xff]  ;;  %v6152_v24 = vld [vmem:[#allocation64_spill] sm:$0xff] }
 0x455   :  { %1567 = vmatprep.subr.bf16.mxu0 %v1141_v22  ;;  %1672 = vmatpush1.bf16.msra.mxu1 %v6147_v13  ;;  %v1248_v37 = vsel %vm354_vm5, %v6132_v2, %v6148_v44  ;;  %v1142_v22 = vpack.c.bf16 %v1134_v34, %v1130_v36  ;;  %v1187_v14 = vsel %vm301_vm4, %v6149_v54, %v1159_v21 }
 0x456   :  { %v1201_v16 = vmul.f32 %v1186_v49, %v3699_v38  ;;  %v1183_v47 = vsel %vm301_vm4, %v1159_v21, %v6150_v18  ;;  %v1205_v40 = vmul.f32 %v1187_v14, %v3699_v38  ;;  %1673 = vmatprep.subr.bf16.mxu1 %v1143_v9  ;;  %v1173_v6 = vpop.permute.xlu0 %1172  ;;  %v1260_v2 = vsel %vm354_vm5, %v6148_v44, %v6134_v3  ;;  %v6153_v9 = vld [vmem:[#allocation20_spill] sm:$0xff]  ;;  %v6154_v44 = vld [vmem:[#allocation21_spill] sm:$0xff] }
 0x457   :  { %v1178_v34 = vsel %vm301_vm4, %v6151_v39, %v1173_v6  ;;  %v1190_v4 = vsel %vm301_vm4, %v1173_v6, %v6146_v30  ;;  %v1249_v12 = vsel %vm354_vm5, %v6140_v20, %v6152_v24  ;;  %v1182_v3 = vsel %vm301_vm4, %v1157_v23, %v6151_v39 }
 0x458   :  { %1568 = vmatpush1.bf16.msra.mxu0 %v1140_v52  ;;  %v1175_v42 = vpop.permute.xlu1 %1174  ;;  %v1213_v36 = vpack.c.bf16 %v1205_v40, %v1201_v16  ;;  %v1206_v30 = vmul.f32 %v1183_v47, %v3708_v48  ;;  %v1200_v23 = vmul.f32 %v1190_v4, %v6125_v1  ;;  %v1203_v13 = vmul.f32 %v1178_v34, %v6127_v31  ;;  %v6155_v16 = vld [vmem:[#allocation66_spill] sm:$0xff]  ;;  %v6160_v4 = vld [vmem:[#allocation65_spill] sm:$0xff] }
 0x459   :  { %1569 = vmatprep.subr.bf16.mxu0 %v1209_v56  ;;  %1674 = vmatpush1.bf16.msra.mxu1 %v1142_v22  ;;  %v1261_v56 = vsel %vm354_vm5, %v6152_v24, %v6143_v32  ;;  %v1179_v49 = vsel %vm301_vm4, %v6150_v18, %v1175_v42  ;;  %v1191_v20 = vsel %vm301_vm4, %v1175_v42, %v6149_v54  ;;  %v6159_v34 = vld [vmem:[#allocation50_spill] sm:$0xff] }
 0x45a   :  { %1675 = vmatprep.subr.bf16.mxu1 %v1211_v29  ;;  %v1204_v52 = vmul.f32 %v1191_v20, %v6125_v1  ;;  %v1207_v21 = vmul.f32 %v1179_v49, %v6127_v31  ;;  %v4888_v32 = vpop.permute.xlu0 %1448  ;;  %v4891_v29 = vmul.f32 %v1248_v37, %v6153_v9  ;;  %v4894_v22 = vmul.f32 %v1260_v2, %v6154_v44  ;;  %v6157_v2 = vld [vmem:[#allocation51_spill] sm:$0xff] }
 0x45b   :  { %v1202_v14 = vmul.f32 %v1182_v3, %v3708_v48  ;;  %v4901_v54 = vmul.f32 %v1249_v12, %v6153_v9  ;;  %v1271_v6 = vmul.f32 %v1261_v56, %v6154_v44  ;;  %v1325_v58 = vsel %vm407_vm6, %v6155_v16, %v6157_v2  ;;  %v6161_v12 = vld [vmem:[#allocation48_spill] sm:$0xff]  ;;  %v6162_v56 = vld [vmem:[#allocation22_spill] sm:$0xff] }
 0x45c   :  { %1570 = vmatpush1.bf16.msra.mxu0 %v1208_v33  ;;  %v6156_v33 = vld [vmem:[#allocation49_spill] sm:$0xff]  ;;  %v1212_v37 = vpack.c.bf16 %v1204_v52, %v1200_v23  ;;  %v4907_v47 = vpop.permute.xlu1 %1450  ;;  %v1215_v40 = vpack.c.bf16 %v1207_v21, %v1203_v13  ;;  %v1324_v24 = vsel %vm407_vm6, %v6160_v4, %v6159_v34  ;;  %v1328_v3 = vsel %vm407_vm6, %v6161_v12, %v6160_v4 }
 0x45d   :  { %1571 = vmatprep.subr.bf16.mxu0 %v1213_v36  ;;  %1676 = vmatpush1.bf16.msra.mxu1 %v1210_v57  ;;  %v1329_v18 = vsel %vm407_vm6, %v6156_v33, %v6155_v16  ;;  %v1321_v57 = vsel %vm407_vm6, %v6157_v2, %v6158_v51  ;;  %v1214_v39 = vpack.c.bf16 %v1206_v30, %v1202_v14  ;;  %v6163_v30 = vld [vmem:[#allocation67_spill] sm:$0xff]  ;;  %v6166_v14 = vld [vmem:[#allocation24_spill] sm:$0xff] }
 0x45e   :  { %1677 = vmatprep.subr.bf16.mxu1 %v1215_v40  ;;  %v1229_v42 = vpop.permute.xlu0 %1228  ;;  %v1281_v36 = vpack.c.bf16 %v4840_v50, %v4825_v41  ;;  %v4929_v49 = vmul.f32 %v1329_v18, %v6162_v56  ;;  %v1320_v20 = vsel %vm407_vm6, %v6159_v34, %v6163_v30  ;;  %v1333_v23 = vsel %vm407_vm6, %v6158_v51, %v6156_v33  ;;  %v6165_v50 = vld [vmem:[#allocation23_spill] sm:$0xff]  ;;  %v6169_v18 = vld [vmem:[#allocation52_spill] sm:$0xff] }
 0x45f   :  { %v6164_v13 = vpack.c.bf16 %v4037_v27, %v4033_v46  ;;  %v1282_v41 = vpack.c.bf16 %v4901_v54, %v4891_v29  ;;  %v4945_v52 = vmul.f32 %v1325_v58, %v6165_v50  ;;  %v1332_v21 = vsel %vm407_vm6, %v6163_v30, %v6161_v12  ;;  %v6168_v54 = vld [vmem:[#allocation69_spill] sm:$0xff]  ;;  %v6175_v12 = vld [vmem:[#allocation38_spill] sm:$0xff] }
 0x460   :  { %1572 = vmatpush1.bf16.msra.mxu0 %v1212_v37  ;;  %v4952_v16 = vmul.f32 %v1321_v57, %v6166_v14  ;;  %v4954_v33 = vpop.permute.xlu1 %1458  ;;  %v6167_v46 = vpack.c.bf16 %v4045_v61, %v4041_v0  ;;  %v4960_v27 = vmul.f32 %v1328_v3, %v6162_v56  ;;  %v4963_v29 = vmul.f32 %v1324_v24, %v6165_v50  ;;  %v6170_v58 = vld [vmem:[#allocation25_spill] sm:$0xff]  ;;  %v6171_v0 = vld [vmem:[#allocation54_spill] sm:$0xff]  ;;  %v6174_v24 = vld [vmem:[#allocation39_spill] sm:$0xff] }
 0x461   :  { %1573 = vmatprep.subr.bf16.mxu0 %v6164_v13  ;;  %1678 = vmatpush1.bf16.msra.mxu1 %v1214_v39  ;;  %v1400_v37 = vsel %vm460_vm7, %v6169_v18, %v6168_v54  ;;  %v1283_v40 = vpack.c.bf16 %v1271_v6, %v4894_v22  ;;  %v4971_v2 = vmul.f32 %v1320_v20, %v6166_v14  ;;  %v6172_v57 = vld [vmem:[#allocation70_spill] sm:$0xff]  ;;  %v6173_v39 = vld [vmem:[#allocation53_spill] sm:$0xff]  ;;  %v6186_v6 = vld [vmem:[#allocation88_spill] sm:$0xff] }
 0x462   :  { %1679 = vmatprep.subr.bf16.mxu1 %v6167_v46  ;;  %v4974_v51 = vmul.f32 %v1333_v23, %v6170_v58  ;;  %v1396_v61 = vsel %vm460_vm7, %v6168_v54, %v6171_v0  ;;  %v1401_v34 = vsel %vm460_vm7, %v6173_v39, %v6172_v57  ;;  %v1245_v4 = vpop.permute.xlu0 %1244  ;;  %v6176_v22 = vpack.c.bf16 %v6174_v24, %v6175_v12  ;;  %v6179_v46 = vld [vmem:[#allocation26_spill] sm:$0xff]  ;;  %v6185_v13 = vld [vmem:[#allocation89_spill] sm:$0xff] }
 0x463   :  { %v4990_v3 = vmul.f32 %v1332_v21, %v6170_v58  ;;  %v1254_v30 = vsel %vm354_vm5, %v1229_v42, %v4471_v25  ;;  %v6177_v20 = vpack.c.bf16 %v4248_v7, %v4239_v28  ;;  %v6178_v23 = vpack.c.bf16 %v3965_v26, %v3959_v5  ;;  %v6180_v21 = vld [vmem:[#allocation55_spill] sm:$0xff] }
 0x464   :  { %1574 = vmatpush1.bf16.msra.mxu0 %v6176_v22  ;;  %v5004_v54 = vmul.f32 %v1400_v37, %v6179_v46  ;;  %v1397_v24 = vsel %vm460_vm7, %v6172_v57, %v6180_v21  ;;  %v1231_v12 = vpop.permute.xlu1 %1230  ;;  %v6181_v22 = vld [vmem:[#allocation58_spill] sm:$0xff]  ;;  %v1353_v7 = vpack.c.bf16 %v4945_v52, %v4963_v29  ;;  %v6183_v5 = vld [vmem:[#allocation27_spill] sm:$0xff]  ;;  %v1273_v52 = vmul.f32 %v1254_v30, %v6145_v43 }
 0x465   :  { %1575 = vmatprep.subr.bf16.mxu0 %v6177_v20  ;;  %1680 = vmatpush1.bf16.msra.mxu1 %v6178_v23  ;;  %v6182_v28 = vpack.c.bf16 %v4274_v35, %v6181_v22  ;;  %v5016_v26 = vmul.f32 %v1396_v61, %v6183_v5  ;;  %v5019_v20 = vmul.f32 %v1401_v34, %v6179_v46  ;;  %v6184_v37 = vld [vmem:[#allocation90_spill] sm:$0xff]  ;;  %v6187_v22 = vld [vmem:[#allocation41_spill] sm:$0xff]  ;;  %v6188_v34 = vld [vmem:[#allocation40_spill] sm:$0xff] }
 0x466   :  { %v1255_v23 = vsel %vm354_vm5, %v1231_v12, %v6184_v37  ;;  %v1259_v57 = vsel %vm354_vm5, %v6185_v13, %v1231_v12  ;;  %v1258_v35 = vsel %vm354_vm5, %v6186_v6, %v1229_v42  ;;  %v1301_v61 = vpop.permute.xlu0 %1300  ;;  %v1355_v11 = vpack.c.bf16 %v4974_v51, %v4990_v3  ;;  %v6190_v30 = vld [vmem:[#allocation43_spill] sm:$0xff] }
 0x467   :  { %1681 = vmatprep.subr.bf16.mxu1 %v6182_v28  ;;  %v1277_v29 = vmul.f32 %v1255_v23, %v6145_v43  ;;  %v6189_v28 = vpack.c.bf16 %v6187_v22, %v6188_v34  ;;  %v5038_v31 = vmul.f32 %v1397_v24, %v6183_v5  ;;  %v1250_v12 = vsel %vm354_vm5, %v4471_v25, %v1245_v4  ;;  %v6191_v23 = vld [vmem:[#allocation42_spill] sm:$0xff]  ;;  %v6193_v22 = vld [vmem:[#allocation71_spill] sm:$0xff]  ;;  %v6195_v34 = vld [vmem:[#allocation28_spill] sm:$0xff] }
 0x468   :  { %v1262_v42 = vsel %vm354_vm5, %v1245_v4, %v6186_v6  ;;  %v6192_v43 = vpack.c.bf16 %v6190_v30, %v6191_v23  ;;  %v1392_v51 = vsel %vm460_vm7, %v6171_v0, %v6193_v22  ;;  %v1404_v3 = vsel %vm460_vm7, %v6193_v22, %v6169_v18  ;;  %v1247_v24 = vpop.permute.xlu1 %1246 }
 0x469   :  { %1576 = vmatpush1.bf16.msra.mxu0 %v6189_v28  ;;  %v1276_v25 = vmul.f32 %v1259_v57, %v6139_v8  ;;  %v1285_v4 = vpack.c.bf16 %v1277_v29, %v1273_v52  ;;  %v1251_v6 = vsel %vm354_vm5, %v6184_v37, %v1247_v24  ;;  %v1263_v0 = vsel %vm354_vm5, %v1247_v24, %v6185_v13  ;;  %v6196_v37 = vld [vmem:[#allocation72_spill] sm:$0xff] }
 0x46a   :  { %1577 = vmatprep.subr.bf16.mxu0 %v1281_v36  ;;  %1682 = vmatpush1.bf16.msra.mxu1 %v6192_v43  ;;  %v1424_v36 = vpack.c.bf16 %v5019_v20, %v5004_v54  ;;  %v1272_v43 = vmul.f32 %v1258_v35, %v6139_v8  ;;  %v1274_v18 = vmul.f32 %v1250_v12, %v6153_v9  ;;  %v1317_v29 = vpop.permute.xlu0 %1316  ;;  %v6197_v12 = vld [vmem:[#allocation93_spill] sm:$0xff] }
 0x46b   :  { %1683 = vmatprep.subr.bf16.mxu1 %v1283_v40  ;;  %v1275_v57 = vmul.f32 %v1262_v42, %v6154_v44  ;;  %v1278_v40 = vmul.f32 %v1251_v6, %v6153_v9  ;;  %v1279_v52 = vmul.f32 %v1263_v0, %v6154_v44  ;;  %v6194_v35 = vpack.c.bf16 %v4835_v62, %v4794_v19  ;;  %v6199_v6 = vld [vmem:[#allocation91_spill] sm:$0xff]  ;;  %v6200_v0 = vld [vmem:[#allocation94_spill] sm:$0xff] }
 0x46c   :  { %v5075_v28 = vmul.f32 %v1392_v51, %v6195_v34  ;;  %v1393_v13 = vsel %vm460_vm7, %v6180_v21, %v6196_v37  ;;  %v1326_v42 = vsel %vm407_vm6, %v1301_v61, %v6197_v12  ;;  %v1405_v19 = vsel %vm460_vm7, %v6196_v37, %v6173_v39  ;;  %v1303_v23 = vpop.permute.xlu1 %1302  ;;  %v6198_v51 = vld [vmem:[#allocation29_spill] sm:$0xff] }
 0x46d   :  { %1578 = vmatpush1.bf16.msra.mxu0 %v6194_v35  ;;  %v1284_v62 = vpack.c.bf16 %v1276_v25, %v1272_v43  ;;  %v1286_v30 = vpack.c.bf16 %v1278_v40, %v1274_v18  ;;  %v1287_v22 = vpack.c.bf16 %v1279_v52, %v1275_v57  ;;  %v1411_v24 = vmul.f32 %v1404_v3, %v6198_v51  ;;  %v6202_v40 = vld [vmem:[#allocation73_spill] sm:$0xff]  ;;  %v6203_v52 = vld [vmem:[#allocation56_spill] sm:$0xff] }
 0x46e   :  { %1579 = vmatprep.subr.bf16.mxu0 %v1285_v4  ;;  %1684 = vmatpush1.bf16.msra.mxu1 %v1282_v41  ;;  %v1330_v21 = vsel %vm407_vm6, %v6199_v6, %v1301_v61  ;;  %v1327_v4 = vsel %vm407_vm6, %v1303_v23, %v6200_v0  ;;  %v6201_v41 = vld [vmem:[#allocation92_spill] sm:$0xff]  ;;  %v1345_v39 = vmul.f32 %v1326_v42, %v6165_v50  ;;  %v1373_v43 = vpop.permute.xlu0 %1372 }
 0x46f   :  { %v1331_v35 = vsel %vm407_vm6, %v6201_v41, %v1303_v23  ;;  %v1322_v25 = vsel %vm407_vm6, %v6197_v12, %v1317_v29  ;;  %v1349_v3 = vmul.f32 %v1327_v4, %v6165_v50  ;;  %1685 = vmatprep.subr.bf16.mxu1 %v1287_v22  ;;  %v5104_v61 = vmul.f32 %v1393_v13, %v6195_v34  ;;  %v6204_v22 = vld [vmem:[#allocation97_spill] sm:$0xff]  ;;  %v6206_v4 = vld [vmem:[#allocation74_spill] sm:$0xff] }
 0x470   :  { %v1415_v18 = vmul.f32 %v1405_v19, %v6198_v51  ;;  %v1334_v57 = vsel %vm407_vm6, %v1317_v29, %v6199_v6  ;;  %v5114_v37 = vsel %vm513_vm8, %v6203_v52, %v6202_v40  ;;  %v1348_v12 = vmul.f32 %v1331_v35, %v6162_v56  ;;  %v1319_v42 = vpop.permute.xlu1 %1318 }
 0x471   :  { %1580 = vmatpush1.bf16.msra.mxu0 %v1284_v62  ;;  %v1357_v13 = vpack.c.bf16 %v1349_v3, %v1345_v39  ;;  %v1425_v19 = vpack.c.bf16 %v5038_v31, %v5016_v26  ;;  %v1344_v62 = vmul.f32 %v1330_v21, %v6162_v56  ;;  %v1346_v29 = vmul.f32 %v1322_v25, %v6166_v14 }
 0x472   :  { %1581 = vmatprep.subr.bf16.mxu0 %v1353_v7  ;;  %1686 = vmatpush1.bf16.msra.mxu1 %v1286_v30  ;;  %v1323_v7 = vsel %vm407_vm6, %v6200_v0, %v1319_v42  ;;  %v1335_v30 = vsel %vm407_vm6, %v1319_v42, %v6201_v41  ;;  %v1347_v23 = vmul.f32 %v1334_v57, %v6170_v58  ;;  %v1389_v6 = vpop.permute.xlu0 %1388  ;;  %v6207_v41 = vld [vmem:[#allocation57_spill] sm:$0xff] }
 0x473   :  { %1687 = vmatprep.subr.bf16.mxu1 %v1355_v11  ;;  %v1398_v11 = vsel %vm460_vm7, %v1373_v43, %v6204_v22  ;;  %v1350_v31 = vmul.f32 %v1323_v7, %v6166_v14  ;;  %v1351_v26 = vmul.f32 %v1335_v30, %v6170_v58  ;;  %v6205_v21 = vpack.c.bf16 %v4929_v49, %v4960_v27  ;;  %v6210_v7 = vld [vmem:[#allocation98_spill] sm:$0xff]  ;;  %v5170_v30 = vld [vmem:[#allocation2 + $0x28] ss:$0 sm:$0xff] }
 0x474   :  { %v1426_v0 = vpack.c.bf16 %v5104_v61, %v5075_v28  ;;  %v1473_v35 = vsel %vm513_vm8, %v6207_v41, %v6206_v4  ;;  %v6208_v39 = vpack.c.bf16 %v4952_v16, %v4971_v2  ;;  %v1427_v25 = vpack.c.bf16 %v1415_v18, %v1411_v24  ;;  %v1375_v57 = vpop.permute.xlu1 %1374  ;;  %v6209_v61 = vld [vmem:[#allocation95_spill] sm:$0xff]  ;;  %v6211_v2 = vld [vmem:[#allocation96_spill] sm:$0xff] }
 0x475   :  { %1582 = vmatpush1.bf16.msra.mxu0 %v6205_v21  ;;  %v1469_v49 = vsel %vm513_vm8, %v6206_v4, %v4907_v47  ;;  %v1356_v27 = vpack.c.bf16 %v1348_v12, %v1344_v62  ;;  %v1358_v3 = vpack.c.bf16 %v1350_v31, %v1346_v29  ;;  %v1359_v28 = vpack.c.bf16 %v1351_v26, %v1347_v23 }
 0x476   :  { %1583 = vmatprep.subr.bf16.mxu0 %v1357_v13  ;;  %1688 = vmatpush1.bf16.msra.mxu1 %v6208_v39  ;;  %v1402_v42 = vsel %vm460_vm7, %v6209_v61, %v1373_v43  ;;  %v1417_v13 = vmul.f32 %v1398_v11, %v6183_v5  ;;  %v1399_v16 = vsel %vm460_vm7, %v1375_v57, %v6210_v7  ;;  %v1457_v62 = vpop.permute.xlu0 %1456  ;;  %v5193_v39 = vld [vmem:[#allocation2 + $0x38] ss:$0 sm:$0xff] }
 0x477   :  { %v1403_v24 = vsel %vm460_vm7, %v6211_v2, %v1375_v57  ;;  %v1394_v18 = vsel %vm460_vm7, %v6204_v22, %v1389_v6  ;;  %v1406_v12 = vsel %vm460_vm7, %v1389_v6, %v6209_v61  ;;  %v1421_v43 = vmul.f32 %v1399_v16, %v6183_v5  ;;  %1689 = vmatprep.subr.bf16.mxu1 %v1359_v28  ;;  %v3147_v57 = vld [vmem:[#allocation2 + $0x20] ss:$0 sm:$0xff] }
 0x478   :  { %v1468_v29 = vsel %vm513_vm8, %v6202_v40, %v4888_v32  ;;  %v1485_v23 = vmul.f32 %v5170_v30, %v1469_v49  ;;  %v1476_v22 = vsel %vm513_vm8, %v1457_v62, %v6203_v52  ;;  %v1477_v11 = vsel %vm513_vm8, %v4954_v33, %v6207_v41  ;;  %v1391_v40 = vpop.permute.xlu1 %1390 }
 0x479   :  { %1584 = vmatpush1.bf16.msra.mxu0 %v1356_v27  ;;  %v1416_v31 = vmul.f32 %v1402_v42, %v6179_v46  ;;  %v1420_v26 = vmul.f32 %v1403_v24, %v6179_v46  ;;  %v1429_v6 = vpack.c.bf16 %v1421_v43, %v1417_v13  ;;  %v1418_v21 = vmul.f32 %v1394_v18, %v6195_v34  ;;  %v3148_v24 = vld [vmem:[#allocation2 + $0x30] ss:$0 sm:$0xff] }
 0x47a   :  { %1585 = vmatprep.subr.bf16.mxu0 %v1425_v19  ;;  %1690 = vmatpush1.bf16.msra.mxu1 %v1358_v3  ;;  %v1419_v4 = vmul.f32 %v1406_v12, %v6198_v51  ;;  %v1395_v52 = vsel %vm460_vm7, %v6210_v7, %v1391_v40  ;;  %v1407_v19 = vsel %vm460_vm7, %v1391_v40, %v6211_v2  ;;  %v1437_v3 = vpop.permute.xlu0 %1436 }
 0x47b   :  { %1691 = vmatprep.subr.bf16.mxu1 %v1427_v25  ;;  %v1464_v41 = vsel %vm513_vm8, %v4888_v32, %v1457_v62  ;;  %v1483_v25 = vmul.f32 %v5193_v39, %v1476_v22  ;;  %v1422_v49 = vmul.f32 %v1395_v52, %v6195_v34  ;;  %v1423_v27 = vmul.f32 %v1407_v19, %v6198_v51 }
 0x47c   :  { %v1484_v28 = vmul.f32 %v3147_v57, %v1473_v35  ;;  %v1481_v61 = vmul.f32 %v5170_v30, %v1468_v29  ;;  %v1465_v32 = vsel %vm513_vm8, %v4907_v47, %v4954_v33  ;;  %v1487_v42 = vmul.f32 %v5193_v39, %v1477_v11  ;;  %v1439_v16 = vpop.permute.xlu1 %1438 }
 0x47d   :  { %1586 = vmatpush1.bf16.msra.mxu0 %v1424_v36  ;;  %v1428_v13 = vpack.c.bf16 %v1420_v26, %v1416_v31  ;;  %v1430_v7 = vpack.c.bf16 %v1422_v49, %v1418_v21  ;;  %v1431_v2 = vpack.c.bf16 %v1423_v27, %v1419_v4  ;;  %v1482_v54 = vmul.f32 %v3148_v24, %v1464_v41  ;;  %v3096_v36 = vld [vmem:[%s5898_s3] ss:$12 sps:$4 sm:$0xff]   ;;  %v3101_v26 = vld [vmem:[%s5898_s3 + $0x18] ss:$12 sps:$4 sm:$0xff]  }
 0x47e   :  { %1587 = vmatprep.subr.bf16.mxu0 %v1429_v6  ;;  %1692 = vmatpush1.bf16.msra.mxu1 %v1426_v0  ;;  %v1497_v20 = vpack.c.bf16 %v1485_v23, %v1481_v61  ;;  %v1480_v35 = vmul.f32 %v3147_v57, %v5114_v37  ;;  %v1445_v18 = vpop.permute.xlu0 %1444  ;;  %v1499_v47 = vpack.c.bf16 %v1487_v42, %v1483_v25  ;;  %v3099_v0 = vld [vmem:[%s5898_s3 + $0x1c] ss:$12 sps:$4 sm:$0xff]  }
 0x47f   :  { %1693 = vmatprep.subr.bf16.mxu1 %v1431_v2  ;;  %v1486_v33 = vmul.f32 %v3148_v24, %v1465_v32  ;;  %v1474_v37 = vsel %vm513_vm8, %v1437_v3, %v1445_v18  ;;  %v3102_v2 = vld [vmem:[%s5898_s3 + $0x8] ss:$12 sps:$4 sm:$0xff]  }
 0x480   :  { %v1496_v12 = vpack.c.bf16 %v1484_v28, %v1480_v35  ;;  %v1455_v43 = vpop.permute.xlu1 %1454  ;;  %v1488_v40 = vmul.f32 %v3147_v57, %v1474_v37 }
 0x481   :  { %1588 = vmatpush1.bf16.msra.mxu0 %v1428_v13  ;;  %v1498_v62 = vpack.c.bf16 %v1486_v33, %v1482_v54 }
 0x482   :  { %1610 = vmatprep.subr.bf16.mxu0 %v1497_v20  ;;  %1694 = vmatpush1.bf16.msra.mxu1 %v1430_v7  ;;  %v1453_v29 = vpop.permute.xlu0 %1452 }
 0x483   :  { %1716 = vmatprep.subr.bf16.mxu1 %v1499_v47  ;;  %v1470_v23 = vsel %vm513_vm8, %v1445_v18, %v1453_v29 }
 0x484   :  { %1590 = vmatmul.mubr.bf16.vlgmr.msra.gmra.mrb[12].mxu0 %v3096_v36  ;;  %v1447_v22 = vpop.permute.xlu1 %1446  ;;  %v1489_v6 = vmul.f32 %v5170_v30, %v1470_v23 }
 0x485   :  { %1696 = vmatmul.mubr.bf16.vlgmr.msra.gmra.mrb[12].mxu1 %v3096_v36  ;;  %1611 = vmatpush1.bf16.msra.mxu0 %v1496_v12  ;;  %v1471_v11 = vsel %vm513_vm8, %v1447_v22, %v1455_v43  ;;  %v1475_v31 = vsel %vm513_vm8, %v1439_v16, %v1447_v22 }
 0x486   :  { %1717 = vmatpush1.bf16.msra.mxu1 %v1498_v62  ;;  %1599 = vmatprep.mubr.bf16.mxu0 %v3099_v0  ;;  %v1492_v21 = vmul.f32 %v3147_v57, %v1475_v31  ;;  %v1493_v4 = vmul.f32 %v5170_v30, %v1471_v11  ;;  %v1461_v52 = vpop.permute.xlu0 %1460 }
 0x487   :  { %1705 = vmatprep.mubr.bf16.mxu1 %v3099_v0  ;;  %v1466_v19 = vsel %vm513_vm8, %v1453_v29, %v1461_v52  ;;  %v1478_v41 = vsel %vm513_vm8, %v1461_v52, %v1437_v3  ;;  %v6212_v3 = vmov 0  }
 0x488   :  { %v1500_v25 = vpack.c.bf16 %v1492_v21, %v1488_v40  ;;  %v1463_v49 = vpop.permute.xlu1 %1462  ;;  %v1501_v27 = vpack.c.bf16 %v1493_v4, %v1489_v6  ;;  %v1490_v28 = vmul.f32 %v3148_v24, %v1466_v19  ;;  %v1491_v30 = vmul.f32 %v5193_v39, %v1478_v41 }
 0x489   :  { %v1467_v61 = vsel %vm513_vm8, %v1455_v43, %v1463_v49  ;;  %v1479_v32 = vsel %vm513_vm8, %v1463_v49, %v1439_v16 }
 0x48a   :  { %v1494_v57 = vmul.f32 %v3148_v24, %v1467_v61  ;;  %v1495_v42 = vmul.f32 %v5193_v39, %v1479_v32  ;;  %1612 = vmatprep.subr.bf16.mxu0 %v1501_v27  ;;  %v3103_v39 = vld [vmem:[%s5898_s3 + $0x20] ss:$12 sps:$4 sm:$0xff]   ;;  %s3270_s3 = smov 125  }
 0x48b   :  { %1613 = vmatpush1.bf16.msra.mxu0 %v1500_v25 }
 0x48c   :  { %1600 = vmatmul.mubr.bf16.gmra.mrb[16].mxu0 %v3101_v26  ;;  %v1502_v13 = vpack.c.bf16 %v1494_v57, %v1490_v28  ;;  %v1503_v7 = vpack.c.bf16 %v1495_v42, %v1491_v30 }
 0x48d   :  { %1706 = vmatmul.mubr.bf16.gmra.mrb[16].mxu1 %v3101_v26  ;;  %1642 = vmatprep.mubr.bf16.mxu0 %v6212_v3 }
 0x48e   :  { %1748 = vmatprep.mubr.bf16.mxu1 %v6212_v3  ;;  %1718 = vmatprep.subr.bf16.mxu1 %v1503_v7 }
 0x48f   :  { %1719 = vmatpush1.bf16.msra.mxu1 %v1502_v13 }
 0x494   :  { %2956 = vmatmul.mubr.msk.bf16.vlgmr.msra.gmra.mrb[12].mxu0 %vm1550_vm9, %v3102_v2 }
 0x495   :  { %2958 = vmatmul.mubr.msk.bf16.vlgmr.msra.gmra.mrb[12].mxu1 %vm1550_vm9, %v3102_v2  ;;  %1652 = vmatprep.mubr.bf16.mxu0 %v6212_v3 }
 0x496   :  { %1758 = vmatprep.mubr.bf16.mxu1 %v6212_v3 }
 0x497   :  { %v1506_v33 = vpop.permute.xlu0 %1505 }
 0x499   :  { %v1510_v24 = vpop.permute.xlu1 %1509 }
 0x49b   :  { %v1518_v62 = vpop.permute.xlu0 %1517 }
 0x49c   :  { %2957 = vmatmul.mubr.msk.bf16.gmra.mrb[16].mxu0 %vm1550_vm9, %v3103_v39 }
 0x49d   :  { %2959 = vmatmul.mubr.msk.bf16.gmra.mrb[16].mxu1 %vm1550_vm9, %v3103_v39  ;;  %v1514_v12 = vpop.permute.xlu1 %1513 }
 0x567   :  { %v1644_v16 = vpop.f32.mrb[12].mxu0 }
 0x568   :  { %v1646_v54 = vpop.f32.mrb[13].mxu0  ;;  %v1750_v20 = vpop.f32.mrb[12].mxu1  ;;  %v3014_v43 = vadd.f32 %v1644_v16, %v1506_v33 }
 0x569   :  { %v1648_v36 = vpop.f32.mrb[14].mxu0  ;;  %v1752_v35 = vpop.f32.mrb[13].mxu1  ;;  %v3015_v37 = vadd.f32 %v1646_v54, %v1506_v33  ;;  %v3022_v23 = vadd.f32 %v1750_v20, %v1506_v33 }
 0x56a   :  { %v1650_v18 = vpop.f32.mrb[15].mxu0  ;;  %v1754_v47 = vpop.f32.mrb[14].mxu1  ;;  %v3016_v22 = vadd.f32 %v1648_v36, %v1510_v24  ;;  %v3023_v40 = vadd.f32 %v1752_v35, %v1506_v33  ;;  %v1777_v33 = vld [vmem:[#allocation7] sm:$0xff] }
 0x56b   :  { %v1756_v0 = vpop.f32.mrb[15].mxu1  ;;  %v3017_v6 = vadd.f32 %v1650_v18, %v1510_v24  ;;  %v3024_v41 = vadd.f32 %v1754_v47, %v1510_v24  ;;  %2996 = vmatprep.mubr.msk.f32.mxu0 %vm569_vm0, %v1777_v33  ;;  %3003 = vmatprep.mubr.msk.f32.mxu1 %vm569_vm0, %v1777_v33 }
 0x56c   :  { %v3025_v7 = vadd.f32 %v1756_v0, %v1510_v24  ;;  %v6213_v0 = vld [vmem:[#allocation85_spill] sm:$0xff] }
 0x56f   :  { %v1654_v29 = vpop.f32.mrb[16].mxu0 }
 0x570   :  { %v3018_v11 = vadd.f32 %v1654_v29, %v1514_v12  ;;  %v1656_v31 = vpop.f32.mrb[17].mxu0  ;;  %v1760_v26 = vpop.f32.mrb[16].mxu1 }
 0x571   :  { %v3019_v21 = vadd.f32 %v1656_v31, %v1514_v12  ;;  %v3026_v4 = vadd.f32 %v1760_v26, %v1514_v12  ;;  %v1658_v52 = vpop.f32.mrb[18].mxu0  ;;  %v1762_v19 = vpop.f32.mrb[17].mxu1 }
 0x572   :  { %v5247_v25 = vmul.f32 %v3018_v11, %v3014_v43  ;;  %v3020_v49 = vadd.f32 %v1658_v52, %v1518_v62  ;;  %v3027_v27 = vadd.f32 %v1762_v19, %v1514_v12  ;;  %v1660_v28 = vpop.f32.mrb[19].mxu0  ;;  %v1764_v61 = vpop.f32.mrb[18].mxu1  ;;  %v5277_v12 = vld [vmem:[%s5902_s7] sm:$0xff] }
 0x573   :  { %v5249_v32 = vmul.f32 %v3019_v21, %v3015_v37  ;;  %v5251_v30 = vmul.f32 %v3026_v4, %v3022_v23  ;;  %v3021_v57 = vadd.f32 %v1660_v28, %v1518_v62  ;;  %v3028_v42 = vadd.f32 %v1764_v61, %v1518_v62  ;;  %v1766_v13 = vpop.f32.mrb[19].mxu1 }
 0x574   :  { %v5253_v2 = vmul.f32 %v3020_v49, %v3016_v22  ;;  %v5255_v39 = vmul.f32 %v3027_v27, %v3023_v40  ;;  %v3029_v16 = vadd.f32 %v1766_v13, %v1518_v62  ;;  %v1778_v40 = vld [vmem:[#allocation7 + $0x8] sm:$0xff] }
 0x575   :  { %v5257_v54 = vmul.f32 %v3021_v57, %v3017_v6  ;;  %v5259_v20 = vmul.f32 %v3028_v42, %v3024_v41  ;;  %v1779_v36 = vadd.f32 %v5249_v32, %v5247_v25  ;;  %v3271_v42 = vmov 4   ;;  %v5287_v13 = vld [vmem:[%s5902_s7 + $0x8] sm:$0xff] }
 0x576   :  { %v5263_v35 = vmul.f32 %v3029_v16, %v3025_v7  ;;  %v1891_v47 = vadd.f32 %v5255_v39, %v5251_v30  ;;  %v3272_v7 = vmov 8  }
 0x577   :  { %1780 = vadd.xlane.f32.xlu1 %v1779_v36  ;;  %v1782_v18 = vadd.f32 %v5257_v54, %v5253_v2 }
 0x578   :  { %v1894_v24 = vadd.f32 %v5263_v35, %v5259_v20 }
 0x579   :  { %1783 = vadd.xlane.f32.xlu0 %v1782_v18 }
 0x57b   :  { %1895 = vadd.xlane.f32.xlu1 %v1894_v24 }
 0x57d   :  { %1892 = vadd.xlane.f32.xlu0 %v1891_v47 }
 0x58c   :  { %1871 = vrot.lane.b32.xlu1 %v6213_v0, %s3270_s3 }
 0x593   :  { %1869 = vrot.lane.b32.xlu0 %v5277_v12, %s3270_s3 }
 0x604   :  { %v1781_v43 = vpop.xlane.xlu1 %1780 }
 0x605   :  { %v1786_v29 = vmul.f32 0.00390625, %v1781_v43 }
 0x606   :  { %v1784_v62 = vpop.xlane.xlu0 %1783 }
 0x607   :  { %v1787_v37 = vmul.f32 0.00390625, %v1784_v62 }
 0x608   :  { %v1896_v23 = vpop.xlane.xlu1 %1895 }
 0x609   :  { %v3006_v22 = vpack.c.bf16 %v1787_v37, %v1786_v29  ;;  %v1898_v31 = vmul.f32 0.00390625, %v1896_v23  ;;  %v3104_v29 = vld [vmem:[%s5900_s5 + $0x10] sm:$0xff]  }
 0x60a   :  { %v1893_v11 = vpop.xlane.xlu0 %1892 }
 0x60b   :  { %v1897_v26 = vmul.f32 0.00390625, %v1893_v11  ;;  %3007 = vmatprep.subr.bf16.mxu0 %v3006_v22  ;;  %v3273_v11 = vmov 5  }
 0x60c   :  { %3009 = vmatpush3.bf16.msra.mxu0 %v3006_v22  ;;  %v1872_v21 = vpop.permute.xlu1 %1871 }
 0x60d   :  { %v3010_v6 = vpack.c.bf16 %v1898_v31, %v1897_v26 }
 0x60e   :  { %v1870_v4 = vpop.permute.xlu0 %1869 }
 0x60f   :  { %2997 = vmatmul.mubr.msk.f32.vlgmr.msra.gmra.mrb[20].mxu0 %vm569_vm0, %v1778_v40  ;;  %3011 = vmatprep.subr.bf16.mxu1 %v3010_v6 }
 0x610   :  { %3013 = vmatpush3.bf16.msra.mxu1 %v3010_v6  ;;  %2042 = vmatprep.mubr.bf16.mxu0 %v6212_v3 }
 0x613   :  { %3004 = vmatmul.mubr.msk.f32.vlgmr.msra.gmra.mrb[20].mxu1 %vm569_vm0, %v1778_v40 }
 0x614   :  { %2085 = vmatprep.mubr.bf16.mxu1 %v6212_v3 }
 0x6e2   :  { %v2998_v52 = vpop.f32.mrb[20].mxu0 }
 0x6e3   :  { %v1876_v19 = vadd.f32 %v2998_v52, %v1872_v21  ;;  %v1860_v41 = vpop.f32.mrb[21].mxu0 }
 0x6e4   :  { %v1875_v49 = vadd.f32 %v1870_v4, %v1860_v41 }
 0x6e5   :  { %1884 = vperm.xlu0 %3078, %v1876_v19  }
 0x6e6   :  { %1879 = vperm.xlu1 %3079, %v1875_v49   ;;  %v3005_v27 = vpop.f32.mrb[20].mxu1 }
 0x6e7   :  { %v1965_v28 = vpop.f32.mrb[21].mxu1  ;;  %v1975_v57 = vadd.f32 %v3005_v27, %v1872_v21 }
 0x6e8   :  { %v1974_v61 = vadd.f32 %v1965_v28, %v1870_v4 }
 0x6e9   :  { %3080 = vset.pattern.permute.xlu0 %v3271_v42 }
 0x6ea   :  { %1978 = vperm.xlu1 %3079, %v1974_v61   ;;  %1995 = vperm.xlu0 %3080, %v5277_v12   ;;  %v6214_v61 = vld [vmem:[#allocation30_spill] sm:$0xff] }
 0x6ee   :  { %1983 = vperm.xlu1 %3079, %v1975_v57   ;;  %3083 = vset.pattern.permute.xlu0 %v3272_v7 }
 0x6ef   :  { %2101 = vperm.xlu0 %3083, %v5287_v13  }
 0x6f2   :  { %3081 = vset.pattern.permute.xlu1 %v3271_v42 }
 0x6f3   :  { %1999 = vperm.xlu1 %3081, %v5287_v13   ;;  %3085 = vset.pattern.permute.xlu0 %v3273_v11 }
 0x6f7   :  { %3082 = vset.pattern.permute.xlu1 %v3272_v7  ;;  %v6215_v7 = vld [vmem:[#allocation31_spill] sm:$0xff] }
 0x6f8   :  { %2097 = vperm.xlu1 %3082, %v5277_v12  }
 0x6fc   :  { %3084 = vset.pattern.permute.xlu1 %v3273_v11 }
 0x6fd   :  { %2233 = vperm.xlu1 %3084, %v5277_v12  }
 0x701   :  { %2237 = vperm.xlu1 %3084, %v5287_v13  }
 0x764   :  { %v1885_v16 = vpop.permute.xlu0 %1884 }
 0x765   :  { %v1889_v36 = vmul.f32 %v1885_v16, %v5253_v2  ;;  %v1890_v18 = vmul.f32 %v1885_v16, %v5257_v54  ;;  %v1880_v24 = vpop.permute.xlu1 %1879 }
 0x766   :  { %v1887_v47 = vmul.f32 %v1880_v24, %v5247_v25  ;;  %v1888_v33 = vmul.f32 %v1880_v24, %v5249_v32 }
 0x768   :  { %v1990_v0 = vpack.c.bf16 %v1889_v36, %v1887_v47  ;;  %v1991_v43 = vpack.c.bf16 %v1890_v18, %v1888_v33  ;;  %v6216_v18 = vld [vmem:[#allocation32_spill] sm:$0xff]  ;;  %v6217_v47 = vld [vmem:[#allocation33_spill] sm:$0xff] }
 0x769   :  { %v1979_v62 = vpop.permute.xlu1 %1978 }
 0x76a   :  { %2010 = vmatprep.subr.bf16.mxu0 %v1991_v43  ;;  %v1986_v23 = vmul.f32 %v1979_v62, %v5251_v30  ;;  %v1987_v2 = vmul.f32 %v1979_v62, %v5255_v39  ;;  %v3151_v30 = vld [vmem:[%s5902_s7 + $0x10] sm:$0xff]  ;;  %v3152_v39 = vld [vmem:[%s5902_s7 + $0x18] sm:$0xff] }
 0x76b   :  { %2011 = vmatpush1.bf16.msra.mxu0 %v1990_v0  ;;  %2241 = vperm.xlu0 %3085, %v3151_v30  }
 0x76c   :  { %2245 = vperm.xlu1 %3084, %v3152_v39  }
 0x76d   :  { %v1984_v37 = vpop.permute.xlu1 %1983 }
 0x76e   :  { %v1988_v54 = vmul.f32 %v1984_v37, %v5259_v20  ;;  %v1989_v25 = vmul.f32 %v1984_v37, %v5263_v35  ;;  %2965 = vmatmul.mubr.msk.bf16.vlgmr.msra.gmra.mrb[24].mxu0 %vm569_vm0, %v3104_v29  ;;  %v1996_v35 = vpop.permute.xlu0 %1995 }
 0x76f   :  { %2296 = vmatprep.mubr.bf16.mxu0 %v6212_v3 }
 0x770   :  { %v1992_v32 = vpack.c.bf16 %v1988_v54, %v1986_v23  ;;  %v1993_v22 = vpack.c.bf16 %v1989_v25, %v1987_v2 }
 0x772   :  { %2053 = vmatprep.subr.bf16.mxu1 %v1993_v22  ;;  %v2000_v20 = vpop.permute.xlu1 %1999  ;;  %v2102_v52 = vpop.permute.xlu0 %2101 }
 0x773   :  { %2054 = vmatpush1.bf16.msra.mxu1 %v1992_v32 }
 0x776   :  { %2966 = vmatmul.mubr.msk.bf16.vlgmr.msra.gmra.mrb[24].mxu1 %vm569_vm0, %v3104_v29 }
 0x777   :  { %2349 = vmatprep.mubr.bf16.mxu1 %v6212_v3  ;;  %v2098_v26 = vpop.permute.xlu1 %2097 }
 0x841   :  { %v2044_v31 = vpop.f32.mrb[24].mxu0 }
 0x842   :  { %v2045_v40 = vadd.f32 %v2044_v31, %v1996_v35  ;;  %v2046_v6 = vpop.f32.mrb[25].mxu0 }
 0x843   :  { %v2047_v21 = vadd.f32 %v2046_v6, %v1996_v35  ;;  %v2048_v4 = vpop.f32.mrb[26].mxu0 }
 0x844   :  { %v2049_v19 = vadd.f32 %v2048_v4, %v2000_v20  ;;  %v2104_v41 = vmul.f32 %v2098_v26, %v2045_v40  ;;  %v2050_v49 = vpop.f32.mrb[27].mxu0 }
 0x845   :  { %v2105_v27 = vmul.f32 %v2098_v26, %v2047_v21  ;;  %v2051_v28 = vadd.f32 %v2050_v49, %v2000_v20 }
 0x846   :  { %v5317_v57 = vadd.f32 %v2104_v41, %v6214_v61  ;;  %v2108_v42 = vmul.f32 %v2102_v52, %v2049_v19 }
 0x847   :  { %v5320_v16 = vadd.f32 %v2105_v27, %v6215_v7  ;;  %v2109_v36 = vmul.f32 %v2102_v52, %v2051_v28  ;;  %v6218_v27 = vld [vmem:[#allocation34_spill] sm:$0xff]  ;;  %v6219_v7 = vld [vmem:[#allocation35_spill] sm:$0xff] }
 0x848   :  { %v5323_v24 = vadd.f32 %v2108_v42, %v6216_v18  ;;  %v2152_v43 = vmul.f32 %v5317_v57, %v5317_v57 }
 0x849   :  { %v5326_v33 = vadd.f32 %v2109_v36, %v6217_v47  ;;  %v2087_v0 = vpop.f32.mrb[24].mxu1  ;;  %v2153_v2 = vmul.f32 %v5320_v16, %v5320_v16 }
 0x84a   :  { %v2120_v62 = vadd.f32 %v5323_v24, %v5317_v57  ;;  %v2156_v29 = vmul.f32 %v5323_v24, %v5323_v24  ;;  %v2088_v37 = vadd.f32 %v2087_v0, %v1996_v35  ;;  %v2089_v23 = vpop.f32.mrb[25].mxu1 }
 0x84b   :  { %v2127_v54 = vadd.f32 %v5326_v33, %v5320_v16  ;;  %v2157_v25 = vmul.f32 %v5326_v33, %v5326_v33  ;;  %v2090_v32 = vadd.f32 %v2089_v23, %v1996_v35  ;;  %v2091_v22 = vpop.f32.mrb[26].mxu1 }
 0x84c   :  { %v2121_v11 = vrot.slane %v2120_v62, 4  ;;  %v2160_v30 = vadd.f32 %v2156_v29, %v2152_v43  ;;  %v2106_v39 = vmul.f32 %v2098_v26, %v2088_v37  ;;  %v2092_v31 = vadd.f32 %v2091_v22, %v2000_v20  ;;  %v2093_v40 = vpop.f32.mrb[27].mxu1  ;;  %v6220_v29 = vld [vmem:[#allocation36_spill] sm:$0xff]  ;;  %v6221_v37 = vld [vmem:[#allocation37_spill] sm:$0xff] }
 0x84d   :  { %v2128_v6 = vrot.slane %v2127_v54, 4  ;;  %v2167_v21 = vadd.f32 %v2157_v25, %v2153_v2  ;;  %v2107_v4 = vmul.f32 %v2098_v26, %v2090_v32  ;;  %v2094_v19 = vadd.f32 %v2093_v40, %v2000_v20 }
 0x84e   :  { %v2122_v41 = vadd.f32 %v2121_v11, %v2120_v62  ;;  %v2161_v49 = vrot.slane %v2160_v30, 4  ;;  %v5341_v28 = vadd.f32 %v2106_v39, %v6218_v27  ;;  %v2110_v61 = vmul.f32 %v2102_v52, %v2092_v31 }
 0x84f   :  { %v2168_v42 = vrot.slane %v2167_v21, 4  ;;  %v5344_v36 = vadd.f32 %v2107_v4, %v6219_v7  ;;  %v2111_v35 = vmul.f32 %v2102_v52, %v2094_v19  ;;  %v2129_v18 = vadd.f32 %v2128_v6, %v2127_v54 }
 0x850   :  { %v2123_v47 = vrot.slane %v2122_v41, 2  ;;  %v2162_v0 = vadd.f32 %v2161_v49, %v2160_v30  ;;  %v2154_v43 = vmul.f32 %v5341_v28, %v5341_v28  ;;  %v5349_v26 = vadd.f32 %v2110_v61, %v6220_v29 }
 0x851   :  { %v2169_v20 = vadd.f32 %v2168_v42, %v2167_v21  ;;  %v2155_v62 = vmul.f32 %v5344_v36, %v5344_v36  ;;  %v5354_v23 = vadd.f32 %v2111_v35, %v6221_v37  ;;  %v2130_v2 = vrot.slane %v2129_v18, 2 }
 0x852   :  { %v2163_v25 = vrot.slane %v2162_v0, 2  ;;  %v2134_v52 = vadd.f32 %v5349_v26, %v5341_v28  ;;  %v2158_v54 = vmul.f32 %v5349_v26, %v5349_v26  ;;  %v2124_v32 = vadd.f32 %v2123_v47, %v2122_v41 }
 0x853   :  { %v2170_v22 = vrot.slane %v2169_v20, 2  ;;  %v2141_v11 = vadd.f32 %v5354_v23, %v5344_v36  ;;  %v2159_v30 = vmul.f32 %v5354_v23, %v5354_v23  ;;  %v2131_v39 = vadd.f32 %v2130_v2, %v2129_v18 }
 0x854   :  { %v2164_v31 = vadd.f32 %v2163_v25, %v2162_v0  ;;  %v2135_v40 = vrot.slane %v2134_v52, 4  ;;  %v2174_v6 = vadd.f32 %v2158_v54, %v2154_v43  ;;  %v2125_v21 = vrot.slane %v2124_v32, 1 }
 0x855   :  { %v2171_v4 = vadd.f32 %v2170_v22, %v2169_v20  ;;  %v2142_v19 = vrot.slane %v2141_v11, 4  ;;  %v2181_v49 = vadd.f32 %v2159_v30, %v2155_v62  ;;  %v2132_v27 = vrot.slane %v2131_v39, 1 }
 0x856   :  { %v2165_v61 = vrot.slane %v2164_v31, 1  ;;  %v2136_v42 = vadd.f32 %v2135_v40, %v2134_v52  ;;  %v2175_v7 = vrot.slane %v2174_v6, 4  ;;  %v2126_v41 = vadd.f32 %v2125_v21, %v2124_v32 }
 0x857   :  { %v2143_v35 = vadd.f32 %v2142_v19, %v2141_v11  ;;  %v2182_v47 = vrot.slane %v2181_v49, 4  ;;  %v2133_v29 = vadd.f32 %v2132_v27, %v2131_v39  ;;  %v2172_v37 = vrot.slane %v2171_v4, 1 }
 0x858   :  { %v2166_v51 = vadd.f32 %v2165_v61, %v2164_v31  ;;  %v2137_v34 = vrot.slane %v2136_v42, 2  ;;  %v2176_v5 = vadd.f32 %v2175_v7, %v2174_v6  ;;  %v2148_v18 = vmul.f32 0.0625, %v2126_v41 }
 0x859   :  { %v2144_v0 = vrot.slane %v2143_v35, 2  ;;  %v2183_v2 = vadd.f32 %v2182_v47, %v2181_v49  ;;  %v2149_v43 = vmul.f32 0.0625, %v2133_v29  ;;  %v2173_v25 = vadd.f32 %v2172_v37, %v2171_v4 }
 0x85a   :  { %v2138_v20 = vadd.f32 %v2137_v34, %v2136_v42  ;;  %v2177_v54 = vrot.slane %v2176_v5, 2  ;;  %v2188_v62 = vmul.f32 0.0625, %v2166_v51  ;;  %v2192_v22 = vmul.f32 %v2148_v18, %v2148_v18 }
 0x85b   :  { %v2184_v30 = vrot.slane %v2183_v2, 2  ;;  %v2189_v52 = vmul.f32 0.0625, %v2173_v25  ;;  %v2193_v40 = vmul.f32 %v2149_v43, %v2149_v43  ;;  %v2145_v19 = vadd.f32 %v2144_v0, %v2143_v35 }
 0x85c   :  { %v2178_v32 = vadd.f32 %v2177_v54, %v2176_v5  ;;  %v2196_v11 = vsub.f32 %v2188_v62, %v2192_v22  ;;  %v2139_v6 = vrot.slane %v2138_v20, 1 }
 0x85d   :  { %v2185_v21 = vadd.f32 %v2184_v30, %v2183_v2  ;;  %v2197_v39 = vsub.f32 %v2189_v52, %v2193_v40  ;;  %v2146_v49 = vrot.slane %v2145_v19, 1  ;;  %v2204_v52 = vsub.f32 %v5317_v57, %v2148_v18 }
 0x85e   :  { %v2179_v31 = vrot.slane %v2178_v32, 1  ;;  %v2200_v27 = vmax.f32 %v2196_v11, 0.0  ;;  %v2140_v34 = vadd.f32 %v2139_v6, %v2138_v20  ;;  %v2208_v20 = vsub.f32 %v5323_v24, %v2148_v18  ;;  %v3105_v18 = vld [vmem:[%s5900_s5 + $0x18] sm:$0xff]  }
 0x85f   :  { %v2186_v61 = vrot.slane %v2185_v21, 1  ;;  %v2201_v7 = vmax.f32 %v2197_v39, 0.0  ;;  %v2147_v47 = vadd.f32 %v2146_v49, %v2145_v19  ;;  %v2205_v11 = vsub.f32 %v5320_v16, %v2149_v43 }
 0x860   :  { %v2180_v41 = vadd.f32 %v2179_v31, %v2178_v32  ;;  %v2212_v4 = vadd.f32 1e-06, %v2200_v27  ;;  %v2150_v37 = vmul.f32 0.0625, %v2140_v34 }
 0x861   :  { %v2187_v42 = vadd.f32 %v2186_v61, %v2185_v21  ;;  %v2213_v51 = vadd.f32 1e-06, %v2201_v7  ;;  %v2151_v5 = vmul.f32 0.0625, %v2147_v47  ;;  %v2209_v21 = vsub.f32 %v5326_v33, %v2149_v43 }
 0x862   :  { %v2190_v29 = vmul.f32 0.0625, %v2180_v41  ;;  %3119 = vrsqrt.f32 %v2212_v4  ;;  %v2194_v25 = vmul.f32 %v2150_v37, %v2150_v37  ;;  %v2206_v49 = vsub.f32 %v5341_v28, %v2150_v37 }
 0x863   :  { %3121 = vrsqrt.f32 %v2213_v51  ;;  %v2191_v2 = vmul.f32 0.0625, %v2187_v42  ;;  %v2195_v35 = vmul.f32 %v2151_v5, %v2151_v5  ;;  %v2210_v41 = vsub.f32 %v5349_v26, %v2150_v37 }
 0x864   :  { %v2198_v0 = vsub.f32 %v2190_v29, %v2194_v25  ;;  %v2207_v4 = vsub.f32 %v5344_v36, %v2151_v5  ;;  %v2211_v34 = vsub.f32 %v5354_v23, %v2151_v5  ;;  %v3274_v5 = vmov 6  }
 0x865   :  { %v2199_v54 = vsub.f32 %v2191_v2, %v2195_v35  ;;  %v3106_v35 = vld [vmem:[%s5900_s5 + $0x20] sm:$0xff]   ;;  %3086 = vset.pattern.permute.xlu1 %v3274_v5  ;;  %3087 = vset.pattern.permute.xlu0 %v3274_v5 }
 0x866   :  { %v2202_v62 = vmax.f32 %v2198_v0, 0.0  ;;  %2383 = vperm.xlu1 %3086, %v5277_v12   ;;  %2387 = vperm.xlu0 %3087, %v5287_v13   ;;  %v3275_v0 = vmov 9  }
 0x867   :  { %v2203_v22 = vmax.f32 %v2199_v54, 0.0  ;;  %v2234_v54 = vpop.permute.xlu1 %2233 }
 0x868   :  { %v2214_v30 = vadd.f32 1e-06, %v2202_v62 }
 0x869   :  { %v2215_v40 = vadd.f32 1e-06, %v2203_v22 }
 0x86a   :  { %3123 = vrsqrt.f32 %v2214_v30  ;;  %3088 = vset.pattern.permute.xlu1 %v3275_v0 }
 0x86b   :  { %3125 = vrsqrt.f32 %v2215_v40  ;;  %2485 = vperm.xlu1 %3088, %v5277_v12  }
 0x86c   :  { %v3120_v32 = vpop.eup %3119 }
 0x86d   :  { %v3122_v39 = vpop.eup %3121  ;;  %v2220_v19 = vmul.f32 %v3120_v32, %v2204_v52  ;;  %v2224_v31 = vmul.f32 %v3120_v32, %v2208_v20  ;;  %v2238_v52 = vpop.permute.xlu1 %2237 }
 0x86e   :  { %v2221_v27 = vmul.f32 %v3122_v39, %v2205_v11  ;;  %v2225_v6 = vmul.f32 %v3122_v39, %v2209_v21 }
 0x86f   :  { %v2228_v7 = vpack.c.bf16 %v2224_v31, %v2220_v19  ;;  %2489 = vperm.xlu1 %3088, %v5287_v13  }
 0x870   :  { %v2229_v61 = vpack.c.bf16 %v2225_v6, %v2221_v27 }
 0x871   :  { %v2246_v11 = vpop.permute.xlu1 %2245 }
 0x872   :  { %2264 = vmatprep.subr.bf16.mxu0 %v2229_v61 }
 0x873   :  { %2265 = vmatpush1.bf16.msra.mxu0 %v2228_v7 }
 0x874   :  { %v3124_v43 = vpop.eup %3123 }
 0x875   :  { %v3126_v42 = vpop.eup %3125  ;;  %v2222_v51 = vmul.f32 %v3124_v43, %v2206_v49  ;;  %v2226_v47 = vmul.f32 %v3124_v43, %v2210_v41 }
 0x876   :  { %2969 = vmatmul.mubr.msk.bf16.vlgmr.msra.gmra.mrb[28].mxu0 %vm569_vm0, %v3105_v18  ;;  %v2223_v29 = vmul.f32 %v3126_v42, %v2207_v4  ;;  %v2227_v2 = vmul.f32 %v3126_v42, %v2211_v34 }
 0x877   :  { %2306 = vmatprep.mubr.bf16.mxu0 %v6212_v3  ;;  %v2230_v37 = vpack.c.bf16 %v2226_v47, %v2222_v51 }
 0x878   :  { %v2231_v25 = vpack.c.bf16 %v2227_v2, %v2223_v29 }
 0x87a   :  { %2317 = vmatprep.subr.bf16.mxu1 %v2231_v25 }
 0x87b   :  { %2318 = vmatpush1.bf16.msra.mxu1 %v2230_v37  ;;  %v3107_v37 = vld [vmem:[%s5900_s5 + $0x28] sm:$0xff]  }
 0x87e   :  { %2970 = vmatmul.mubr.msk.bf16.gmra.mrb[32].mxu0 %vm569_vm0, %v3106_v35  ;;  %2971 = vmatmul.mubr.msk.bf16.vlgmr.msra.gmra.mrb[28].mxu1 %vm569_vm0, %v3105_v18 }
 0x87f   :  { %2430 = vmatprep.mubr.bf16.mxu0 %v6212_v3  ;;  %2359 = vmatprep.mubr.bf16.mxu1 %v6212_v3 }
 0x886   :  { %2972 = vmatmul.mubr.msk.bf16.gmra.mrb[32].mxu1 %vm569_vm0, %v3106_v35 }
 0x887   :  { %2473 = vmatprep.mubr.bf16.mxu1 %v6212_v3  ;;  %v2242_v3 = vpop.permute.xlu0 %2241 }
 0x949   :  { %v2298_v62 = vpop.f32.mrb[28].mxu0 }
 0x94a   :  { %v2300_v22 = vpop.f32.mrb[29].mxu0  ;;  %v2299_v32 = vadd.f32 %v2298_v62, %v2234_v54 }
 0x94b   :  { %v2302_v30 = vpop.f32.mrb[30].mxu0  ;;  %v2301_v19 = vadd.f32 %v2300_v22, %v2234_v54 }
 0x94c   :  { %v2304_v20 = vpop.f32.mrb[31].mxu0  ;;  %v2303_v18 = vadd.f32 %v2302_v30, %v2238_v52 }
 0x94d   :  { %v2305_v43 = vadd.f32 %v2304_v20, %v2238_v52 }
 0x951   :  { %v2308_v40 = vpop.f32.mrb[32].mxu0  ;;  %v2351_v31 = vpop.f32.mrb[28].mxu1 }
 0x952   :  { %v2309_v21 = vadd.f32 %v2308_v40, %v2242_v3  ;;  %v2310_v39 = vpop.f32.mrb[33].mxu0  ;;  %v2353_v7 = vpop.f32.mrb[29].mxu1  ;;  %v2352_v5 = vadd.f32 %v2351_v31, %v2234_v54 }
 0x953   :  { %v2311_v27 = vadd.f32 %v2310_v39, %v2242_v3  ;;  %v2312_v6 = vpop.f32.mrb[34].mxu0  ;;  %v2355_v34 = vpop.f32.mrb[30].mxu1  ;;  %v2354_v22 = vadd.f32 %v2353_v7, %v2234_v54 }
 0x954   :  { %v2370_v61 = vmul.f32 %v2309_v21, %v2299_v32  ;;  %v2313_v49 = vadd.f32 %v2312_v6, %v2246_v11  ;;  %v2314_v41 = vpop.f32.mrb[35].mxu0  ;;  %v2357_v47 = vpop.f32.mrb[31].mxu1  ;;  %v2356_v40 = vadd.f32 %v2355_v34, %v2238_v52 }
 0x955   :  { %v2371_v4 = vmul.f32 %v2311_v27, %v2301_v19  ;;  %v2315_v42 = vadd.f32 %v2314_v41, %v2246_v11  ;;  %v2358_v19 = vadd.f32 %v2357_v47, %v2238_v52  ;;  %v2384_v54 = vpop.permute.xlu1 %2383  ;;  %v2388_v7 = vpop.permute.xlu0 %2387 }
 0x956   :  { %v2374_v51 = vmul.f32 %v2313_v49, %v2303_v18 }
 0x957   :  { %v2375_v29 = vmul.f32 %v2315_v42, %v2305_v43 }
 0x958   :  { %v2378_v2 = vpack.c.bf16 %v2374_v51, %v2370_v61 }
 0x959   :  { %v2379_v25 = vpack.c.bf16 %v2375_v29, %v2371_v4  ;;  %v2361_v35 = vpop.f32.mrb[32].mxu1 }
 0x95a   :  { %v2362_v0 = vadd.f32 %v2361_v35, %v2242_v3  ;;  %v2363_v62 = vpop.f32.mrb[33].mxu1 }
 0x95b   :  { %2398 = vmatprep.subr.bf16.mxu0 %v2379_v25  ;;  %v2364_v30 = vadd.f32 %v2363_v62, %v2242_v3  ;;  %v2365_v20 = vpop.f32.mrb[34].mxu1  ;;  %v5395_v3 = vpop.permute.xlu1 %2485 }
 0x95c   :  { %2399 = vmatpush1.bf16.msra.mxu0 %v2378_v2  ;;  %v2372_v32 = vmul.f32 %v2362_v0, %v2352_v5  ;;  %v2366_v21 = vadd.f32 %v2365_v20, %v2246_v11  ;;  %v2367_v39 = vpop.f32.mrb[35].mxu1 }
 0x95d   :  { %v2373_v27 = vmul.f32 %v2364_v30, %v2354_v22  ;;  %v2368_v6 = vadd.f32 %v2367_v39, %v2246_v11 }
 0x95e   :  { %v2376_v61 = vmul.f32 %v2366_v21, %v2356_v40 }
 0x95f   :  { %2974 = vmatmul.mubr.msk.bf16.vlgmr.msra.gmra.mrb[36].mxu0 %vm569_vm0, %v3107_v37  ;;  %v2377_v18 = vmul.f32 %v2368_v6, %v2358_v19  ;;  %v2490_v34 = vpop.permute.xlu1 %2489 }
 0x960   :  { %v2380_v49 = vpack.c.bf16 %v2376_v61, %v2372_v32 }
 0x961   :  { %v2381_v41 = vpack.c.bf16 %v2377_v18, %v2373_v27 }
 0x963   :  { %2441 = vmatprep.subr.bf16.mxu1 %v2381_v41 }
 0x964   :  { %2442 = vmatpush1.bf16.msra.mxu1 %v2380_v49 }
 0x967   :  { %2975 = vmatmul.mubr.msk.bf16.vlgmr.msra.gmra.mrb[36].mxu1 %vm569_vm0, %v3107_v37 }
 0xa32   :  { %v2432_v31 = vpop.f32.mrb[36].mxu0 }
 0xa33   :  { %v2433_v43 = vadd.f32 %v2432_v31, %v2384_v54  ;;  %v2434_v4 = vpop.f32.mrb[37].mxu0  ;;  %v3276_v31 = vmov 7  }
 0xa34   :  { %v2436_v52 = vpop.f32.mrb[38].mxu0  ;;  %3089 = vset.pattern.permute.xlu0 %v3276_v31  ;;  %3090 = vset.pattern.permute.xlu1 %v3276_v31 }
 0xa35   :  { %v2492_v11 = vmul.f32 %v5395_v3, %v2433_v43  ;;  %v2437_v42 = vadd.f32 %v2436_v52, %v2388_v7  ;;  %v2438_v51 = vpop.f32.mrb[39].mxu0 }
 0xa37   :  { %v5399_v47 = vadd.f32 %v2492_v11, %v5317_v57  ;;  %v2496_v29 = vmul.f32 %v2490_v34, %v2437_v42 }
 0xa39   :  { %v5402_v2 = vadd.f32 %v2496_v29, %v5323_v24  ;;  %2514 = vrot.lane.b32.xlu0 %v5399_v47, %s3259_s18 }
 0xa3a   :  { %v2475_v35 = vpop.f32.mrb[36].mxu1 }
 0xa3b   :  { %2516 = vrot.lane.b32.xlu1 %v5402_v2, %s3259_s18  ;;  %v2476_v37 = vadd.f32 %v2475_v35, %v2384_v54  ;;  %v2477_v5 = vpop.f32.mrb[37].mxu1 }
 0xa3c   :  { %v2479_v0 = vpop.f32.mrb[38].mxu1  ;;  %v2478_v21 = vadd.f32 %v2477_v5, %v2384_v54 }
 0xa3d   :  { %v2494_v57 = vmul.f32 %v5395_v3, %v2476_v37  ;;  %v2480_v62 = vadd.f32 %v2479_v0, %v2388_v7  ;;  %v2481_v22 = vpop.f32.mrb[39].mxu1 }
 0xa3e   :  { %v2482_v19 = vadd.f32 %v2481_v22, %v2388_v7  ;;  %v2495_v6 = vmul.f32 %v5395_v3, %v2478_v21 }
 0xa3f   :  { %v5412_v24 = vadd.f32 %v2494_v57, %v5341_v28  ;;  %v2498_v30 = vmul.f32 %v2490_v34, %v2480_v62  ;;  %v2435_v28 = vadd.f32 %v2434_v4, %v2384_v54 }
 0xa40   :  { %v2499_v18 = vmul.f32 %v2490_v34, %v2482_v19  ;;  %v5490_v49 = vadd.f32 %v2495_v6, %v5344_v36 }
 0xa41   :  { %v5415_v20 = vadd.f32 %v2498_v30, %v5349_v26  ;;  %2522 = vrot.lane.b32.xlu0 %v5412_v24, %s3259_s18  ;;  %v2439_v26 = vadd.f32 %v2438_v51, %v2388_v7  ;;  %v2493_v32 = vmul.f32 %v5395_v3, %v2435_v28 }
 0xa43   :  { %2524 = vrot.lane.b32.xlu1 %v5415_v20, %s3259_s18  ;;  %v2497_v39 = vmul.f32 %v2490_v34, %v2439_v26  ;;  %v5479_v27 = vadd.f32 %v2493_v32, %v5320_v16  ;;  %v5495_v16 = vadd.f32 %v2499_v18, %v5354_v23  ;;  %v3108_v23 = vld [vmem:[#allocation6 + $0x4] ss:$8 sps:$4 sm:$0x1f]  }
 0xa44   :  { %2978 = vmatprep.mubr.msk.bf16.mxu0 %vm569_vm0, %v3108_v23  ;;  %2979 = vmatprep.mubr.msk.bf16.mxu1 %vm569_vm0, %v3108_v23 }
 0xa45   :  { %2550 = vrot.lane.b32.xlu0 %v5399_v47, %s3260_s26  ;;  %v5485_v61 = vadd.f32 %v2497_v39, %v5326_v33 }
 0xa47   :  { %2552 = vrot.lane.b32.xlu1 %v5402_v2, %s3260_s26 }
 0xa49   :  { %2558 = vrot.lane.b32.xlu0 %v5412_v24, %s3260_s26 }
 0xa4b   :  { %2560 = vrot.lane.b32.xlu1 %v5415_v20, %s3260_s26 }
 0xa4d   :  { %2586 = vrot.lane.b32.xlu0 %v5399_v47, %s3261_s0 }
 0xa4f   :  { %2588 = vrot.lane.b32.xlu1 %v5402_v2, %s3261_s0 }
 0xa51   :  { %2594 = vrot.lane.b32.xlu0 %v5412_v24, %s3261_s0 }
 0xa53   :  { %2596 = vrot.lane.b32.xlu1 %v5415_v20, %s3261_s0 }
 0xa55   :  { %2622 = vrot.lane.b32.xlu0 %v5399_v47, %s3262_s27 }
 0xa57   :  { %2624 = vrot.lane.b32.xlu1 %v5402_v2, %s3262_s27 }
 0xa59   :  { %2630 = vrot.lane.b32.xlu0 %v5412_v24, %s3262_s27 }
 0xa5b   :  { %2632 = vrot.lane.b32.xlu1 %v5415_v20, %s3262_s27 }
 0xa5d   :  { %2658 = vrot.lane.b32.xlu0 %v5399_v47, %s3263_s29 }
 0xa5f   :  { %2660 = vrot.lane.b32.xlu1 %v5402_v2, %s3263_s29 }
 0xa61   :  { %2666 = vrot.lane.b32.xlu0 %v5412_v24, %s3263_s29 }
 0xa63   :  { %2668 = vrot.lane.b32.xlu1 %v5415_v20, %s3263_s29 }
 0xa65   :  { %2694 = vrot.lane.b32.xlu0 %v5399_v47, %s3264_s2 }
 0xa67   :  { %2696 = vrot.lane.b32.xlu1 %v5402_v2, %s3264_s2 }
 0xa69   :  { %2702 = vrot.lane.b32.xlu0 %v5412_v24, %s3264_s2 }
 0xa6b   :  { %2704 = vrot.lane.b32.xlu1 %v5415_v20, %s3264_s2 }
 0xa6d   :  { %2730 = vrot.lane.b32.xlu0 %v5399_v47, %s3265_s28 }
 0xa6f   :  { %2732 = vrot.lane.b32.xlu1 %v5402_v2, %s3265_s28 }
 0xa71   :  { %2738 = vrot.lane.b32.xlu0 %v5412_v24, %s3265_s28 }
 0xa73   :  { %2740 = vrot.lane.b32.xlu1 %v5415_v20, %s3265_s28 }
 0xa75   :  { %2766 = vrot.lane.b32.xlu0 %v5399_v47, %s3266_s30 }
 0xa77   :  { %2768 = vrot.lane.b32.xlu1 %v5402_v2, %s3266_s30 }
 0xa79   :  { %2774 = vrot.lane.b32.xlu0 %v5412_v24, %s3266_s30 }
 0xa7b   :  { %2776 = vrot.lane.b32.xlu1 %v5415_v20, %s3266_s30 }
 0xa7d   :  { %2518 = vrot.lane.b32.xlu0 %v5479_v27, %s3259_s18 }
 0xa7f   :  { %2520 = vrot.lane.b32.xlu1 %v5485_v61, %s3259_s18 }
 0xa81   :  { %2526 = vrot.lane.b32.xlu0 %v5490_v49, %s3259_s18 }
 0xa83   :  { %2528 = vrot.lane.b32.xlu1 %v5495_v16, %s3259_s18 }
 0xa85   :  { %2554 = vrot.lane.b32.xlu0 %v5479_v27, %s3260_s26 }
 0xa87   :  { %2556 = vrot.lane.b32.xlu1 %v5485_v61, %s3260_s26 }
 0xa89   :  { %2562 = vrot.lane.b32.xlu0 %v5490_v49, %s3260_s26 }
 0xa8b   :  { %2564 = vrot.lane.b32.xlu1 %v5495_v16, %s3260_s26 }
 0xa8d   :  { %2590 = vrot.lane.b32.xlu0 %v5479_v27, %s3261_s0 }
 0xa8f   :  { %2592 = vrot.lane.b32.xlu1 %v5485_v61, %s3261_s0 }
 0xa91   :  { %2598 = vrot.lane.b32.xlu0 %v5490_v49, %s3261_s0 }
 0xa93   :  { %2600 = vrot.lane.b32.xlu1 %v5495_v16, %s3261_s0 }
 0xa95   :  { %2626 = vrot.lane.b32.xlu0 %v5479_v27, %s3262_s27 }
 0xa97   :  { %2628 = vrot.lane.b32.xlu1 %v5485_v61, %s3262_s27 }
 0xa99   :  { %2634 = vrot.lane.b32.xlu0 %v5490_v49, %s3262_s27 }
 0xa9b   :  { %2636 = vrot.lane.b32.xlu1 %v5495_v16, %s3262_s27 }
 0xa9d   :  { %2662 = vrot.lane.b32.xlu0 %v5479_v27, %s3263_s29 }
 0xa9f   :  { %2664 = vrot.lane.b32.xlu1 %v5485_v61, %s3263_s29 }
 0xaa1   :  { %2670 = vrot.lane.b32.xlu0 %v5490_v49, %s3263_s29 }
 0xaa3   :  { %2672 = vrot.lane.b32.xlu1 %v5495_v16, %s3263_s29 }
 0xaa5   :  { %2698 = vrot.lane.b32.xlu0 %v5479_v27, %s3264_s2 }
 0xaa7   :  { %2700 = vrot.lane.b32.xlu1 %v5485_v61, %s3264_s2 }
 0xaa9   :  { %2706 = vrot.lane.b32.xlu0 %v5490_v49, %s3264_s2 }
 0xaab   :  { %2708 = vrot.lane.b32.xlu1 %v5495_v16, %s3264_s2  ;;  %v2515_v33 = vpop.permute.xlu0 %2514 }
 0xaad   :  { %2734 = vrot.lane.b32.xlu0 %v5479_v27, %s3265_s28  ;;  %v5545_v36 = vpop.permute.xlu1 %2516 }
 0xaaf   :  { %2736 = vrot.lane.b32.xlu1 %v5485_v61, %s3265_s28 }
 0xab1   :  { %2742 = vrot.lane.b32.xlu0 %v5490_v49, %s3265_s28 }
 0xab3   :  { %v2523_v41 = vpop.permute.xlu0 %2522  ;;  %2744 = vrot.lane.b32.xlu1 %v5495_v16, %s3265_s28 }
 0xab5   :  { %2770 = vrot.lane.b32.xlu0 %v5479_v27, %s3266_s30  ;;  %v2525_v54 = vpop.permute.xlu1 %2524 }
 0xab7   :  { %v5555_v3 = vpop.permute.xlu0 %2550  ;;  %2772 = vrot.lane.b32.xlu1 %v5485_v61, %s3266_s30 }
 0xab9   :  { %2778 = vrot.lane.b32.xlu0 %v5490_v49, %s3266_s30  ;;  %v5561_v7 = vpop.permute.xlu1 %2552 }
 0xabb   :  { %v5563_v43 = vpop.permute.xlu0 %2558  ;;  %2780 = vrot.lane.b32.xlu1 %v5495_v16, %s3266_s30 }
 0xabd   :  { %v5567_v4 = vpop.permute.xlu1 %2560  ;;  %2803 = vperm.xlu0 %3089, %v5277_v12  }
 0xabf   :  { %v5570_v52 = vpop.permute.xlu0 %2586  ;;  %2807 = vperm.xlu1 %3090, %v5287_v13  }
 0xac1   :  { %v5573_v34 = vpop.permute.xlu1 %2588 }
 0xac3   :  { %v5575_v11 = vpop.permute.xlu0 %2594 }
 0xac5   :  { %v5577_v42 = vpop.permute.xlu1 %2596 }
 0xac7   :  { %v5579_v51 = vpop.permute.xlu0 %2622 }
 0xac9   :  { %v5581_v29 = vpop.permute.xlu1 %2624 }
 0xacb   :  { %v5583_v35 = vpop.permute.xlu0 %2630 }
 0xacd   :  { %v5585_v37 = vpop.permute.xlu1 %2632 }
 0xacf   :  { %v5587_v5 = vpop.permute.xlu0 %2658 }
 0xad1   :  { %v5589_v12 = vpop.permute.xlu1 %2660 }
 0xad3   :  { %v5591_v0 = vpop.permute.xlu0 %2666 }
 0xad5   :  { %v5593_v13 = vpop.permute.xlu1 %2668 }
 0xad7   :  { %v5595_v57 = vpop.permute.xlu0 %2694 }
 0xad9   :  { %v5597_v62 = vpop.permute.xlu1 %2696 }
 0xada   :  { %6222 = vst [vmem:[#allocation75_spill] sm:$0xff] %v5597_v62 }
 0xadb   :  { %v5599_v22 = vpop.permute.xlu0 %2702 }
 0xadd   :  { %v5601_v30 = vpop.permute.xlu1 %2704 }
 0xade   :  { %6223 = vst [vmem:[#allocation59_spill] sm:$0xff] %v5601_v30 }
 0xadf   :  { %v5603_v28 = vpop.permute.xlu0 %2730 }
 0xae0   :  { %6224 = vst [vmem:[#allocation76_spill] sm:$0xff] %v5603_v28 }
 0xae1   :  { %v5605_v26 = vpop.permute.xlu1 %2732 }
 0xae2   :  { %6225 = vst [vmem:[#allocation78_spill] sm:$0xff] %v5605_v26 }
 0xae3   :  { %v5607_v32 = vpop.permute.xlu0 %2738 }
 0xae4   :  { %6226 = vst [vmem:[#allocation16_spill] sm:$0xff] %v5607_v32 }
 0xae5   :  { %v5609_v21 = vpop.permute.xlu1 %2740 }
 0xae6   :  { %6227 = vst [vmem:[#allocation77_spill] sm:$0xff] %v5609_v21 }
 0xae7   :  { %v5611_v39 = vpop.permute.xlu0 %2766 }
 0xae8   :  { %6228 = vst [vmem:[#allocation60_spill] sm:$0xff] %v5611_v39 }
 0xae9   :  { %v5613_v19 = vpop.permute.xlu1 %2768 }
 0xaea   :  { %6229 = vst [vmem:[#allocation79_spill] sm:$0xff] %v5613_v19  ;;  %v6232_v19 = vld [vmem:[#allocation12_spill] sm:$0xff] }
 0xaeb   :  { %v5615_v6 = vpop.permute.xlu0 %2774 }
 0xaec   :  { %6230 = vst [vmem:[#allocation46_spill] sm:$0xff] %v5615_v6  ;;  %v6233_v6 = vld [vmem:[#allocation13_spill] sm:$0xff] }
 0xaed   :  { %v5617_v18 = vpop.permute.xlu1 %2776 }
 0xaee   :  { %6231 = vst [vmem:[#allocation61_spill] sm:$0xff] %v5617_v18 }
 0xaef   :  { %v2519_v23 = vpop.permute.xlu0 %2518 }
 0xaf0   :  { %v2532_v31 = vsel %vm142_vm1, %v2519_v23, %v2523_v41  ;;  %v2534_v40 = vsel %vm142_vm1, %v2515_v33, %v2519_v23 }
 0xaf1   :  { %v2521_v25 = vpop.permute.xlu1 %2520  ;;  %v2539_v26 = vmul.f32 %v2534_v40, %v6232_v19  ;;  %v2540_v21 = vmul.f32 %v2532_v31, %v6233_v6 }
 0xaf2   :  { %v2533_v46 = vsel %vm142_vm1, %v2521_v25, %v2525_v54  ;;  %v2535_v39 = vsel %vm142_vm1, %v5545_v36, %v2521_v25 }
 0xaf3   :  { %v2543_v18 = vmul.f32 %v2535_v39, %v6232_v19  ;;  %v2544_v28 = vmul.f32 %v2533_v46, %v6233_v6  ;;  %v2527_v32 = vpop.permute.xlu0 %2526  ;;  %v6234_v39 = vld [vmem:[#allocation14_spill] sm:$0xff]  ;;  %v6235_v46 = vld [vmem:[#allocation15_spill] sm:$0xff] }
 0xaf4   :  { %v2530_v23 = vsel %vm142_vm1, %v2523_v41, %v2527_v32  ;;  %v2536_v58 = vsel %vm142_vm1, %v2527_v32, %v2515_v33 }
 0xaf5   :  { %v2548_v14 = vpack.c.bf16 %v2544_v28, %v2540_v21  ;;  %v2529_v50 = vpop.permute.xlu1 %2528  ;;  %v2547_v62 = vpack.c.bf16 %v2543_v18, %v2539_v26  ;;  %v2538_v19 = vmul.f32 %v2536_v58, %v6234_v39  ;;  %v2541_v6 = vmul.f32 %v2530_v23, %v6235_v46 }
 0xaf6   :  { %v2531_v25 = vsel %vm142_vm1, %v2525_v54, %v2529_v50  ;;  %v2537_v40 = vsel %vm142_vm1, %v2529_v50, %v5545_v36 }
 0xaf7   :  { %v2542_v31 = vmul.f32 %v2537_v40, %v6234_v39  ;;  %v2545_v41 = vmul.f32 %v2531_v25, %v6235_v46  ;;  %v2555_v30 = vpop.permute.xlu0 %2554  ;;  %2822 = vmatprep.subr.bf16.mxu0 %v2547_v62 }
 0xaf8   :  { %v2568_v33 = vsel %vm195_vm2, %v2555_v30, %v5563_v43  ;;  %v2570_v54 = vsel %vm195_vm2, %v5555_v3, %v2555_v30 }
 0xaf9   :  { %v2546_v28 = vpack.c.bf16 %v2542_v31, %v2538_v19  ;;  %v2557_v50 = vpop.permute.xlu1 %2556  ;;  %v2549_v36 = vpack.c.bf16 %v2545_v41, %v2541_v6  ;;  %v2575_v58 = vmul.f32 %v2570_v54, %v3623_v55  ;;  %v2576_v32 = vmul.f32 %v2568_v33, %v3632_v63 }
 0xafa   :  { %v2569_v26 = vsel %vm195_vm2, %v2557_v50, %v5567_v4  ;;  %v2571_v62 = vsel %vm195_vm2, %v5561_v7, %v2557_v50 }
 0xafb   :  { %v2579_v21 = vmul.f32 %v2571_v62, %v3623_v55  ;;  %v2580_v18 = vmul.f32 %v2569_v26, %v3632_v63  ;;  %v2563_v30 = vpop.permute.xlu0 %2562  ;;  %2823 = vmatpush1.bf16.msra.mxu0 %v2546_v28  ;;  %2865 = vmatprep.subr.bf16.mxu1 %v2549_v36 }
 0xafc   :  { %v2566_v23 = vsel %vm195_vm2, %v5563_v43, %v2563_v30  ;;  %v2572_v25 = vsel %vm195_vm2, %v2563_v30, %v5555_v3  ;;  %2866 = vmatpush1.bf16.msra.mxu1 %v2548_v14 }
 0xafd   :  { %v2584_v40 = vpack.c.bf16 %v2580_v18, %v2576_v32  ;;  %v2565_v39 = vpop.permute.xlu1 %2564  ;;  %v2583_v19 = vpack.c.bf16 %v2579_v21, %v2575_v58  ;;  %v2574_v46 = vmul.f32 %v2572_v25, %v3639_v15  ;;  %v2577_v43 = vmul.f32 %v2566_v23, %v3642_v17 }
 0xafe   :  { %v2567_v55 = vsel %vm195_vm2, %v5567_v4, %v2565_v39  ;;  %v2573_v63 = vsel %vm195_vm2, %v2565_v39, %v5561_v7 }
 0xaff   :  { %v2578_v6 = vmul.f32 %v2573_v63, %v3639_v15  ;;  %v2581_v3 = vmul.f32 %v2567_v55, %v3642_v17  ;;  %v2591_v14 = vpop.permute.xlu0 %2590  ;;  %2824 = vmatprep.subr.bf16.mxu0 %v2583_v19 }
 0xb00   :  { %v2604_v31 = vsel %vm248_vm3, %v2591_v14, %v5575_v11  ;;  %v2606_v4 = vsel %vm248_vm3, %v5570_v52, %v2591_v14 }
 0xb01   :  { %v2582_v41 = vpack.c.bf16 %v2578_v6, %v2574_v46  ;;  %v2593_v7 = vpop.permute.xlu1 %2592  ;;  %v2585_v33 = vpack.c.bf16 %v2581_v3, %v2577_v43  ;;  %v2611_v54 = vmul.f32 %v2606_v4, %v3661_v45  ;;  %v2612_v28 = vmul.f32 %v2604_v31, %v3670_v53 }
 0xb02   :  { %v2605_v15 = vsel %vm248_vm3, %v2593_v7, %v5577_v42  ;;  %v2607_v17 = vsel %vm248_vm3, %v5573_v34, %v2593_v7 }
 0xb03   :  { %v2615_v50 = vmul.f32 %v2607_v17, %v3661_v45  ;;  %v2616_v36 = vmul.f32 %v2605_v15, %v3670_v53  ;;  %v2599_v58 = vpop.permute.xlu0 %2598  ;;  %2825 = vmatpush1.bf16.msra.mxu0 %v2582_v41  ;;  %2867 = vmatprep.subr.bf16.mxu1 %v2585_v33  ;;  %v6236_v33 = vld [vmem:[#allocation17_spill] sm:$0xff] }
 0xb04   :  { %v2602_v26 = vsel %vm248_vm3, %v5575_v11, %v2599_v58  ;;  %v2608_v62 = vsel %vm248_vm3, %v2599_v58, %v5570_v52  ;;  %2868 = vmatpush1.bf16.msra.mxu1 %v2584_v40  ;;  %v2513_v58 = vpack.c.bf16 %v5495_v16, %v5490_v49 }
 0xb05   :  { %v2620_v32 = vpack.c.bf16 %v2616_v36, %v2612_v28  ;;  %v2601_v21 = vpop.permute.xlu1 %2600  ;;  %v2619_v18 = vpack.c.bf16 %v2615_v50, %v2611_v54  ;;  %v2610_v30 = vmul.f32 %v2608_v62, %v3677_v59  ;;  %v2613_v11 = vmul.f32 %v2602_v26, %v3680_v60  ;;  %v6237_v62 = vld [vmem:[#allocation19_spill] sm:$0xff] }
 0xb06   :  { %v2603_v45 = vsel %vm248_vm3, %v5577_v42, %v2601_v21  ;;  %v2609_v53 = vsel %vm248_vm3, %v2601_v21, %v5573_v34 }
 0xb07   :  { %v2614_v23 = vmul.f32 %v2609_v53, %v3677_v59  ;;  %v2617_v52 = vmul.f32 %v2603_v45, %v3680_v60  ;;  %v2627_v25 = vpop.permute.xlu0 %2626  ;;  %2826 = vmatprep.subr.bf16.mxu0 %v2619_v18 }
 0xb08   :  { %v2640_v40 = vsel %vm301_vm4, %v2627_v25, %v5583_v35  ;;  %v2642_v42 = vsel %vm301_vm4, %v5579_v51, %v2627_v25 }
 0xb09   :  { %v2618_v39 = vpack.c.bf16 %v2614_v23, %v2610_v30  ;;  %v2629_v34 = vpop.permute.xlu1 %2628  ;;  %v2621_v19 = vpack.c.bf16 %v2617_v52, %v2613_v11  ;;  %v2647_v55 = vmul.f32 %v2642_v42, %v3699_v38  ;;  %v2648_v63 = vmul.f32 %v2640_v40, %v3708_v48 }
 0xb0a   :  { %v2641_v59 = vsel %vm301_vm4, %v2629_v34, %v5585_v37  ;;  %v2643_v60 = vsel %vm301_vm4, %v5581_v29, %v2629_v34  ;;  %v6239_v40 = vpack.c.bf16 %v5415_v20, %v5412_v24 }
 0xb0b   :  { %v2651_v46 = vmul.f32 %v2643_v60, %v3699_v38  ;;  %v2652_v43 = vmul.f32 %v2641_v59, %v3708_v48  ;;  %v2635_v6 = vpop.permute.xlu0 %2634  ;;  %2827 = vmatpush1.bf16.msra.mxu0 %v2618_v39  ;;  %2869 = vmatprep.subr.bf16.mxu1 %v2621_v19  ;;  %v6241_v19 = vld [vmem:[#allocation75_spill] sm:$0xff] }
 0xb0c   :  { %v2638_v3 = vsel %vm301_vm4, %v5583_v35, %v2635_v6  ;;  %v2644_v14 = vsel %vm301_vm4, %v2635_v6, %v5579_v51  ;;  %2870 = vmatpush1.bf16.msra.mxu1 %v2620_v32  ;;  %v6242_v59 = vld [vmem:[#allocation23_spill] sm:$0xff] }
 0xb0d   :  { %v2656_v31 = vpack.c.bf16 %v2652_v43, %v2648_v63  ;;  %v2637_v4 = vpop.permute.xlu1 %2636  ;;  %v2655_v41 = vpack.c.bf16 %v2651_v46, %v2647_v55  ;;  %v2646_v7 = vmul.f32 %v2644_v14, %v6125_v1  ;;  %v2649_v35 = vmul.f32 %v2638_v3, %v6236_v33 }
 0xb0e   :  { %v2639_v38 = vsel %vm301_vm4, %v5585_v37, %v2637_v4  ;;  %v2645_v48 = vsel %vm301_vm4, %v2637_v4, %v5581_v29  ;;  %v6243_v4 = vld [vmem:[#allocation24_spill] sm:$0xff] }
 0xb0f   :  { %v2650_v54 = vmul.f32 %v2645_v48, %v6125_v1  ;;  %v2653_v51 = vmul.f32 %v2639_v38, %v6236_v33  ;;  %v2663_v15 = vpop.permute.xlu0 %2662  ;;  %2828 = vmatprep.subr.bf16.mxu0 %v2655_v41  ;;  %v2511_v1 = vpack.c.bf16 %v5485_v61, %v5479_v27  ;;  %v6244_v38 = vld [vmem:[#allocation25_spill] sm:$0xff]  ;;  %v6245_v33 = vld [vmem:[#allocation16_spill] sm:$0xff] }
 0xb10   :  { %v2676_v17 = vsel %vm354_vm5, %v2663_v15, %v5591_v0  ;;  %v2678_v26 = vsel %vm354_vm5, %v5587_v5, %v2663_v15 }
 0xb11   :  { %v2654_v28 = vpack.c.bf16 %v2650_v54, %v2646_v7  ;;  %v2665_v37 = vpop.permute.xlu1 %2664  ;;  %v2657_v50 = vpack.c.bf16 %v2653_v51, %v2649_v35  ;;  %v2683_v32 = vmul.f32 %v2676_v17, %v6237_v62  ;;  %v2682_v53 = vmul.f32 %v2678_v26, %v6139_v8  ;;  %v6246_v54 = vld [vmem:[#allocation76_spill] sm:$0xff]  ;;  %v6250_v26 = vld [vmem:[#allocation27_spill] sm:$0xff] }
 0xb12   :  { %v2677_v29 = vsel %vm354_vm5, %v2665_v37, %v5593_v13  ;;  %v2679_v36 = vsel %vm354_vm5, %v5589_v12, %v2665_v37  ;;  %v6247_v37 = vld [vmem:[#allocation77_spill] sm:$0xff] }
 0xb13   :  { %v2687_v21 = vmul.f32 %v2677_v29, %v6237_v62  ;;  %v2671_v18 = vpop.permute.xlu0 %2670  ;;  %2829 = vmatpush1.bf16.msra.mxu0 %v2654_v28  ;;  %2871 = vmatprep.subr.bf16.mxu1 %v2657_v50  ;;  %v2686_v61 = vmul.f32 %v2679_v36, %v6139_v8  ;;  %v6238_v8 = vpack.c.bf16 %v5402_v2, %v5399_v47  ;;  %v6240_v2 = vld [vmem:[#allocation59_spill] sm:$0xff]  ;;  %v6248_v29 = vld [vmem:[#allocation78_spill] sm:$0xff] }
 0xb14   :  { %v2674_v45 = vsel %vm354_vm5, %v5591_v0, %v2671_v18  ;;  %v2680_v27 = vsel %vm354_vm5, %v2671_v18, %v5587_v5  ;;  %2830 = vmatprep.subr.bf16.mxu0 %v2511_v1  ;;  %2872 = vmatpush1.bf16.msra.mxu1 %v2656_v31  ;;  %v6249_v1 = vld [vmem:[#allocation26_spill] sm:$0xff] }
 0xb15   :  { %2873 = vmatprep.subr.bf16.mxu1 %v2513_v58  ;;  %v2673_v49 = vpop.permute.xlu1 %2672  ;;  %v2691_v16 = vpack.c.bf16 %v2687_v21, %v2683_v32  ;;  %v2684_v11 = vmul.f32 %v2674_v45, %v6153_v9  ;;  %v2685_v5 = vmul.f32 %v2680_v27, %v6154_v44 }
 0xb16   :  { %v2675_v30 = vsel %vm354_vm5, %v5593_v13, %v2673_v49  ;;  %v2681_v0 = vsel %vm354_vm5, %v2673_v49, %v5589_v12 }
 0xb17   :  { %v2688_v23 = vmul.f32 %v2675_v30, %v6153_v9  ;;  %v2689_v52 = vmul.f32 %v2681_v0, %v6154_v44  ;;  %v2699_v25 = vpop.permute.xlu0 %2698  ;;  %2831 = vmatpush1.bf16.msra.mxu0 %v6238_v8  ;;  %v2690_v9 = vpack.c.bf16 %v2686_v61, %v2682_v53  ;;  %v6251_v0 = vld [vmem:[#allocation28_spill] sm:$0xff] }
 0xb18   :  { %v2712_v13 = vsel %vm407_vm6, %v2699_v25, %v5599_v22  ;;  %v2714_v12 = vsel %vm407_vm6, %v5595_v57, %v2699_v25  ;;  %2832 = vmatprep.subr.bf16.mxu0 %v2691_v16  ;;  %2874 = vmatpush1.bf16.msra.mxu1 %v6239_v40  ;;  %v6254_v40 = vld [vmem:[#allocation60_spill] sm:$0xff] }
 0xb19   :  { %v2692_v44 = vpack.c.bf16 %v2688_v23, %v2684_v11  ;;  %v2701_v42 = vpop.permute.xlu1 %2700  ;;  %v2693_v39 = vpack.c.bf16 %v2689_v52, %v2685_v5  ;;  %v2718_v47 = vmul.f32 %v2714_v12, %v6162_v56  ;;  %v2719_v60 = vmul.f32 %v2712_v13, %v6242_v59  ;;  %v6252_v5 = vld [vmem:[#allocation29_spill] sm:$0xff]  ;;  %v6253_v13 = vld [vmem:[#allocation46_spill] sm:$0xff] }
 0xb1a   :  { %v2713_v34 = vsel %vm407_vm6, %v2701_v42, %v6240_v2  ;;  %v2715_v55 = vsel %vm407_vm6, %v6241_v19, %v2701_v42 }
 0xb1b   :  { %v2722_v63 = vmul.f32 %v2715_v55, %v6162_v56  ;;  %v2723_v24 = vmul.f32 %v2713_v34, %v6242_v59  ;;  %v2707_v20 = vpop.permute.xlu0 %2706  ;;  %2833 = vmatpush1.bf16.msra.mxu0 %v2690_v9  ;;  %2875 = vmatprep.subr.bf16.mxu1 %v2693_v39  ;;  %v6256_v34 = vld [vmem:[#allocation79_spill] sm:$0xff]  ;;  %v3153_v55 = vld [vmem:[#allocation2 + $0x20] ss:$0 sm:$0xff] }
 0xb1c   :  { %v2710_v46 = vsel %vm407_vm6, %v5599_v22, %v2707_v20  ;;  %v2716_v43 = vsel %vm407_vm6, %v2707_v20, %v5595_v57  ;;  %2876 = vmatpush1.bf16.msra.mxu1 %v2692_v44 }
 0xb1d   :  { %v2726_v6 = vpack.c.bf16 %v2722_v63, %v2718_v47  ;;  %v2709_v3 = vpop.permute.xlu1 %2708  ;;  %v2727_v14 = vpack.c.bf16 %v2723_v24, %v2719_v60  ;;  %v2720_v41 = vmul.f32 %v2710_v46, %v6243_v4  ;;  %v2721_v22 = vmul.f32 %v2716_v43, %v6244_v38  ;;  %v6255_v47 = vld [vmem:[#allocation61_spill] sm:$0xff]  ;;  %v3154_v60 = vld [vmem:[#allocation2 + $0x28] ss:$0 sm:$0xff] }
 0xb1e   :  { %v2711_v56 = vsel %vm407_vm6, %v6240_v2, %v2709_v3  ;;  %v2717_v31 = vsel %vm407_vm6, %v2709_v3, %v6241_v19 }
 0xb1f   :  { %v2724_v48 = vmul.f32 %v2711_v56, %v6243_v4  ;;  %v2725_v57 = vmul.f32 %v2717_v31, %v6244_v38  ;;  %v2735_v7 = vpop.permute.xlu0 %2734  ;;  %2834 = vmatprep.subr.bf16.mxu0 %v2727_v14 }
 0xb20   :  { %v2748_v35 = vsel %vm460_vm7, %v2735_v7, %v6245_v33  ;;  %v2750_v51 = vsel %vm460_vm7, %v6246_v54, %v2735_v7  ;;  %2835 = vmatpush1.bf16.msra.mxu0 %v2726_v6 }
 0xb21   :  { %v2728_v15 = vpack.c.bf16 %v2724_v48, %v2720_v41  ;;  %v2737_v17 = vpop.permute.xlu1 %2736  ;;  %v2729_v28 = vpack.c.bf16 %v2725_v57, %v2721_v22  ;;  %v2754_v58 = vmul.f32 %v2750_v51, %v6249_v1  ;;  %v2755_v62 = vmul.f32 %v2748_v35, %v6250_v26  ;;  %v3155_v41 = vld [vmem:[#allocation2 + $0x30] ss:$0 sm:$0xff]  ;;  %v3156_v22 = vld [vmem:[#allocation2 + $0x38] ss:$0 sm:$0xff] }
 0xb22   :  { %v2749_v50 = vsel %vm460_vm7, %v2737_v17, %v6247_v37  ;;  %v2751_v36 = vsel %vm460_vm7, %v6248_v29, %v2737_v17 }
 0xb23   :  { %v2758_v32 = vmul.f32 %v2751_v36, %v6249_v1  ;;  %v2759_v21 = vmul.f32 %v2749_v50, %v6250_v26  ;;  %v2743_v18 = vpop.permute.xlu0 %2742  ;;  %2877 = vmatprep.subr.bf16.mxu1 %v2729_v28 }
 0xb24   :  { %v2746_v45 = vsel %vm460_vm7, %v6245_v33, %v2743_v18  ;;  %v2752_v27 = vsel %vm460_vm7, %v2743_v18, %v6246_v54  ;;  %2878 = vmatpush1.bf16.msra.mxu1 %v2728_v15  ;;  %v3110_v33 = vld [vmem:[#allocation6] ss:$8 sps:$4 sm:$0x1f]  }
 0xb25   :  { %v2762_v61 = vpack.c.bf16 %v2758_v32, %v2754_v58  ;;  %v2745_v49 = vpop.permute.xlu1 %2744  ;;  %v2763_v16 = vpack.c.bf16 %v2759_v21, %v2755_v62  ;;  %v2756_v11 = vmul.f32 %v2746_v45, %v6251_v0  ;;  %v2757_v23 = vmul.f32 %v2752_v27, %v6252_v5 }
 0xb26   :  { %v2747_v53 = vsel %vm460_vm7, %v6247_v37, %v2745_v49  ;;  %v2753_v30 = vsel %vm460_vm7, %v2745_v49, %v6248_v29 }
 0xb27   :  { %v2760_v52 = vmul.f32 %v2747_v53, %v6251_v0  ;;  %v2761_v25 = vmul.f32 %v2753_v30, %v6252_v5  ;;  %v2771_v8 = vpop.permute.xlu0 %2770  ;;  %2836 = vmatprep.subr.bf16.mxu0 %v2763_v16 }
 0xb28   :  { %v2784_v12 = vsel %vm513_vm8, %v2771_v8, %v6253_v13  ;;  %v2786_v9 = vsel %vm513_vm8, %v6254_v40, %v2771_v8  ;;  %2837 = vmatpush1.bf16.msra.mxu0 %v2762_v61 }
 0xb29   :  { %v2764_v44 = vpack.c.bf16 %v2760_v52, %v2756_v11  ;;  %v2773_v42 = vpop.permute.xlu1 %2772  ;;  %v2765_v39 = vpack.c.bf16 %v2761_v25, %v2757_v23  ;;  %v2790_v59 = vmul.f32 %v3153_v55, %v2786_v9  ;;  %v2791_v63 = vmul.f32 %v3154_v60, %v2784_v12 }
 0xb2a   :  { %v2785_v2 = vsel %vm513_vm8, %v2773_v42, %v6255_v47  ;;  %v2787_v19 = vsel %vm513_vm8, %v6256_v34, %v2773_v42 }
 0xb2b   :  { %v2794_v24 = vmul.f32 %v3153_v55, %v2787_v19  ;;  %v2795_v20 = vmul.f32 %v3154_v60, %v2785_v2  ;;  %v2779_v46 = vpop.permute.xlu0 %2778  ;;  %2879 = vmatprep.subr.bf16.mxu1 %v2765_v39 }
 0xb2c   :  { %v2782_v43 = vsel %vm513_vm8, %v6253_v13, %v2779_v46  ;;  %v2788_v6 = vsel %vm513_vm8, %v2779_v46, %v6254_v40  ;;  %2880 = vmatpush1.bf16.msra.mxu1 %v2764_v44 }
 0xb2d   :  { %v2798_v3 = vpack.c.bf16 %v2794_v24, %v2790_v59  ;;  %v2781_v14 = vpop.permute.xlu1 %2780  ;;  %v2799_v56 = vpack.c.bf16 %v2795_v20, %v2791_v63  ;;  %v2792_v38 = vmul.f32 %v3155_v41, %v2782_v43  ;;  %v2793_v48 = vmul.f32 %v3156_v22, %v2788_v6 }
 0xb2e   :  { %v2783_v31 = vsel %vm513_vm8, %v6255_v47, %v2781_v14  ;;  %v2789_v4 = vsel %vm513_vm8, %v2781_v14, %v6256_v34 }
 0xb2f   :  { %v2796_v57 = vmul.f32 %v3155_v41, %v2783_v31  ;;  %v2797_v7 = vmul.f32 %v3156_v22, %v2789_v4  ;;  %2838 = vmatprep.subr.bf16.mxu0 %v2799_v56 }
 0xb30   :  { %2839 = vmatpush1.bf16.msra.mxu0 %v2798_v3 }
 0xb31   :  { %v2800_v35 = vpack.c.bf16 %v2796_v57, %v2792_v38  ;;  %v2801_v54 = vpack.c.bf16 %v2797_v7, %v2793_v48 }
 0xb33   :  { %2881 = vmatprep.subr.bf16.mxu1 %v2801_v54  ;;  %2855 = vmatmul.mubr.bf16.vlgmr.msra.gmra.mrb[40].mxu0 %v3110_v33 }
 0xb34   :  { %2882 = vmatpush1.bf16.msra.mxu1 %v2800_v35 }
 0xb37   :  { %2898 = vmatmul.mubr.bf16.vlgmr.msra.gmra.mrb[40].mxu1 %v3110_v33 }
 0xb3c   :  { %v2804_v51 = vpop.permute.xlu0 %2803 }
 0xb3e   :  { %v2808_v17 = vpop.permute.xlu1 %2807 }
 0xc06   :  { %v2856_v15 = vpop.f32.mrb[40].mxu0 }
 0xc07   :  { %v2858_v10 = vpop.f32.mrb[41].mxu0  ;;  %v2857_v28 = vadd.f32 %v2856_v15, %v2804_v51 }
 0xc08   :  { %v2860_v37 = vpop.f32.mrb[42].mxu0  ;;  %v2859_v50 = vadd.f32 %v2858_v10, %v2804_v51 }
 0xc09   :  { %3127 = vtanh.f32 %v2857_v28  ;;  %v2861_v29 = vadd.f32 %v2860_v37, %v2808_v17  ;;  %v2862_v36 = vpop.f32.mrb[43].mxu0 }
 0xc0a   :  { %v2899_v1 = vpop.f32.mrb[40].mxu1  ;;  %3129 = vtanh.f32 %v2859_v50  ;;  %v2863_v58 = vadd.f32 %v2862_v36, %v2808_v17 }
 0xc0b   :  { %v2901_v26 = vpop.f32.mrb[41].mxu1  ;;  %v2900_v62 = vadd.f32 %v2899_v1, %v2804_v51  ;;  %3131 = vtanh.f32 %v2861_v29 }
 0xc0c   :  { %v2903_v32 = vpop.f32.mrb[42].mxu1  ;;  %v2902_v21 = vadd.f32 %v2901_v26, %v2804_v51  ;;  %3133 = vtanh.f32 %v2863_v58 }
 0xc0d   :  { %3135 = vtanh.f32 %v2900_v62  ;;  %v2905_v18 = vpop.f32.mrb[43].mxu1  ;;  %v2904_v45 = vadd.f32 %v2903_v32, %v2808_v17 }
 0xc0e   :  { %3137 = vtanh.f32 %v2902_v21  ;;  %v2906_v27 = vadd.f32 %v2905_v18, %v2808_v17 }
 0xc0f   :  { %3139 = vtanh.f32 %v2904_v45 }
 0xc10   :  { %3141 = vtanh.f32 %v2906_v27 }
 0xc13   :  { %v3128_v61 = vpop.eup %3127 }
 0xc14   :  { %v3130_v49 = vpop.eup %3129  ;;  %2916 = vst [vmem:[%s5903_s8] sm:$0xff] %v3128_v61 }
 0xc15   :  { %v3132_v16 = vpop.eup %3131  ;;  %2917 = vst [vmem:[%s5903_s8 + $0x8] sm:$0xff] %v3130_v49 }
 0xc16   :  { %v3134_v53 = vpop.eup %3133  ;;  %2918 = vst [vmem:[%s5903_s8 + $0x10] sm:$0x3] %v3132_v16 }
 0xc17   :  { %v3136_v30 = vpop.eup %3135  ;;  %2919 = vst [vmem:[%s5903_s8 + $0x18] sm:$0x3] %v3134_v53 }
 0xc18   :  { %v3138_v0 = vpop.eup %3137  ;;  %2980 = vst [vmem:[%s5903_s8 + $0x20] sm:$0xff] %v3136_v30 }
 0xc19   :  { %v3140_v11 = vpop.eup %3139  ;;  %2981 = vst [vmem:[%s5903_s8 + $0x28] sm:$0xff] %v3138_v0 }
 0xc1a   :  { %v3142_v5 = vpop.eup %3141  ;;  %2982 = vst [vmem:[%s5903_s8 + $0x30] sm:$0x3] %v3140_v11 }
 0xc1b   :  { %2983 = vst [vmem:[%s5903_s8 + $0x38] sm:$0x3] %v3142_v5 }
 0xc1c   :  { %2929 = vsyncpa [#allocation3], 1 }
 0xc1d   :  { %2930 = vsyncpa [#allocation5], 1 }
 0xc1e   :  { %2931 = vsyncpa [#allocation8], 1 }

</bundles_post_ra>
